<compile_context>
chip_gen: v7x
topology: tpu7x:2x2x1
jax: 0.10.0
libtpu: 0.0.40
codegen_flags: <defaults>
</compile_context>

<pallas_src>
import jax
import jax.numpy as jnp
import numpy as np
from jax.experimental import pallas as pl
from jax.experimental.pallas import tpu as pltpu


# ------------------------------ Pallas kernel ------------------------------ #

def _make_encoder_kernel(PW, m_rows):
    """PW: padded activation width (multiple of 8); m_rows: rows per grid block."""

    def kernel(p_ref, w0_ref, b0_ref, w1_ref, b1_ref, w2_ref, b2_ref,
               w3_ref, b3_ref, o_ref):
        # ---- layer 0: pre-gathered stride-2 patches -> matmul + bias + ReLU ----
        h = jnp.dot(p_ref[...], w0_ref[...], preferred_element_type=jnp.float32)
        h = jnp.maximum(h + b0_ref[...], 0.0).astype(jnp.bfloat16)   # (m_rows, 32)

        # ---- layers 1..3: in-VMEM im2col + K=288 matmul + bias + ReLU ----
        m = m_rows
        for w_ref, b_ref in ((w1_ref, b1_ref), (w2_ref, b2_ref), (w3_ref, b3_ref)):
            m_out = m - 3 * PW
            pieces = [h[ky * PW + kx: ky * PW + kx + m_out, :]
                      for ky in range(3) for kx in range(3)]
            patches = jnp.concatenate(pieces, axis=1)                # (m_out, 288) bf16
            acc = jnp.dot(patches, w_ref[...],
                          preferred_element_type=jnp.float32)
            h = jnp.maximum(acc + b_ref[...], 0.0).astype(jnp.bfloat16)
            m = m_out

        # ---- pad garbage tail rows back to m_rows, lane-pack 4 row groups ----
        h = jnp.concatenate(
            [h, jnp.zeros((m_rows - m, h.shape[1]), h.dtype)], axis=0)
        q = m_rows // 4
        packed = jnp.concatenate(
            [h[g * q:(g + 1) * q, :] for g in range(4)], axis=1)     # (q, 128)
        o_ref[...] = packed

    return kernel


# --------------------------------- helpers --------------------------------- #

def _round_up(x, m):
    return ((x + m - 1) // m) * m


def _pick_block_images(n_images, rows_per_img, k0):
    """Images per grid step, sized against this generation's VMEM."""
    try:
        vmem_cap = int(pltpu.get_tpu_info().vmem_capacity_bytes)
    except Exception:
        vmem_cap = 64 * 1024 * 1024            # conservative (v7x physical VMEM)
    budget = min(vmem_cap // 4, 16 * 1024 * 1024)
    per_img = rows_per_img * (
        2 * 2 * k0        # patch input block, double-buffered, bf16
        + 2 * 2 * 32      # packed output block, double-buffered, bf16
        + 2 * 32 * 2      # bf16 activations (current + next layer)
        + 2 * 288         # in-VMEM lane-concatenated patches, bf16
        + 4 * 32 * 2)     # f32 matmul result + accumulator headroom
    return int(max(1, min(n_images, budget // per_img)))


def prepare_params(params):
    """One-time parameter prep (call OUTSIDE the per-forward jit path):
    fold obs/255 - 0.5 into layer 0, OIHW -> (K, Cout) matmul layout, bf16 cast."""
    prepped = []
    for li, (w, b) in enumerate(params):
        w = jnp.asarray(w, jnp.float32)
        b = jnp.asarray(b, jnp.float32)
        if li == 0:
            # conv(x/255 - 0.5, W) + b == conv(x, W/255) + (b - 0.5*sum(W))
            b = b + (-0.5) * jnp.sum(w, axis=(1, 2, 3))
            w = w / 255.0
        cout, cin = w.shape[0], w.shape[1]
        assert cout == 32, "kernel lane-packing assumes Cout == 32"
        wm = jnp.transpose(w, (2, 3, 1, 0)).reshape(9 * cin, cout).astype(jnp.bfloat16)
        bm = b.reshape(1, cout).astype(jnp.float32)
        prepped.append((wm, bm))
    return prepped


# --------------------------------- forward --------------------------------- #

@jax.jit
def predict_encoder_forward(prepped_params, obs_nchw):
    """Fused Pallas implementation of PredictEncoder.forward.

    obs_nchw: [N, 3, H, W] raw pixels in [0, 255].
    Returns [N, 32 * OH3 * OW3] flattened in NCHW order (matches torch .view).
    """
    (w0, b0), (w1, b1), (w2, b2), (w3, b3) = prepped_params
    N, C, H, W = obs_nchw.shape
    assert C == 3
    OH0, OW0 = (H - 3) // 2 + 1, (W - 3) // 2 + 1
    OH3, OW3 = OH0 - 6, OW0 - 6
    assert OH3 >= 1 and OW3 >= 1

    PW = _round_up(OW0, 8)                      # fixed padded activation width
    HS = OH0 + 3                                # +3 rows so shrinking never drops real rows
    while (HS * PW) % 64:                       # keep block row counts tile-friendly
        HS += 1
    rows_per_img = HS * PW

    nb = _pick_block_images(N, rows_per_img, k0=w0.shape[0])
    n_pad = _round_up(N, nb)
    G = n_pad // nb
    m_rows = nb * rows_per_img
    q = m_rows // 4

    # ---- layer-0 im2col (stride 2) as XLA glue, padded to the (HS, PW) slab layout
    x = jnp.transpose(obs_nchw, (0, 2, 3, 1)).astype(jnp.bfloat16)   # NHWC
    cols = [x[:, ky: ky + 2 * (OH0 - 1) + 1: 2,
                 kx: kx + 2 * (OW0 - 1) + 1: 2, :]
            for ky in range(3) for kx in range(3)]
    p0 = jnp.concatenate(cols, axis=-1)                              # (N, OH0, OW0, 27)
    p0 = jnp.pad(p0, ((0, n_pad - N), (0, HS - OH0), (0, PW - OW0), (0, 0)))
    p0 = p0.reshape(n_pad * rows_per_img, 9 * C)

    const2 = lambda i: (0, 0)
    out = pl.pallas_call(
        _make_encoder_kernel(PW, m_rows),
        out_shape=jax.ShapeDtypeStruct((G * q, 128), jnp.bfloat16),
        grid_spec=pltpu.PrefetchScalarGridSpec(
            num_scalar_prefetch=0,
            grid=(G,),
            in_specs=[
                pl.BlockSpec((m_rows, 9 * C), lambda i: (i, 0)),
                pl.BlockSpec(w0.shape, const2), pl.BlockSpec(b0.shape, const2),
                pl.BlockSpec(w1.shape, const2), pl.BlockSpec(b1.shape, const2),
                pl.BlockSpec(w2.shape, const2), pl.BlockSpec(b2.shape, const2),
                pl.BlockSpec(w3.shape, const2), pl.BlockSpec(b3.shape, const2),
            ],
            out_specs=pl.BlockSpec((q, 128), lambda i: (i, 0)),
        ),
        compiler_params=pltpu.CompilerParams(
            dimension_semantics=("parallel",),
            vmem_limit_bytes=48 * 1024 * 1024),
    )(p0, w0, b0, w1, b1, w2, b2, w3, b3)

    # ---- un-pack lanes, crop padding, NCHW flatten order (all on the small output)
    h = out.reshape(G, q, 4, 32).transpose(0, 2, 1, 3)               # (G, 4, q, 32)
    h = h.reshape(n_pad, HS, PW, 32)[:N, :OH3, :OW3, :]
    h = jnp.transpose(h, (0, 3, 1, 2))                               # NCHW
    return h.reshape(N, -1).astype(jnp.float32)


# -------------------------------- reference -------------------------------- #

def reference_forward(params, obs_nchw):
    x = obs_nchw.astype(jnp.float32) / 255.0 - 0.5
    strides = (2, 1, 1, 1)
    for (w, b), s in zip(params, strides):
        x = jax.lax.conv_general_dilated(
            x, w, window_strides=(s, s), padding="VALID",
            dimension_numbers=("NCHW", "OIHW", "NCHW"))
        x = jax.nn.relu(x + b[None, :, None, None])
    return x.reshape(x.shape[0], -1)


if __name__ == "__main__":
    key = jax.random.PRNGKey(0)
    keys = jax.random.split(key, 9)

    # small but shape-consistent: obs_shape=(3, 20, 20) -> 9 -> 7 -> 5 -> 3 spatial
    N = 2
    obs_shape = (3, 20, 20)
    obs = jax.random.uniform(keys[0], (N,) + obs_shape, jnp.float32, 0.0, 255.0)

    # deterministic synthetic parameters (shapes from the nn.Conv2d defs)
    # TODO(synk): original uses drqv2 weight_init (orthogonal); synthetic init here.
    params = []
    cin = 3
    for li in range(4):
        w = 0.05 * jax.random.normal(keys[1 + 2 * li], (32, cin, 3, 3), jnp.float32)
        b = 0.01 * jax.random.normal(keys[2 + 2 * li], (32,), jnp.float32)
        params.append((w, b))
        cin = 32

    prepped = prepare_params(params)            # one-time prep, outside the jit path
    out = jax.block_until_ready(predict_encoder_forward(prepped, obs))
    ref = reference_forward(params, obs)

    assert out.shape == (N, 32 * 3 * 3), out.shape
    # bf16 operands / bf16 inter-layer activations (f32 accumulation) vs f32 reference
    np.testing.assert_allclose(np.asarray(out), np.asarray(ref),
                               rtol=2e-2, atol=2e-2)
    print("KERNEL_OK")
</pallas_src>

<mosaic_0001>
module attributes {stable_mosaic.version = 11 : i64} {
  func.func @kernel(%arg0: i32, %arg1: memref<384x27xbf16, #tpu.memory_space<vmem>>, %arg2: memref<27x32xbf16, #tpu.memory_space<vmem>>, %arg3: memref<1x32xf32, #tpu.memory_space<vmem>>, %arg4: memref<288x32xbf16, #tpu.memory_space<vmem>>, %arg5: memref<1x32xf32, #tpu.memory_space<vmem>>, %arg6: memref<288x32xbf16, #tpu.memory_space<vmem>>, %arg7: memref<1x32xf32, #tpu.memory_space<vmem>>, %arg8: memref<288x32xbf16, #tpu.memory_space<vmem>>, %arg9: memref<1x32xf32, #tpu.memory_space<vmem>>, %arg10: memref<96x128xbf16, #tpu.memory_space<vmem>>) attributes {dimension_semantics = [#tpu.dimension_semantics<parallel>], iteration_bounds = array<i64: 1>, scalar_prefetch = 0 : i64, scratch_operands = 0 : i64, tpu.core_type = #tpu.core_type<tc>, window_params = [{transform_indices = @transform_0, window_bounds = array<i64: 384, 27>}, {pipeline_mode = #tpu.pipeline_mode<synchronous>, transform_indices = @transform_1, window_bounds = array<i64: 27, 32>}, {pipeline_mode = #tpu.pipeline_mode<synchronous>, transform_indices = @transform_2, window_bounds = array<i64: 1, 32>}, {pipeline_mode = #tpu.pipeline_mode<synchronous>, transform_indices = @transform_3, window_bounds = array<i64: 288, 32>}, {pipeline_mode = #tpu.pipeline_mode<synchronous>, transform_indices = @transform_4, window_bounds = array<i64: 1, 32>}, {pipeline_mode = #tpu.pipeline_mode<synchronous>, transform_indices = @transform_5, window_bounds = array<i64: 288, 32>}, {pipeline_mode = #tpu.pipeline_mode<synchronous>, transform_indices = @transform_6, window_bounds = array<i64: 1, 32>}, {pipeline_mode = #tpu.pipeline_mode<synchronous>, transform_indices = @transform_7, window_bounds = array<i64: 288, 32>}, {pipeline_mode = #tpu.pipeline_mode<synchronous>, transform_indices = @transform_8, window_bounds = array<i64: 1, 32>}, {transform_indices = @transform_9, window_bounds = array<i64: 96, 128>}]} {
    %c0 = arith.constant 0 : index
    %c0_0 = arith.constant 0 : index
    %0 = vector.load %arg1[%c0, %c0_0] : memref<384x27xbf16, #tpu.memory_space<vmem>>, vector<384x27xbf16>
    %c0_1 = arith.constant 0 : index
    %c0_2 = arith.constant 0 : index
    %1 = vector.load %arg2[%c0_1, %c0_2] : memref<27x32xbf16, #tpu.memory_space<vmem>>, vector<27x32xbf16>
    %cst = arith.constant dense<0.000000e+00> : vector<384x32xf32>
    %2 = tpu.matmul %0, %1, %cst {dimension_numbers = #tpu.dot_dimension_numbers<[1], [0], [0], [1], [0, 0, 1, 1], [], []>} : vector<384x27xbf16>, vector<27x32xbf16>, vector<384x32xf32> -> vector<384x32xf32>
    %c0_3 = arith.constant 0 : index
    %c0_4 = arith.constant 0 : index
    %3 = vector.load %arg3[%c0_3, %c0_4] : memref<1x32xf32, #tpu.memory_space<vmem>>, vector<1x32xf32>
    %4 = vector.broadcast %3 : vector<1x32xf32> to vector<384x32xf32>
    %5 = arith.addf %2, %4 : vector<384x32xf32>
    %cst_5 = arith.constant 0.000000e+00 : f32
    %6 = vector.broadcast %cst_5 : f32 to vector<384x32xf32>
    %7 = arith.maximumf %5, %6 : vector<384x32xf32>
    %8 = arith.truncf %7 : vector<384x32xf32> to vector<384x32xbf16>
    %9 = vector.extract_strided_slice %8 {offsets = [0, 0], sizes = [336, 32], strides = [1, 1]} : vector<384x32xbf16> to vector<336x32xbf16>
    %10 = vector.extract_strided_slice %8 {offsets = [1, 0], sizes = [336, 32], strides = [1, 1]} : vector<384x32xbf16> to vector<336x32xbf16>
    %11 = vector.extract_strided_slice %8 {offsets = [2, 0], sizes = [336, 32], strides = [1, 1]} : vector<384x32xbf16> to vector<336x32xbf16>
    %12 = vector.extract_strided_slice %8 {offsets = [16, 0], sizes = [336, 32], strides = [1, 1]} : vector<384x32xbf16> to vector<336x32xbf16>
    %13 = vector.extract_strided_slice %8 {offsets = [17, 0], sizes = [336, 32], strides = [1, 1]} : vector<384x32xbf16> to vector<336x32xbf16>
    %14 = vector.extract_strided_slice %8 {offsets = [18, 0], sizes = [336, 32], strides = [1, 1]} : vector<384x32xbf16> to vector<336x32xbf16>
    %15 = vector.extract_strided_slice %8 {offsets = [32, 0], sizes = [336, 32], strides = [1, 1]} : vector<384x32xbf16> to vector<336x32xbf16>
    %16 = vector.extract_strided_slice %8 {offsets = [33, 0], sizes = [336, 32], strides = [1, 1]} : vector<384x32xbf16> to vector<336x32xbf16>
    %17 = vector.extract_strided_slice %8 {offsets = [34, 0], sizes = [336, 32], strides = [1, 1]} : vector<384x32xbf16> to vector<336x32xbf16>
    %18 = tpu.concatenate %9, %10, %11, %12, %13, %14, %15, %16, %17 in 1 : vector<336x32xbf16>, vector<336x32xbf16>, vector<336x32xbf16>, vector<336x32xbf16>, vector<336x32xbf16>, vector<336x32xbf16>, vector<336x32xbf16>, vector<336x32xbf16>, vector<336x32xbf16> -> vector<336x288xbf16>
    %c0_6 = arith.constant 0 : index
    %c0_7 = arith.constant 0 : index
    %19 = vector.load %arg4[%c0_6, %c0_7] : memref<288x32xbf16, #tpu.memory_space<vmem>>, vector<288x32xbf16>
    %cst_8 = arith.constant dense<0.000000e+00> : vector<336x32xf32>
    %20 = tpu.matmul %18, %19, %cst_8 {dimension_numbers = #tpu.dot_dimension_numbers<[1], [0], [0], [1], [0, 0, 1, 1], [], []>} : vector<336x288xbf16>, vector<288x32xbf16>, vector<336x32xf32> -> vector<336x32xf32>
    %c0_9 = arith.constant 0 : index
    %c0_10 = arith.constant 0 : index
    %21 = vector.load %arg5[%c0_9, %c0_10] : memref<1x32xf32, #tpu.memory_space<vmem>>, vector<1x32xf32>
    %22 = vector.broadcast %21 : vector<1x32xf32> to vector<336x32xf32>
    %23 = arith.addf %20, %22 : vector<336x32xf32>
    %cst_11 = arith.constant 0.000000e+00 : f32
    %24 = vector.broadcast %cst_11 : f32 to vector<336x32xf32>
    %25 = arith.maximumf %23, %24 : vector<336x32xf32>
    %26 = arith.truncf %25 : vector<336x32xf32> to vector<336x32xbf16>
    %27 = vector.extract_strided_slice %26 {offsets = [0, 0], sizes = [288, 32], strides = [1, 1]} : vector<336x32xbf16> to vector<288x32xbf16>
    %28 = vector.extract_strided_slice %26 {offsets = [1, 0], sizes = [288, 32], strides = [1, 1]} : vector<336x32xbf16> to vector<288x32xbf16>
    %29 = vector.extract_strided_slice %26 {offsets = [2, 0], sizes = [288, 32], strides = [1, 1]} : vector<336x32xbf16> to vector<288x32xbf16>
    %30 = vector.extract_strided_slice %26 {offsets = [16, 0], sizes = [288, 32], strides = [1, 1]} : vector<336x32xbf16> to vector<288x32xbf16>
    %31 = vector.extract_strided_slice %26 {offsets = [17, 0], sizes = [288, 32], strides = [1, 1]} : vector<336x32xbf16> to vector<288x32xbf16>
    %32 = vector.extract_strided_slice %26 {offsets = [18, 0], sizes = [288, 32], strides = [1, 1]} : vector<336x32xbf16> to vector<288x32xbf16>
    %33 = vector.extract_strided_slice %26 {offsets = [32, 0], sizes = [288, 32], strides = [1, 1]} : vector<336x32xbf16> to vector<288x32xbf16>
    %34 = vector.extract_strided_slice %26 {offsets = [33, 0], sizes = [288, 32], strides = [1, 1]} : vector<336x32xbf16> to vector<288x32xbf16>
    %35 = vector.extract_strided_slice %26 {offsets = [34, 0], sizes = [288, 32], strides = [1, 1]} : vector<336x32xbf16> to vector<288x32xbf16>
    %36 = tpu.concatenate %27, %28, %29, %30, %31, %32, %33, %34, %35 in 1 : vector<288x32xbf16>, vector<288x32xbf16>, vector<288x32xbf16>, vector<288x32xbf16>, vector<288x32xbf16>, vector<288x32xbf16>, vector<288x32xbf16>, vector<288x32xbf16>, vector<288x32xbf16> -> vector<288x288xbf16>
    %c0_12 = arith.constant 0 : index
    %c0_13 = arith.constant 0 : index
    %37 = vector.load %arg6[%c0_12, %c0_13] : memref<288x32xbf16, #tpu.memory_space<vmem>>, vector<288x32xbf16>
    %cst_14 = arith.constant dense<0.000000e+00> : vector<288x32xf32>
    %38 = tpu.matmul %36, %37, %cst_14 {dimension_numbers = #tpu.dot_dimension_numbers<[1], [0], [0], [1], [0, 0, 1, 1], [], []>} : vector<288x288xbf16>, vector<288x32xbf16>, vector<288x32xf32> -> vector<288x32xf32>
    %c0_15 = arith.constant 0 : index
    %c0_16 = arith.constant 0 : index
    %39 = vector.load %arg7[%c0_15, %c0_16] : memref<1x32xf32, #tpu.memory_space<vmem>>, vector<1x32xf32>
    %40 = vector.broadcast %39 : vector<1x32xf32> to vector<288x32xf32>
    %41 = arith.addf %38, %40 : vector<288x32xf32>
    %cst_17 = arith.constant 0.000000e+00 : f32
    %42 = vector.broadcast %cst_17 : f32 to vector<288x32xf32>
    %43 = arith.maximumf %41, %42 : vector<288x32xf32>
    %44 = arith.truncf %43 : vector<288x32xf32> to vector<288x32xbf16>
    %45 = vector.extract_strided_slice %44 {offsets = [0, 0], sizes = [240, 32], strides = [1, 1]} : vector<288x32xbf16> to vector<240x32xbf16>
    %46 = vector.extract_strided_slice %44 {offsets = [1, 0], sizes = [240, 32], strides = [1, 1]} : vector<288x32xbf16> to vector<240x32xbf16>
    %47 = vector.extract_strided_slice %44 {offsets = [2, 0], sizes = [240, 32], strides = [1, 1]} : vector<288x32xbf16> to vector<240x32xbf16>
    %48 = vector.extract_strided_slice %44 {offsets = [16, 0], sizes = [240, 32], strides = [1, 1]} : vector<288x32xbf16> to vector<240x32xbf16>
    %49 = vector.extract_strided_slice %44 {offsets = [17, 0], sizes = [240, 32], strides = [1, 1]} : vector<288x32xbf16> to vector<240x32xbf16>
    %50 = vector.extract_strided_slice %44 {offsets = [18, 0], sizes = [240, 32], strides = [1, 1]} : vector<288x32xbf16> to vector<240x32xbf16>
    %51 = vector.extract_strided_slice %44 {offsets = [32, 0], sizes = [240, 32], strides = [1, 1]} : vector<288x32xbf16> to vector<240x32xbf16>
    %52 = vector.extract_strided_slice %44 {offsets = [33, 0], sizes = [240, 32], strides = [1, 1]} : vector<288x32xbf16> to vector<240x32xbf16>
    %53 = vector.extract_strided_slice %44 {offsets = [34, 0], sizes = [240, 32], strides = [1, 1]} : vector<288x32xbf16> to vector<240x32xbf16>
    %54 = tpu.concatenate %45, %46, %47, %48, %49, %50, %51, %52, %53 in 1 : vector<240x32xbf16>, vector<240x32xbf16>, vector<240x32xbf16>, vector<240x32xbf16>, vector<240x32xbf16>, vector<240x32xbf16>, vector<240x32xbf16>, vector<240x32xbf16>, vector<240x32xbf16> -> vector<240x288xbf16>
    %c0_18 = arith.constant 0 : index
    %c0_19 = arith.constant 0 : index
    %55 = vector.load %arg8[%c0_18, %c0_19] : memref<288x32xbf16, #tpu.memory_space<vmem>>, vector<288x32xbf16>
    %cst_20 = arith.constant dense<0.000000e+00> : vector<240x32xf32>
    %56 = tpu.matmul %54, %55, %cst_20 {dimension_numbers = #tpu.dot_dimension_numbers<[1], [0], [0], [1], [0, 0, 1, 1], [], []>} : vector<240x288xbf16>, vector<288x32xbf16>, vector<240x32xf32> -> vector<240x32xf32>
    %c0_21 = arith.constant 0 : index
    %c0_22 = arith.constant 0 : index
    %57 = vector.load %arg9[%c0_21, %c0_22] : memref<1x32xf32, #tpu.memory_space<vmem>>, vector<1x32xf32>
    %58 = vector.broadcast %57 : vector<1x32xf32> to vector<240x32xf32>
    %59 = arith.addf %56, %58 : vector<240x32xf32>
    %cst_23 = arith.constant 0.000000e+00 : f32
    %60 = vector.broadcast %cst_23 : f32 to vector<240x32xf32>
    %61 = arith.maximumf %59, %60 : vector<240x32xf32>
    %62 = arith.truncf %61 : vector<240x32xf32> to vector<240x32xbf16>
    %cst_24 = arith.constant 0.000000e+00 : bf16
    %63 = vector.broadcast %cst_24 : bf16 to vector<144x32xbf16>
    %64 = tpu.concatenate %62, %63 in 0 : vector<240x32xbf16>, vector<144x32xbf16> -> vector<384x32xbf16>
    %65 = vector.extract_strided_slice %64 {offsets = [0, 0], sizes = [96, 32], strides = [1, 1]} : vector<384x32xbf16> to vector<96x32xbf16>
    %66 = vector.extract_strided_slice %64 {offsets = [96, 0], sizes = [96, 32], strides = [1, 1]} : vector<384x32xbf16> to vector<96x32xbf16>
    %67 = vector.extract_strided_slice %64 {offsets = [192, 0], sizes = [96, 32], strides = [1, 1]} : vector<384x32xbf16> to vector<96x32xbf16>
    %68 = vector.extract_strided_slice %64 {offsets = [288, 0], sizes = [96, 32], strides = [1, 1]} : vector<384x32xbf16> to vector<96x32xbf16>
    %69 = tpu.concatenate %65, %66, %67, %68 in 1 : vector<96x32xbf16>, vector<96x32xbf16>, vector<96x32xbf16>, vector<96x32xbf16> -> vector<96x128xbf16>
    %c0_25 = arith.constant 0 : index
    %c0_26 = arith.constant 0 : index
    %70 = vector.load %arg10[%c0_25, %c0_26] : memref<96x128xbf16, #tpu.memory_space<vmem>>, vector<96x128xbf16>
    tpu.vector_store %arg10[%c0_25, %c0_26], %69 {strides = array<i32>} : memref<96x128xbf16, #tpu.memory_space<vmem>>, vector<96x128xbf16>,
    return
  }
  func.func @transform_0(%arg0: i32) -> (i32, i32) {
    %c0_i32 = arith.constant 0 : i32
    %c0_i32_0 = arith.constant 0 : i32
    return %arg0, %c0_i32 : i32, i32
  }
  func.func @transform_1(%arg0: i32) -> (i32, i32) {
    %c0_i32 = arith.constant 0 : i32
    %c0_i32_0 = arith.constant 0 : i32
    %c0_i32_1 = arith.constant 0 : i32
    return %c0_i32, %c0_i32_0 : i32, i32
  }
  func.func @transform_2(%arg0: i32) -> (i32, i32) {
    %c0_i32 = arith.constant 0 : i32
    %c0_i32_0 = arith.constant 0 : i32
    %c0_i32_1 = arith.constant 0 : i32
    return %c0_i32, %c0_i32_0 : i32, i32
  }
  func.func @transform_3(%arg0: i32) -> (i32, i32) {
    %c0_i32 = arith.constant 0 : i32
    %c0_i32_0 = arith.constant 0 : i32
    %c0_i32_1 = arith.constant 0 : i32
    return %c0_i32, %c0_i32_0 : i32, i32
  }
  func.func @transform_4(%arg0: i32) -> (i32, i32) {
    %c0_i32 = arith.constant 0 : i32
    %c0_i32_0 = arith.constant 0 : i32
    %c0_i32_1 = arith.constant 0 : i32
    return %c0_i32, %c0_i32_0 : i32, i32
  }
  func.func @transform_5(%arg0: i32) -> (i32, i32) {
    %c0_i32 = arith.constant 0 : i32
    %c0_i32_0 = arith.constant 0 : i32
    %c0_i32_1 = arith.constant 0 : i32
    return %c0_i32, %c0_i32_0 : i32, i32
  }
  func.func @transform_6(%arg0: i32) -> (i32, i32) {
    %c0_i32 = arith.constant 0 : i32
    %c0_i32_0 = arith.constant 0 : i32
    %c0_i32_1 = arith.constant 0 : i32
    return %c0_i32, %c0_i32_0 : i32, i32
  }
  func.func @transform_7(%arg0: i32) -> (i32, i32) {
    %c0_i32 = arith.constant 0 : i32
    %c0_i32_0 = arith.constant 0 : i32
    %c0_i32_1 = arith.constant 0 : i32
    return %c0_i32, %c0_i32_0 : i32, i32
  }
  func.func @transform_8(%arg0: i32) -> (i32, i32) {
    %c0_i32 = arith.constant 0 : i32
    %c0_i32_0 = arith.constant 0 : i32
    %c0_i32_1 = arith.constant 0 : i32
    return %c0_i32, %c0_i32_0 : i32, i32
  }
  func.func @transform_9(%arg0: i32) -> (i32, i32) {
    %c0_i32 = arith.constant 0 : i32
    %c0_i32_0 = arith.constant 0 : i32
    return %arg0, %c0_i32 : i32, i32
  }
}

</mosaic_0001>

<bundles_post_ra>
// kernel: predict_encoder_forward.1
= control target key start
LH: loop header
LB: loop body
LE: loop exit
PB: predicated region body
PF: predicated region fallthrough
CT: control target
= control target key end

     0   :  { %vm296_vm0 = vcmask 1044480   ;;  %vm297_vm1 = vcmask 1045504   ;;  %vm223_vm2 = vcmask 220160   ;;  %v5532_v1 = vmov 65535   ;;  %s5535_s22 = smov 64   ;;  %s5536_s25 = smov 32   ;;  %s8394_s1 = inlined_call_operand.vmem [shape: bf16[27,32], index: 1, kind: input, shape index: {}]   ;;  %s8395_s0 = inlined_call_operand.vmem [shape: bf16[384,27], index: 0, kind: input, shape index: {}]   ;;  %s8396_s3 = inlined_call_operand.vmem [shape: bf16[288,32], index: 3, kind: input, shape index: {}]   ;;  %s8397_s2 = inlined_call_operand.vmem [shape: f32[1,32], index: 2, kind: input, shape index: {}]   ;;  %s8398_s5 = inlined_call_operand.vmem [shape: bf16[288,32], index: 5, kind: input, shape index: {}]   ;;  %s8399_s4 = inlined_call_operand.vmem [shape: f32[1,32], index: 4, kind: input, shape index: {}]   ;;  %s8400_s7 = inlined_call_operand.vmem [shape: bf16[288,32], index: 7, kind: input, shape index: {}]   ;;  %s8401_s6 = inlined_call_operand.vmem [shape: f32[1,32], index: 6, kind: input, shape index: {}]   ;;  %s8402_s8 = inlined_call_operand.vmem [shape: f32[1,32], index: 8, kind: input, shape index: {}]   ;;  %s8403_s9 = inlined_call_operand.vmem [shape: bf16[96,128], index: 9, kind: output, shape index: {}]  }
   0x1   :  { %v5452_v0 = vld [vmem:[%s8394_s1] sm:$0xff]   ;;  %v298_v2 = vsel %vm296_vm0, 4294967295, %v5532_v1  ;;  %v5453_v3 = vld [vmem:[%s8394_s1 + $0x8] sm:$0x3f]   ;;  %v5456_v8 = vld [vmem:[%s8395_s0 + $0x10] sm:$0xff]   ;;  %v8404_v30 = vmov 0  }
   0x2   :  { %5071 = vmatprep.subr.bf16.mxu0 %v5452_v0  ;;  %v299_v4 = vsel %vm297_vm1, %v298_v2, 0  ;;  %v5454_v5 = vld [vmem:[%s8395_s0] sm:$0xff]   ;;  %v5455_v7 = vld [vmem:[%s8395_s0 + $0x8] sm:$0xff]   ;;  %v5457_v9 = vld [vmem:[%s8395_s0 + $0x18] sm:$0xff]   ;;  %1645 = vmatprep.subr.bf16.mxu1 %v8404_v30  ;;  %vm837_vm3 = vcmask 1046528   ;;  %vm1113_vm5 = vcmask 261120  }
   0x3   :  { %5072 = vmatpush3.bf16.msra.mxu0 %v5452_v0  ;;  %v301_v6 = vand.u32 %v5453_v3, %v299_v4  ;;  %5075 = vmatprep.mubr.msk.bf16.mxu0 %vm223_vm2, %v5454_v5  ;;  %v5458_v10 = vld [vmem:[%s8395_s0 + $0x20] sm:$0xff]   ;;  %v5459_v11 = vld [vmem:[%s8395_s0 + $0x28] sm:$0xff]   ;;  %v5460_v12 = vld [vmem:[%s8395_s0 + $0x30] sm:$0xff]   ;;  %vm600_vm4 = vsmask.f32 7424  ;;  %vm1156_vm6 = vcmask 523264  }
   0x4   :  { %v5461_v13 = vld [vmem:[%s8395_s0 + $0x38] sm:$0xff]   ;;  %v5462_v14 = vld [vmem:[%s8395_s0 + $0x40] sm:$0xff]   ;;  %v5463_v15 = vld [vmem:[%s8395_s0 + $0x48] sm:$0xff]   ;;  %vm1199_vm7 = vcmask 785408   ;;  %vm5538_vm8 = vmmov 0  }
   0x5   :  { %5073 = vmatprep.subr.bf16.mxu0 %v301_v6  ;;  %v5464_v16 = vld [vmem:[%s8395_s0 + $0x50] sm:$0xff]   ;;  %v5465_v17 = vld [vmem:[%s8395_s0 + $0x58] sm:$0xff]   ;;  %v5466_v18 = vld [vmem:[%s8395_s0 + $0x60] sm:$0xff]  }
   0x6   :  { %v5467_v19 = vld [vmem:[%s8395_s0 + $0x68] sm:$0xff]   ;;  %v5468_v20 = vld [vmem:[%s8395_s0 + $0x70] sm:$0xff]   ;;  %v5469_v21 = vld [vmem:[%s8395_s0 + $0x78] sm:$0xff]  }
   0x7   :  { %5074 = vmatpush3.bf16.msra.mxu0 %v301_v6  ;;  %v5470_v22 = vld [vmem:[%s8395_s0 + $0x80] sm:$0xff]   ;;  %v5471_v23 = vld [vmem:[%s8395_s0 + $0x88] sm:$0xff]   ;;  %v5472_v24 = vld [vmem:[%s8395_s0 + $0x90] sm:$0xff]  }
   0x8   :  { %v5473_v25 = vld [vmem:[%s8395_s0 + $0x98] sm:$0xff]   ;;  %v5474_v26 = vld [vmem:[%s8395_s0 + $0xa0] sm:$0xff]   ;;  %v5475_v27 = vld [vmem:[%s8395_s0 + $0xa8] sm:$0xff]   ;;  %3027 = vmatprep.subr.bf16.mxu0 %v8404_v30 }
   0x9   :  { %v5476_v28 = vld [vmem:[%s8395_s0 + $0xb0] sm:$0xff]   ;;  %v5477_v29 = vld [vmem:[%s8395_s0 + $0xb8] sm:$0xff]   ;;  %v5478_v31 = vld [vmem:[%s8396_s3] sm:$0xff]   ;;  %s5534_s0 = smov 96  }
   0xa   :  { %5076 = vmatmul.mubr.msk.bf16.vlgmr.msra.gmra.mrb[0].mxu0 %vm223_vm2, %v5455_v7  ;;  %1646 = vmatpush1.bf16.msra.mxu1 %v5478_v31  ;;  %v5479_v32 = vld [vmem:[%s8396_s3 + $0x8] sm:$0xff]   ;;  %v5480_v33 = vld [vmem:[%s8396_s3 + $0x10] sm:$0xff]   ;;  %v5481_v34 = vld [vmem:[%s8396_s3 + $0x18] sm:$0xff]  }
   0xb   :  { %5079 = vmatprep.mubr.msk.bf16.mxu0 %vm223_vm2, %v5456_v8  ;;  %1647 = vmatprep.subr.bf16.mxu1 %v8404_v30  ;;  %v5482_v35 = vld [vmem:[%s8396_s3 + $0x20] sm:$0xff]   ;;  %v5483_v36 = vld [vmem:[%s8396_s3 + $0x28] sm:$0xff]   ;;  %v5484_v37 = vld [vmem:[%s8396_s3 + $0x30] sm:$0xff]  }
   0xc   :  { %v5485_v38 = vld [vmem:[%s8396_s3 + $0x38] sm:$0xff]   ;;  %v5486_v39 = vld [vmem:[%s8396_s3 + $0x40] sm:$0xff]   ;;  %v5487_v40 = vld [vmem:[%s8396_s3 + $0x48] sm:$0xff]  }
   0xd   :  { %v5488_v41 = vld [vmem:[%s8396_s3 + $0x50] sm:$0xff]   ;;  %v5739_v42 = vld [vmem:[%s8397_s2] ss:$0 sm:$0xff]  ;;  %v5489_v46 = vld [vmem:[%s8396_s3 + $0x58] sm:$0xff]  }
   0xe   :  { %1648 = vmatpush1.bf16.msra.mxu1 %v5479_v32  ;;  %v5490_v54 = vld [vmem:[%s8396_s3 + $0x60] sm:$0xff]   ;;  %v5491_v63 = vld [vmem:[%s8396_s3 + $0x68] sm:$0xff]  }
   0xf   :  { %1649 = vmatprep.subr.bf16.mxu1 %v8404_v30 }
  0x12   :  { %5080 = vmatmul.mubr.msk.bf16.gmra.mrb[4].mxu0 %vm223_vm2, %v5457_v9  ;;  %1650 = vmatpush1.bf16.msra.mxu1 %v5480_v33 }
  0x13   :  { %5083 = vmatprep.mubr.msk.bf16.mxu0 %vm223_vm2, %v5458_v10  ;;  %1651 = vmatprep.subr.bf16.mxu1 %v8404_v30 }
  0x16   :  { %1652 = vmatpush1.bf16.msra.mxu1 %v5481_v34 }
  0x17   :  { %1653 = vmatprep.subr.bf16.mxu1 %v8404_v30 }
  0x1a   :  { %5084 = vmatmul.mubr.msk.bf16.gmra.mrb[8].mxu0 %vm223_vm2, %v5459_v11  ;;  %1654 = vmatpush1.bf16.msra.mxu1 %v5482_v35 }
  0x1b   :  { %5087 = vmatprep.mubr.msk.bf16.mxu0 %vm223_vm2, %v5460_v12  ;;  %1655 = vmatprep.subr.bf16.mxu1 %v8404_v30 }
  0x1e   :  { %1656 = vmatpush1.bf16.msra.mxu1 %v5483_v36 }
  0x1f   :  { %1657 = vmatprep.subr.bf16.mxu1 %v8404_v30 }
  0x22   :  { %5088 = vmatmul.mubr.msk.bf16.gmra.mrb[12].mxu0 %vm223_vm2, %v5461_v13  ;;  %1658 = vmatpush1.bf16.msra.mxu1 %v5484_v37 }
  0x23   :  { %5091 = vmatprep.mubr.msk.bf16.mxu0 %vm223_vm2, %v5462_v14  ;;  %1659 = vmatprep.subr.bf16.mxu1 %v8404_v30  ;;  %v5492_v14 = vld [vmem:[%s8396_s3 + $0x70] sm:$0xff]  }
  0x26   :  { %1660 = vmatpush1.bf16.msra.mxu1 %v5485_v38 }
  0x27   :  { %1661 = vmatprep.subr.bf16.mxu1 %v8404_v30 }
  0x2a   :  { %5092 = vmatmul.mubr.msk.bf16.gmra.mrb[16].mxu0 %vm223_vm2, %v5463_v15  ;;  %1662 = vmatpush1.bf16.msra.mxu1 %v5486_v39 }
  0x2b   :  { %5095 = vmatprep.mubr.msk.bf16.mxu0 %vm223_vm2, %v5464_v16  ;;  %1663 = vmatprep.subr.bf16.mxu1 %v8404_v30 }
  0x2e   :  { %1664 = vmatpush1.bf16.msra.mxu1 %v5487_v40 }
  0x2f   :  { %1665 = vmatprep.subr.bf16.mxu1 %v8404_v30 }
  0x32   :  { %5096 = vmatmul.mubr.msk.bf16.gmra.mrb[20].mxu0 %vm223_vm2, %v5465_v17  ;;  %1666 = vmatpush1.bf16.msra.mxu1 %v5488_v41 }
  0x33   :  { %5099 = vmatprep.mubr.msk.bf16.mxu0 %vm223_vm2, %v5466_v18  ;;  %1667 = vmatprep.subr.bf16.mxu1 %v8404_v30 }
  0x36   :  { %1668 = vmatpush1.bf16.msra.mxu1 %v5489_v46 }
  0x37   :  { %1669 = vmatprep.subr.bf16.mxu1 %v8404_v30 }
  0x3a   :  { %5100 = vmatmul.mubr.msk.bf16.gmra.mrb[24].mxu0 %vm223_vm2, %v5467_v19  ;;  %1670 = vmatpush1.bf16.msra.mxu1 %v5490_v54 }
  0x3b   :  { %5103 = vmatprep.mubr.msk.bf16.mxu0 %vm223_vm2, %v5468_v20  ;;  %1671 = vmatprep.subr.bf16.mxu1 %v8404_v30 }
  0x3e   :  { %1672 = vmatpush1.bf16.msra.mxu1 %v5491_v63 }
  0x3f   :  { %1673 = vmatprep.subr.bf16.mxu1 %v8404_v30 }
  0x42   :  { %5104 = vmatmul.mubr.msk.bf16.gmra.mrb[28].mxu0 %vm223_vm2, %v5469_v21  ;;  %1674 = vmatpush1.bf16.msra.mxu1 %v5492_v14 }
  0x43   :  { %5107 = vmatprep.mubr.msk.bf16.mxu0 %vm223_vm2, %v5470_v22  ;;  %1675 = vmatprep.subr.bf16.mxu1 %v8404_v30 }
  0x4a   :  { %5108 = vmatmul.mubr.msk.bf16.gmra.mrb[32].mxu0 %vm223_vm2, %v5471_v23 }
  0x4b   :  { %5111 = vmatprep.mubr.msk.bf16.mxu0 %vm223_vm2, %v5472_v24  ;;  %v5493_v24 = vld [vmem:[%s8396_s3 + $0x78] sm:$0xff]  }
  0x4c   :  { %1676 = vmatpush1.bf16.msra.mxu1 %v5493_v24 }
  0x52   :  { %5112 = vmatmul.mubr.msk.bf16.gmra.mrb[36].mxu0 %vm223_vm2, %v5473_v25 }
  0x53   :  { %5115 = vmatprep.mubr.msk.bf16.mxu0 %vm223_vm2, %v5474_v26 }
  0x5a   :  { %5116 = vmatmul.mubr.msk.bf16.gmra.mrb[40].mxu0 %vm223_vm2, %v5475_v27 }
  0x5b   :  { %5119 = vmatprep.mubr.msk.bf16.mxu0 %vm223_vm2, %v5476_v28 }
  0x62   :  { %5120 = vmatmul.mubr.msk.bf16.gmra.mrb[44].mxu0 %vm223_vm2, %v5477_v29 }
  0xdd   :  { %v5077_v43 = vpop.f32.mrb[0].mxu0 }
  0xde   :  { %v346_v44 = vadd.f32 %v5077_v43, %v5739_v42  ;;  %v337_v45 = vpop.f32.mrb[1].mxu0 }
  0xdf   :  { %v338_v47 = vadd.f32 %v5739_v42, %v337_v45  ;;  %v5078_v48 = vpop.f32.mrb[2].mxu0 }
  0xe0   :  { %v349_v49 = vadd.f32 %v5078_v48, %v5739_v42  ;;  %v340_v50 = vpop.f32.mrb[3].mxu0  ;;  %v530_v52 = vmax.f32 %v346_v44, 0.0 }
  0xe1   :  { %v341_v51 = vadd.f32 %v5739_v42, %v340_v50  ;;  %v528_v55 = vmax.f32 %v338_v47, 0.0 }
  0xe2   :  { %v531_v53 = vmax.f32 %v349_v49, 0.0 }
  0xe3   :  { %v529_v56 = vmax.f32 %v341_v51, 0.0 }
  0xe4   :  { %v5753_v57 = vpack.c.bf16 %v531_v53, %v530_v52 }
  0xe5   :  { %v5755_v58 = vpack.c.bf16 %v529_v56, %v528_v55  ;;  %v5081_v59 = vpop.f32.mrb[4].mxu0 }
  0xe6   :  { %v362_v60 = vadd.f32 %v5081_v59, %v5739_v42  ;;  %923 = vrot.lane.b32.xlu1 %v5753_v57, %s5534_s0  ;;  %v353_v61 = vpop.f32.mrb[5].mxu0  ;;  %v839_v62 = vrot.slane %v5753_v57, 1  ;;  %v609_v4 = vshll.u32 %v5753_v57, 16 }
  0xe7   :  { %v354_v0 = vadd.f32 %v5739_v42, %v353_v61  ;;  %v5082_v1 = vpop.f32.mrb[6].mxu0  ;;  %v838_v2 = vrot.slane %v5755_v58, 1  ;;  %v604_v3 = vshll.u32 %v5755_v58, 16  ;;  %v602_v8 = vshrl.u32 %v5755_v58, 16 }
  0xe8   :  { %v534_v5 = vmax.f32 %v362_v60, 0.0  ;;  %v365_v6 = vadd.f32 %v5082_v1, %v5739_v42  ;;  %v356_v7 = vpop.f32.mrb[7].mxu0  ;;  %v611_v17 = vrot.slane %v609_v4, 1  ;;  %v613_v1 = vshrl.u32 %v5753_v57, 16 }
  0xe9   :  { %v532_v9 = vmax.f32 %v354_v0, 0.0  ;;  %v357_v10 = vadd.f32 %v5739_v42, %v356_v7  ;;  %v840_v11 = vsel %vm837_vm3, %v838_v2, %v839_v62  ;;  %v606_v12 = vrot.slane %v604_v3, 1 }
  0xea   :  { %v535_v13 = vmax.f32 %v365_v6, 0.0  ;;  %881 = vrot.lane.b32.xlu1 %v840_v11, %s5535_s22 }
  0xeb   :  { %v533_v15 = vmax.f32 %v357_v10, 0.0  ;;  %v607_v16 = vor.u32 %v606_v12, %v602_v8 }
  0xec   :  { %v5778_v18 = vpack.c.bf16 %v535_v13, %v534_v5  ;;  %v615_v5 = vor.u32 %v613_v1, %v611_v17 }
  0xed   :  { %v5780_v19 = vpack.c.bf16 %v533_v15, %v532_v9  ;;  %v5085_v20 = vpop.f32.mrb[8].mxu0  ;;  %v612_v21 = vsel %vm600_vm4, %v607_v16, %v611_v17 }
  0xee   :  { %v378_v22 = vadd.f32 %v5085_v20, %v5739_v42  ;;  %v369_v23 = vpop.f32.mrb[9].mxu0  ;;  %927 = vrot.lane.b32.xlu1 %v5778_v18, %s5534_s0  ;;  %773 = vrot.lane.b32.xlu0 %v612_v21, %s5536_s25  ;;  %v843_v38 = vrot.slane %v5778_v18, 1  ;;  %v625_v49 = vshll.u32 %v5778_v18, 16 }
  0xef   :  { %v370_v25 = vadd.f32 %v5739_v42, %v369_v23  ;;  %v5086_v26 = vpop.f32.mrb[10].mxu0  ;;  %v841_v33 = vrot.slane %v5780_v19, 1  ;;  %v617_v34 = vshll.u32 %v5780_v19, 16  ;;  %v621_v44 = vshrl.u32 %v5780_v19, 16 }
  0xf0   :  { %v538_v27 = vmax.f32 %v378_v22, 0.0  ;;  %v381_v28 = vadd.f32 %v5086_v26, %v5739_v42  ;;  %v372_v29 = vpop.f32.mrb[11].mxu0  ;;  %v627_v61 = vrot.slane %v625_v49, 1 }
  0xf1   :  { %v536_v31 = vmax.f32 %v370_v25, 0.0  ;;  %v373_v32 = vadd.f32 %v5739_v42, %v372_v29  ;;  %v842_v41 = vsel %vm837_vm3, %v839_v62, %v841_v33  ;;  %v619_v43 = vrot.slane %v617_v34, 1 }
  0xf2   :  { %v539_v35 = vmax.f32 %v381_v28, 0.0  ;;  %1018 = vrot.lane.b32.xlu1 %v5780_v19, %s5535_s22  ;;  %1020 = vrot.lane.b32.xlu0 %v5778_v18, %s5535_s22  ;;  %v5816_v55 = vsel %vm837_vm3, %v841_v33, %v843_v38 }
  0xf3   :  { %v537_v36 = vmax.f32 %v373_v32, 0.0  ;;  %8432 = vst [vmem:[#allocation2_spill] sm:$0xff] %v5816_v55  ;;  %v623_v56 = vor.u32 %v621_v44, %v619_v43  ;;  %v5837_v11 = vsel %vm600_vm4, %v615_v5, %v619_v43 }
  0xf4   :  { %v5800_v37 = vpack.c.bf16 %v539_v35, %v538_v27 }
  0xf5   :  { %v5803_v39 = vpack.c.bf16 %v537_v36, %v536_v31  ;;  %v5089_v40 = vpop.f32.mrb[12].mxu0  ;;  %v5826_v0 = vsel %vm600_vm4, %v623_v56, %v627_v61  ;;  %v629_v36 = vshrl.u32 %v5778_v18, 16 }
  0xf6   :  { %v394_v45 = vadd.f32 %v5089_v40, %v5739_v42  ;;  %925 = vrot.lane.b32.xlu1 %v5780_v19, %s5534_s0  ;;  %976 = vrot.lane.b32.xlu0 %v842_v41, %s5536_s25  ;;  %v385_v46 = vpop.f32.mrb[13].mxu0  ;;  %v847_v26 = vrot.slane %v5800_v37, 1 }
  0xf7   :  { %v386_v47 = vadd.f32 %v5739_v42, %v385_v46  ;;  %v5090_v48 = vpop.f32.mrb[14].mxu0  ;;  %v845_v17 = vrot.slane %v5803_v39, 1  ;;  %v633_v32 = vshll.u32 %v5803_v39, 16  ;;  %v637_v44 = vshrl.u32 %v5803_v39, 16 }
  0xf8   :  { %v542_v50 = vmax.f32 %v394_v45, 0.0  ;;  %v397_v51 = vadd.f32 %v5090_v48, %v5739_v42  ;;  %v388_v52 = vpop.f32.mrb[15].mxu0  ;;  %v631_v49 = vor.u32 %v629_v36, %v627_v61 }
  0xf9   :  { %v540_v53 = vmax.f32 %v386_v47, 0.0  ;;  %v389_v54 = vadd.f32 %v5739_v42, %v388_v52  ;;  %v5858_v31 = vsel %vm837_vm3, %v843_v38, %v845_v17  ;;  %v5872_v38 = vsel %vm837_vm3, %v845_v17, %v847_v26 }
  0xfa   :  { %v543_v59 = vmax.f32 %v397_v51, 0.0  ;;  %883 = vrot.lane.b32.xlu1 %v842_v41, %s5535_s22  ;;  %978 = vrot.lane.b32.xlu0 %v5816_v55, %s5536_s25  ;;  %8433 = vst [vmem:[#allocation3_spill] sm:$0xff] %v5858_v31  ;;  %8434 = vst [vmem:[#allocation4_spill] sm:$0xff] %v5872_v38  ;;  %v635_v43 = vrot.slane %v633_v32, 1 }
  0xfb   :  { %v541_v60 = vmax.f32 %v389_v54, 0.0 }
  0xfc   :  { %v5821_v62 = vpack.c.bf16 %v543_v59, %v542_v50  ;;  %v641_v50 = vshll.u32 %v5800_v37, 16  ;;  %v5886_v59 = vsel %vm600_vm4, %v631_v49, %v635_v43 }
  0xfd   :  { %v5823_v63 = vpack.c.bf16 %v541_v60, %v540_v53  ;;  %v5093_v2 = vpop.f32.mrb[16].mxu0  ;;  %v639_v60 = vor.u32 %v637_v44, %v635_v43 }
  0xfe   :  { %885 = vrot.lane.b32.xlu1 %v5816_v55, %s5535_s22  ;;  %1068 = vrot.lane.b32.xlu0 %v5826_v0, %s5534_s0  ;;  %v410_v3 = vadd.f32 %v5093_v2, %v5739_v42  ;;  %v401_v4 = vpop.f32.mrb[17].mxu0  ;;  %v851_v36 = vrot.slane %v5821_v62, 1 }
  0xff   :  { %v402_v6 = vadd.f32 %v5739_v42, %v401_v4  ;;  %v5094_v7 = vpop.f32.mrb[18].mxu0 }
 0x100   :  { %v546_v8 = vmax.f32 %v410_v3, 0.0  ;;  %v413_v9 = vadd.f32 %v5094_v7, %v5739_v42  ;;  %v404_v10 = vpop.f32.mrb[19].mxu0  ;;  %v643_v3 = vrot.slane %v641_v50, 1 }
 0x101   :  { %v544_v12 = vmax.f32 %v402_v6, 0.0  ;;  %v405_v13 = vadd.f32 %v5739_v42, %v404_v10 }
 0x102   :  { %775 = vrot.lane.b32.xlu1 %v5837_v11, %s5536_s25  ;;  %1024 = vrot.lane.b32.xlu0 %v5800_v37, %s5535_s22  ;;  %v547_v14 = vmax.f32 %v413_v9, 0.0  ;;  %v5896_v6 = vsel %vm600_vm4, %v639_v60, %v643_v3  ;;  %v653_v60 = vshrl.u32 %v5823_v63, 16 }
 0x103   :  { %v545_v15 = vmax.f32 %v405_v13, 0.0 }
 0x104   :  { %v5844_v16 = vpack.c.bf16 %v547_v14, %v546_v8 }
 0x105   :  { %v5847_v20 = vpack.c.bf16 %v545_v15, %v544_v12  ;;  %v5097_v21 = vpop.f32.mrb[20].mxu0 }
 0x106   :  { %777 = vrot.lane.b32.xlu1 %v5826_v0, %s5536_s25  ;;  %1022 = vrot.lane.b32.xlu0 %v5803_v39, %s5535_s22  ;;  %v426_v22 = vadd.f32 %v5097_v21, %v5739_v42  ;;  %v417_v23 = vpop.f32.mrb[21].mxu0 }
 0x107   :  { %v418_v24 = vadd.f32 %v5739_v42, %v417_v23  ;;  %v5098_v25 = vpop.f32.mrb[22].mxu0 }
 0x108   :  { %v550_v27 = vmax.f32 %v426_v22, 0.0  ;;  %v429_v28 = vadd.f32 %v5098_v25, %v5739_v42  ;;  %v420_v29 = vpop.f32.mrb[23].mxu0 }
 0x109   :  { %v548_v33 = vmax.f32 %v418_v24, 0.0  ;;  %v421_v34 = vadd.f32 %v5739_v42, %v420_v29 }
 0x10a   :  { %931 = vrot.lane.b32.xlu1 %v5800_v37, %s5534_s0  ;;  %980 = vrot.lane.b32.xlu0 %v5858_v31, %s5536_s25  ;;  %v551_v35 = vmax.f32 %v429_v28, 0.0 }
 0x10b   :  { %v549_v40 = vmax.f32 %v421_v34, 0.0 }
 0x10c   :  { %v5867_v41 = vpack.c.bf16 %v551_v35, %v550_v27  ;;  %v849_v27 = vrot.slane %v5823_v63, 1 }
 0x10d   :  { %v5875_v45 = vpack.c.bf16 %v549_v40, %v548_v33  ;;  %v5101_v46 = vpop.f32.mrb[24].mxu0  ;;  %v645_v40 = vshrl.u32 %v5800_v37, 16 }
 0x10e   :  { %929 = vrot.lane.b32.xlu1 %v5803_v39, %s5534_s0  ;;  %982 = vrot.lane.b32.xlu0 %v5872_v38, %s5536_s25  ;;  %v442_v47 = vadd.f32 %v5101_v46, %v5739_v42  ;;  %v433_v48 = vpop.f32.mrb[25].mxu0 }
 0x10f   :  { %v434_v51 = vadd.f32 %v5739_v42, %v433_v48  ;;  %v5102_v52 = vpop.f32.mrb[26].mxu0  ;;  %v649_v48 = vshll.u32 %v5823_v63, 16 }
 0x110   :  { %v554_v53 = vmax.f32 %v442_v47, 0.0  ;;  %v445_v54 = vadd.f32 %v5102_v52, %v5739_v42  ;;  %v436_v56 = vpop.f32.mrb[27].mxu0  ;;  %v5929_v47 = vsel %vm837_vm3, %v847_v26, %v849_v27  ;;  %v5942_v26 = vsel %vm837_vm3, %v849_v27, %v851_v36 }
 0x111   :  { %v552_v1 = vmax.f32 %v434_v51, 0.0  ;;  %v437_v2 = vadd.f32 %v5739_v42, %v436_v56  ;;  %8437 = vst [vmem:[#allocation7_spill] sm:$0xff] %v5929_v47  ;;  %8438 = vst [vmem:[#allocation8_spill] sm:$0xff] %v5942_v26  ;;  %v651_v56 = vrot.slane %v649_v48, 1 }
 0x112   :  { %887 = vrot.lane.b32.xlu1 %v5858_v31, %s5535_s22  ;;  %1070 = vrot.lane.b32.xlu0 %v5886_v59, %s5534_s0  ;;  %v555_v61 = vmax.f32 %v445_v54, 0.0 }
 0x113   :  { %v553_v4 = vmax.f32 %v437_v2, 0.0 }
 0x114   :  { %v5893_v5 = vpack.c.bf16 %v555_v61, %v554_v53  ;;  %v647_v53 = vor.u32 %v645_v40, %v643_v3 }
 0x115   :  { %v5898_v7 = vpack.c.bf16 %v553_v4, %v552_v1  ;;  %v5105_v8 = vpop.f32.mrb[28].mxu0  ;;  %v657_v4 = vshll.u32 %v5821_v62, 16 }
 0x116   :  { %8435 = vst [vmem:[#allocation5_spill] sm:$0xff] %v5893_v5  ;;  %889 = vrot.lane.b32.xlu1 %v5872_v38, %s5535_s22  ;;  %1072 = vrot.lane.b32.xlu0 %v5896_v6, %s5534_s0  ;;  %v458_v9 = vadd.f32 %v5105_v8, %v5739_v42  ;;  %v449_v10 = vpop.f32.mrb[29].mxu0 }
 0x117   :  { %8436 = vst [vmem:[#allocation6_spill] sm:$0xff] %v5898_v7  ;;  %v450_v12 = vadd.f32 %v5739_v42, %v449_v10  ;;  %v5106_v13 = vpop.f32.mrb[30].mxu0  ;;  %v697_v30 = vshll.u32 %v5898_v7, 16 }
 0x118   :  { %v558_v14 = vmax.f32 %v458_v9, 0.0  ;;  %v461_v15 = vadd.f32 %v5106_v13, %v5739_v42  ;;  %v452_v17 = vpop.f32.mrb[31].mxu0 }
 0x119   :  { %v556_v21 = vmax.f32 %v450_v12, 0.0  ;;  %v453_v22 = vadd.f32 %v5739_v42, %v452_v17 }
 0x11a   :  { %779 = vrot.lane.b32.xlu1 %v5886_v59, %s5536_s25  ;;  %1028 = vrot.lane.b32.xlu0 %v5821_v62, %s5535_s22  ;;  %v559_v23 = vmax.f32 %v461_v15, 0.0  ;;  %v655_v15 = vor.u32 %v653_v60, %v651_v56 }
 0x11b   :  { %v557_v24 = vmax.f32 %v453_v22, 0.0 }
 0x11c   :  { %v5912_v25 = vpack.c.bf16 %v559_v23, %v558_v14  ;;  %v5956_v14 = vsel %vm600_vm4, %v647_v53, %v651_v56  ;;  %v659_v23 = vrot.slane %v657_v4, 1  ;;  %v853_v56 = vrot.slane %v5847_v20, 1 }
 0x11d   :  { %v5915_v28 = vpack.c.bf16 %v557_v24, %v556_v21  ;;  %v5109_v29 = vpop.f32.mrb[32].mxu0  ;;  %v661_v4 = vshrl.u32 %v5821_v62, 16 }
 0x11e   :  { %781 = vrot.lane.b32.xlu1 %v5896_v6, %s5536_s25  ;;  %1026 = vrot.lane.b32.xlu0 %v5823_v63, %s5535_s22  ;;  %v474_v32 = vadd.f32 %v5109_v29, %v5739_v42  ;;  %v465_v33 = vpop.f32.mrb[33].mxu0  ;;  %v5966_v29 = vsel %vm600_vm4, %v655_v15, %v659_v23 }
 0x11f   :  { %v466_v34 = vadd.f32 %v5739_v42, %v465_v33  ;;  %v5110_v35 = vpop.f32.mrb[34].mxu0 }
 0x120   :  { %v562_v43 = vmax.f32 %v474_v32, 0.0  ;;  %v477_v44 = vadd.f32 %v5110_v35, %v5739_v42  ;;  %v468_v46 = vpop.f32.mrb[35].mxu0 }
 0x121   :  { %v560_v49 = vmax.f32 %v466_v34, 0.0  ;;  %v469_v50 = vadd.f32 %v5739_v42, %v468_v46 }
 0x122   :  { %935 = vrot.lane.b32.xlu1 %v5821_v62, %s5534_s0  ;;  %984 = vrot.lane.b32.xlu0 %v5929_v47, %s5536_s25  ;;  %v563_v51 = vmax.f32 %v477_v44, 0.0 }
 0x123   :  { %v561_v52 = vmax.f32 %v469_v50, 0.0 }
 0x124   :  { %v5937_v54 = vpack.c.bf16 %v563_v51, %v562_v43 }
 0x125   :  { %v5945_v1 = vpack.c.bf16 %v561_v52, %v560_v49  ;;  %v5113_v2 = vpop.f32.mrb[36].mxu0 }
 0x126   :  { %933 = vrot.lane.b32.xlu1 %v5823_v63, %s5534_s0  ;;  %986 = vrot.lane.b32.xlu0 %v5942_v26, %s5536_s25  ;;  %v490_v61 = vadd.f32 %v5113_v2, %v5739_v42  ;;  %v481_v3 = vpop.f32.mrb[37].mxu0 }
 0x127   :  { %v482_v8 = vadd.f32 %v5739_v42, %v481_v3  ;;  %v5114_v9 = vpop.f32.mrb[38].mxu0 }
 0x128   :  { %v566_v10 = vmax.f32 %v490_v61, 0.0  ;;  %v493_v12 = vadd.f32 %v5114_v9, %v5739_v42  ;;  %v484_v13 = vpop.f32.mrb[39].mxu0 }
 0x129   :  { %v564_v17 = vmax.f32 %v482_v8, 0.0  ;;  %v485_v21 = vadd.f32 %v5739_v42, %v484_v13 }
 0x12a   :  { %891 = vrot.lane.b32.xlu1 %v5929_v47, %s5535_s22  ;;  %1074 = vrot.lane.b32.xlu0 %v5956_v14, %s5534_s0  ;;  %v567_v22 = vmax.f32 %v493_v12, 0.0  ;;  %v713_v47 = vshll.u32 %v5915_v28, 16 }
 0x12b   :  { %v565_v24 = vmax.f32 %v485_v21, 0.0  ;;  %v855_v21 = vrot.slane %v5844_v16, 1 }
 0x12c   :  { %v5963_v27 = vpack.c.bf16 %v567_v22, %v566_v10  ;;  %v665_v10 = vshll.u32 %v5847_v20, 16 }
 0x12d   :  { %v5968_v32 = vpack.c.bf16 %v565_v24, %v564_v17  ;;  %v5117_v33 = vpop.f32.mrb[40].mxu0  ;;  %v5999_v17 = vsel %vm837_vm3, %v851_v36, %v853_v56 }
 0x12e   :  { %893 = vrot.lane.b32.xlu1 %v5942_v26, %s5535_s22  ;;  %1076 = vrot.lane.b32.xlu0 %v5966_v29, %s5534_s0  ;;  %v506_v34 = vadd.f32 %v5117_v33, %v5739_v42  ;;  %v497_v35 = vpop.f32.mrb[41].mxu0  ;;  %8439 = vst [vmem:[#allocation9_spill] sm:$0xff] %v5999_v17  ;;  %v8407_v33 = vmov 0.0  }
 0x12f   :  { %v498_v40 = vadd.f32 %v5739_v42, %v497_v35  ;;  %v5118_v43 = vpop.f32.mrb[42].mxu0  ;;  %5123 = vmatprep.subr.bf16.mxu1 %v8407_v33 }
 0x130   :  { %v570_v44 = vmax.f32 %v506_v34, 0.0  ;;  %v509_v46 = vadd.f32 %v5118_v43, %v5739_v42  ;;  %v500_v48 = vpop.f32.mrb[43].mxu0  ;;  %v667_v43 = vrot.slane %v665_v10, 1 }
 0x131   :  { %v568_v49 = vmax.f32 %v498_v40, 0.0  ;;  %v501_v50 = vadd.f32 %v5739_v42, %v500_v48  ;;  %v663_v40 = vor.u32 %v661_v4, %v659_v23 }
 0x132   :  { %783 = vrot.lane.b32.xlu1 %v5956_v14, %s5536_s25  ;;  %1032 = vrot.lane.b32.xlu0 %v5844_v16, %s5535_s22  ;;  %v571_v51 = vmax.f32 %v509_v46, 0.0  ;;  %v669_v46 = vshrl.u32 %v5847_v20, 16 }
 0x133   :  { %v569_v52 = vmax.f32 %v501_v50, 0.0  ;;  %v6021_v23 = vsel %vm600_vm4, %v663_v40, %v667_v43 }
 0x134   :  { %v5982_v53 = vpack.c.bf16 %v571_v51, %v570_v44  ;;  %v6009_v44 = vsel %vm837_vm3, %v853_v56, %v855_v21 }
 0x135   :  { %v5985_v60 = vpack.c.bf16 %v569_v52, %v568_v49  ;;  %v5121_v2 = vpop.f32.mrb[44].mxu0  ;;  %8440 = vst [vmem:[#allocation10_spill] sm:$0xff] %v6009_v44  ;;  %v673_v49 = vshll.u32 %v5844_v16, 16  ;;  %v671_v52 = vor.u32 %v669_v46, %v667_v43  ;;  %v685_v46 = vshrl.u32 %v5875_v45, 16 }
 0x136   :  { %785 = vrot.lane.b32.xlu1 %v5966_v29, %s5536_s25  ;;  %1030 = vrot.lane.b32.xlu0 %v5847_v20, %s5535_s22  ;;  %v522_v61 = vadd.f32 %v5121_v2, %v5739_v42  ;;  %v513_v3 = vpop.f32.mrb[45].mxu0  ;;  %v769_v48 = vshll.u32 %v5982_v53, 16  ;;  %v8406_v50 = vrot.slane %v5982_v53, 1  ;;  %v965_v2 = vshrl.u32 %v5982_v53, 16 }
 0x137   :  { %v514_v8 = vadd.f32 %v5739_v42, %v513_v3  ;;  %v5122_v9 = vpop.f32.mrb[46].mxu0  ;;  %v675_v3 = vrot.slane %v673_v49, 1 }
 0x138   :  { %v574_v12 = vmax.f32 %v522_v61, 0.0  ;;  %v525_v13 = vadd.f32 %v5122_v9, %v5739_v42  ;;  %v516_v15 = vpop.f32.mrb[47].mxu0  ;;  %v6024_v51 = vrot.slane %v769_v48, 1 }
 0x139   :  { %v572_v22 = vmax.f32 %v514_v8, 0.0  ;;  %v517_v24 = vadd.f32 %v5739_v42, %v516_v15  ;;  %v6040_v10 = vsel %vm600_vm4, %v671_v52, %v675_v3  ;;  %v677_v15 = vshrl.u32 %v5844_v16, 16 }
 0x13a   :  { %939 = vrot.lane.b32.xlu1 %v5844_v16, %s5534_s0  ;;  %988 = vrot.lane.b32.xlu0 %v5999_v17, %s5536_s25  ;;  %v575_v34 = vmax.f32 %v525_v13, 0.0  ;;  %v967_v8 = vor.u32 %v965_v2, %v6024_v51  ;;  %v857_v13 = vrot.slane %v5875_v45, 1  ;;  %v689_v2 = vshll.u32 %v5867_v41, 16 }
 0x13b   :  { %v573_v35 = vmax.f32 %v517_v24, 0.0  ;;  %v859_v24 = vrot.slane %v5867_v41, 1  ;;  %v679_v43 = vor.u32 %v677_v15, %v675_v3 }
 0x13c   :  { %v599_v36 = vpack.c.bf16 %v575_v34, %v574_v12  ;;  %v681_v34 = vshll.u32 %v5875_v45, 16 }
 0x13d   :  { %v6012_v42 = vpack.c.bf16 %v573_v35, %v572_v22  ;;  %v6060_v22 = vsel %vm837_vm3, %v855_v21, %v857_v13  ;;  %v6070_v48 = vsel %vm837_vm3, %v857_v13, %v859_v24 }
 0x13e   :  { %937 = vrot.lane.b32.xlu1 %v5847_v20, %s5534_s0  ;;  %990 = vrot.lane.b32.xlu0 %v6009_v44, %s5536_s25  ;;  %8441 = vst [vmem:[#allocation11_spill] sm:$0xff] %v6060_v22  ;;  %v1064_v35 = vshll.u32 %v599_v36, 16  ;;  %v1111_v40 = vrot.slane %v599_v36, 1  ;;  %8442 = vst [vmem:[#allocation12_spill] sm:$0xff] %v6070_v48  ;;  %v683_v21 = vrot.slane %v681_v34, 1  ;;  %v691_v34 = vrot.slane %v689_v2, 1 }
 0x13f   :  { %v974_v56 = vrot.slane %v6012_v42, 1  ;;  %v969_v61 = vshll.u32 %v6012_v42, 16  ;;  %v1060_v52 = vshrl.u32 %v6012_v42, 16  ;;  %v693_v2 = vshrl.u32 %v5867_v41, 16 }
 0x140   :  { %v1066_v49 = vrot.slane %v1064_v35, 1  ;;  %v687_v13 = vor.u32 %v685_v46, %v683_v21 }
 0x141   :  { %v6036_v4 = vsel %vm837_vm3, %v8406_v50, %v974_v56  ;;  %v971_v9 = vrot.slane %v969_v61, 1  ;;  %v6079_v36 = vsel %vm837_vm3, %v974_v56, %v1111_v40 }
 0x142   :  { %895 = vrot.lane.b32.xlu1 %v5999_v17, %s5535_s22  ;;  %1078 = vrot.lane.b32.xlu0 %v6021_v23, %s5534_s0  ;;  %8443 = vst [vmem:[#allocation13_spill] sm:$0xff] %v6079_v36  ;;  %v695_v36 = vor.u32 %v693_v2, %v691_v34  ;;  %v699_v17 = vrot.slane %v697_v30, 1 }
 0x143   :  { %v6043_v12 = vsel %vm600_vm4, %v967_v8, %v971_v9  ;;  %v1062_v61 = vor.u32 %v1060_v52, %v971_v9  ;;  %v6082_v8 = vsel %vm600_vm4, %v679_v43, %v683_v21  ;;  %v6092_v9 = vsel %vm600_vm4, %v687_v13, %v691_v34 }
 0x144   :  { %v861_v21 = vrot.slane %v5898_v7, 1  ;;  %v863_v13 = vrot.slane %v5893_v5, 1  ;;  %v705_v34 = vshll.u32 %v5893_v5, 16 }
 0x145   :  { %v6085_v15 = vsel %vm600_vm4, %v1062_v61, %v1066_v49 }
 0x146   :  { %897 = vrot.lane.b32.xlu1 %v6009_v44, %s5535_s22  ;;  %1080 = vrot.lane.b32.xlu0 %v6040_v10, %s5534_s0  ;;  %v6115_v61 = vsel %vm837_vm3, %v859_v24, %v861_v21  ;;  %v6129_v44 = vsel %vm837_vm3, %v861_v21, %v863_v13 }
 0x147   :  { %8444 = vst [vmem:[#allocation14_spill] sm:$0xff] %v6115_v61  ;;  %8445 = vst [vmem:[#allocation15_spill] sm:$0xff] %v6129_v44 }
 0x14a   :  { %787 = vrot.lane.b32.xlu1 %v6021_v23, %s5536_s25  ;;  %1036 = vrot.lane.b32.xlu0 %v5867_v41, %s5535_s22 }
 0x14e   :  { %789 = vrot.lane.b32.xlu1 %v6040_v10, %s5536_s25  ;;  %1034 = vrot.lane.b32.xlu0 %v5875_v45, %s5535_s22 }
 0x152   :  { %943 = vrot.lane.b32.xlu1 %v5867_v41, %s5534_s0  ;;  %992 = vrot.lane.b32.xlu0 %v6060_v22, %s5536_s25 }
 0x156   :  { %941 = vrot.lane.b32.xlu1 %v5875_v45, %s5534_s0  ;;  %994 = vrot.lane.b32.xlu0 %v6070_v48, %s5536_s25 }
 0x158   :  { %v924_v3 = vpop.permute.xlu1 %923 }
 0x15a   :  { %899 = vrot.lane.b32.xlu1 %v6060_v22, %s5535_s22  ;;  %1082 = vrot.lane.b32.xlu0 %v6082_v8, %s5534_s0 }
 0x15c   :  { %v882_v35 = vpop.permute.xlu1 %881 }
 0x15e   :  { %901 = vrot.lane.b32.xlu1 %v6070_v48, %s5535_s22  ;;  %1084 = vrot.lane.b32.xlu0 %v6092_v9, %s5534_s0  ;;  %v701_v48 = vshrl.u32 %v5898_v7, 16 }
 0x160   :  { %v6098_v56 = vpop.permute.xlu1 %927  ;;  %v774_v40 = vpop.permute.xlu0 %773  ;;  %v703_v21 = vor.u32 %v701_v48, %v699_v17 }
 0x161   :  { %v1115_v24 = vsel %vm1113_vm5, %v5755_v58, %v774_v40  ;;  %v6141_v40 = vsel %vm600_vm4, %v695_v36, %v699_v17  ;;  %v8446_v17 = vmov 0.0  }
 0x162   :  { %791 = vrot.lane.b32.xlu1 %v6082_v8, %s5536_s25  ;;  %1040 = vrot.lane.b32.xlu0 %v5893_v5, %s5535_s22 }
 0x164   :  { %v1019_v43 = vpop.permute.xlu1 %1018  ;;  %v6104_v46 = vpop.permute.xlu0 %1020 }
 0x166   :  { %793 = vrot.lane.b32.xlu1 %v6092_v9, %s5536_s25  ;;  %1038 = vrot.lane.b32.xlu0 %v5898_v7, %s5535_s22 }
 0x168   :  { %v6111_v49 = vpop.permute.xlu1 %925  ;;  %v977_v52 = vpop.permute.xlu0 %976 }
 0x169   :  { %v1265_v22 = vsel %vm1113_vm5, %v5837_v11, %v977_v52  ;;  %v1158_v11 = vsel %vm1156_vm6, %v1115_v24, %v882_v35  ;;  %v5494_v52 = vld [vmem:[%s8396_s3 + $0x80] sm:$0xff]   ;;  %v707_v35 = vrot.slane %v705_v34, 1 }
 0x16a   :  { %947 = vrot.lane.b32.xlu1 %v5893_v5, %s5534_s0  ;;  %996 = vrot.lane.b32.xlu0 %v6115_v61, %s5536_s25  ;;  %v1327_v58 = vsel %vm1156_vm6, %v1265_v22, %v1019_v43  ;;  %v1201_v22 = vsel %vm1199_vm7, %v1158_v11, %v924_v3 }
 0x16c   :  { %v884_v50 = vpop.permute.xlu1 %883  ;;  %v979_v33 = vpop.permute.xlu0 %978 }
 0x16e   :  { %945 = vrot.lane.b32.xlu1 %v5898_v7, %s5534_s0  ;;  %998 = vrot.lane.b32.xlu0 %v6129_v44, %s5536_s25  ;;  %v715_v7 = vrot.slane %v713_v47, 1 }
 0x170   :  { %v6136_v2 = vpop.permute.xlu1 %885  ;;  %v1069_v26 = vpop.permute.xlu0 %1068 }
 0x171   :  { %v1369_v30 = vsel %vm1199_vm7, %v1327_v58, %v1069_v26  ;;  %v6155_v26 = vsel %vm600_vm4, %v703_v21, %v707_v35  ;;  %v865_v58 = vrot.slane %v5915_v28, 1  ;;  %v867_v21 = vrot.slane %v5912_v25, 1 }
 0x172   :  { %903 = vrot.lane.b32.xlu1 %v6115_v61, %s5535_s22  ;;  %1086 = vrot.lane.b32.xlu0 %v6141_v40, %s5534_s0 }
 0x173   :  { %1677 = vmatprep.mubr.bf16.mxu1 %v1369_v30  ;;  %v6182_v61 = vsel %vm837_vm3, %v863_v13, %v865_v58 }
 0x174   :  { %1678 = vmatmul.mubr.bf16.vlgmr.msra.gmra.mrb[0].mxu1 %v1201_v22  ;;  %v776_v36 = vpop.permute.xlu1 %775  ;;  %v6152_v43 = vpop.permute.xlu0 %1024  ;;  %v1268_v22 = vsel %vm1113_vm5, %v5826_v0, %v979_v33 }
 0x175   :  { %5124 = vmatpush3.bf16.msra.mxu1 %v5494_v52  ;;  %v709_v52 = vshrl.u32 %v5893_v5, 16  ;;  %v1329_v55 = vsel %vm1156_vm6, %v1268_v22, %v6104_v46 }
 0x176   :  { %905 = vrot.lane.b32.xlu1 %v6129_v44, %s5535_s22  ;;  %1088 = vrot.lane.b32.xlu0 %v6155_v26, %s5534_s0  ;;  %v1117_v44 = vsel %vm1113_vm5, %v5753_v57, %v776_v36  ;;  %v717_v57 = vshrl.u32 %v5915_v28, 16  ;;  %v6196_v36 = vsel %vm837_vm3, %v865_v58, %v867_v21 }
 0x177   :  { %5125 = vmatprep.subr.bf16.mxu1 %v8446_v17  ;;  %v1160_v0 = vsel %vm1156_vm6, %v1117_v44, %v884_v50  ;;  %v711_v33 = vor.u32 %v709_v52, %v707_v35  ;;  %v721_v50 = vshll.u32 %v5912_v25, 16 }
 0x178   :  { %v778_v48 = vpop.permute.xlu1 %777  ;;  %v1023_v24 = vpop.permute.xlu0 %1022  ;;  %v1204_v44 = vsel %vm1199_vm7, %v1160_v0, %v6111_v49 }
 0x179   :  { %v723_v49 = vrot.slane %v721_v50, 1 }
 0x17a   :  { %795 = vrot.lane.b32.xlu1 %v6141_v40, %s5536_s25  ;;  %1044 = vrot.lane.b32.xlu0 %v5912_v25, %s5535_s22 }
 0x17c   :  { %v6166_v3 = vpop.permute.xlu1 %931  ;;  %v981_v34 = vpop.permute.xlu0 %980 }
 0x17d   :  { %v1271_v13 = vsel %vm1113_vm5, %v5886_v59, %v981_v34 }
 0x17e   :  { %797 = vrot.lane.b32.xlu1 %v6155_v26, %s5536_s25  ;;  %1042 = vrot.lane.b32.xlu0 %v5915_v28, %s5535_s22  ;;  %v1331_v35 = vsel %vm1156_vm6, %v1271_v13, %v1023_v24  ;;  %v871_v13 = vrot.slane %v5937_v54, 1 }
 0x180   :  { %v6173_v11 = vpop.permute.xlu1 %929  ;;  %v983_v30 = vpop.permute.xlu0 %982 }
 0x181   :  { %v1274_v50 = vsel %vm1113_vm5, %v5896_v6, %v983_v30 }
 0x182   :  { %951 = vrot.lane.b32.xlu1 %v5912_v25, %s5534_s0  ;;  %1000 = vrot.lane.b32.xlu0 %v6182_v61, %s5536_s25 }
 0x184   :  { %v888_v38 = vpop.permute.xlu1 %887  ;;  %v1071_v31 = vpop.permute.xlu0 %1070 }
 0x185   :  { %v1372_v5 = vsel %vm1199_vm7, %v1329_v55, %v1071_v31  ;;  %v1119_v55 = vsel %vm1113_vm5, %v5780_v19, %v778_v48  ;;  %v6212_v31 = vsel %vm600_vm4, %v711_v33, %v715_v7  ;;  %v869_v33 = vrot.slane %v5945_v1, 1 }
 0x186   :  { %949 = vrot.lane.b32.xlu1 %v5915_v28, %s5534_s0  ;;  %1002 = vrot.lane.b32.xlu0 %v6196_v36, %s5536_s25  ;;  %v1162_v19 = vsel %vm1156_vm6, %v1119_v55, %v6136_v2  ;;  %v729_v55 = vshll.u32 %v5945_v1, 16 }
 0x187   :  { %1685 = vmatprep.mubr.bf16.mxu1 %v1372_v5  ;;  %v719_v5 = vor.u32 %v717_v57, %v715_v7  ;;  %v5495_v7 = vld [vmem:[%s8396_s3 + $0x88] sm:$0xff]   ;;  %v1207_v24 = vsel %vm1199_vm7, %v1162_v19, %v6098_v56  ;;  %v1333_v19 = vsel %vm1156_vm6, %v1274_v50, %v6152_v43  ;;  %v737_v43 = vshll.u32 %v5937_v54, 16 }
 0x188   :  { %1686 = vmatmul.mubr.bf16.gmra.mrb[4].mxu1 %v1204_v44  ;;  %v6206_v59 = vpop.permute.xlu1 %889  ;;  %v1073_v46 = vpop.permute.xlu0 %1072  ;;  %v725_v44 = vshrl.u32 %v5912_v25, 16 }
 0x189   :  { %v1375_v47 = vsel %vm1199_vm7, %v1331_v35, %v1073_v46  ;;  %v6224_v48 = vsel %vm600_vm4, %v719_v5, %v723_v49  ;;  %5126 = vmatpush3.bf16.msra.mxu1 %v5495_v7  ;;  %v6256_v35 = vsel %vm837_vm3, %v867_v21, %v869_v33 }
 0x18a   :  { %907 = vrot.lane.b32.xlu1 %v6182_v61, %s5535_s22  ;;  %1090 = vrot.lane.b32.xlu0 %v6212_v31, %s5534_s0  ;;  %v727_v30 = vor.u32 %v725_v44, %v723_v49 }
 0x18b   :  { %1693 = vmatprep.mubr.bf16.mxu1 %v1375_v47  ;;  %5315 = vmatprep.subr.bf16.mxu1 %v8446_v17 }
 0x18c   :  { %v780_v34 = vpop.permute.xlu1 %779  ;;  %v6219_v58 = vpop.permute.xlu0 %1028 }
 0x18d   :  { %v1121_v46 = vsel %vm1113_vm5, %v5778_v18, %v780_v34  ;;  %v733_v18 = vshrl.u32 %v5945_v1, 16  ;;  %v6270_v34 = vsel %vm837_vm3, %v869_v33, %v871_v13 }
 0x18e   :  { %909 = vrot.lane.b32.xlu1 %v6196_v36, %s5535_s22  ;;  %1092 = vrot.lane.b32.xlu0 %v6224_v48, %s5534_s0  ;;  %v1164_v6 = vsel %vm1156_vm6, %v1121_v46, %v888_v38 }
 0x18f   :  { %v1210_v38 = vsel %vm1199_vm7, %v1164_v6, %v6173_v11  ;;  %v739_v11 = vrot.slane %v737_v43, 1 }
 0x190   :  { %1694 = vmatmul.mubr.bf16.gmra.mrb[8].mxu1 %v1207_v24  ;;  %v782_v52 = vpop.permute.xlu1 %781  ;;  %v1027_v2 = vpop.permute.xlu0 %1026  ;;  %v731_v24 = vrot.slane %v729_v55, 1 }
 0x191   :  { %v1123_v33 = vsel %vm1113_vm5, %v5803_v39, %v782_v52 }
 0x192   :  { %799 = vrot.lane.b32.xlu1 %v6212_v31, %s5536_s25  ;;  %1048 = vrot.lane.b32.xlu0 %v5937_v54, %s5535_s22  ;;  %v6286_v44 = vsel %vm600_vm4, %v727_v30, %v731_v24  ;;  %v735_v46 = vor.u32 %v733_v18, %v731_v24  ;;  %v1166_v39 = vsel %vm1156_vm6, %v1123_v33, %v6206_v59  ;;  %v873_v18 = vrot.slane %v5968_v32, 1 }
 0x193   :  { %v741_v24 = vshrl.u32 %v5937_v54, 16 }
 0x194   :  { %v6240_v22 = vpop.permute.xlu1 %935  ;;  %v985_v0 = vpop.permute.xlu0 %984  ;;  %v6298_v52 = vsel %vm600_vm4, %v735_v46, %v739_v11 }
 0x195   :  { %v1277_v21 = vsel %vm1113_vm5, %v5956_v14, %v985_v0 }
 0x196   :  { %801 = vrot.lane.b32.xlu1 %v6224_v48, %s5536_s25  ;;  %1046 = vrot.lane.b32.xlu0 %v5945_v1, %s5535_s22  ;;  %v1335_v0 = vsel %vm1156_vm6, %v1277_v21, %v1027_v2  ;;  %v1213_v2 = vsel %vm1199_vm7, %v1166_v39, %v6166_v3 }
 0x198   :  { %v6247_v56 = vpop.permute.xlu1 %933  ;;  %v987_v57 = vpop.permute.xlu0 %986 }
 0x19a   :  { %955 = vrot.lane.b32.xlu1 %v5937_v54, %s5534_s0  ;;  %1004 = vrot.lane.b32.xlu0 %v6256_v35, %s5536_s25 }
 0x19c   :  { %v892_v47 = vpop.permute.xlu1 %891  ;;  %v1075_v5 = vpop.permute.xlu0 %1074 }
 0x19d   :  { %v1378_v7 = vsel %vm1199_vm7, %v1333_v19, %v1075_v5 }
 0x19e   :  { %953 = vrot.lane.b32.xlu1 %v5945_v1, %s5534_s0  ;;  %1006 = vrot.lane.b32.xlu0 %v6270_v34, %s5536_s25 }
 0x19f   :  { %1701 = vmatprep.mubr.bf16.mxu1 %v1378_v7  ;;  %v875_v7 = vrot.slane %v5963_v27, 1 }
 0x1a0   :  { %1702 = vmatmul.mubr.bf16.gmra.mrb[12].mxu1 %v1210_v38  ;;  %v6280_v14 = vpop.permute.xlu1 %893  ;;  %v1077_v49 = vpop.permute.xlu0 %1076  ;;  %v1280_v38 = vsel %vm1113_vm5, %v5966_v29, %v987_v57  ;;  %v743_v57 = vor.u32 %v741_v24, %v739_v11 }
 0x1a1   :  { %v1381_v50 = vsel %vm1199_vm7, %v1335_v0, %v1077_v49  ;;  %v6326_v49 = vsel %vm837_vm3, %v871_v13, %v873_v18  ;;  %v745_v0 = vshll.u32 %v5968_v32, 16  ;;  %v1337_v46 = vsel %vm1156_vm6, %v1280_v38, %v6219_v58 }
 0x1a2   :  { %911 = vrot.lane.b32.xlu1 %v6256_v35, %s5535_s22  ;;  %1094 = vrot.lane.b32.xlu0 %v6286_v44, %s5534_s0 }
 0x1a3   :  { %1709 = vmatprep.mubr.bf16.mxu1 %v1381_v50 }
 0x1a4   :  { %v784_v55 = vpop.permute.xlu1 %783  ;;  %v6293_v5 = vpop.permute.xlu0 %1032 }
 0x1a5   :  { %v1125_v43 = vsel %vm1113_vm5, %v5800_v37, %v784_v55  ;;  %v749_v37 = vshrl.u32 %v5968_v32, 16  ;;  %v6340_v55 = vsel %vm837_vm3, %v873_v18, %v875_v7 }
 0x1a6   :  { %913 = vrot.lane.b32.xlu1 %v6270_v34, %s5535_s22  ;;  %1096 = vrot.lane.b32.xlu0 %v6298_v52, %s5534_s0  ;;  %v1168_v29 = vsel %vm1156_vm6, %v1125_v43, %v892_v47  ;;  %v753_v47 = vshll.u32 %v5963_v27, 16 }
 0x1a7   :  { %v1216_v58 = vsel %vm1199_vm7, %v1168_v29, %v6247_v56 }
 0x1a8   :  { %1710 = vmatmul.mubr.bf16.gmra.mrb[16].mxu1 %v1213_v2  ;;  %v786_v19 = vpop.permute.xlu1 %785  ;;  %v1031_v6 = vpop.permute.xlu0 %1030  ;;  %v747_v2 = vrot.slane %v745_v0, 1  ;;  %v755_v56 = vrot.slane %v753_v47, 1 }
 0x1a9   :  { %v1127_v18 = vsel %vm1113_vm5, %v5823_v63, %v786_v19 }
 0x1aa   :  { %803 = vrot.lane.b32.xlu1 %v6286_v44, %s5536_s25  ;;  %1052 = vrot.lane.b32.xlu0 %v5963_v27, %s5535_s22  ;;  %v6356_v24 = vsel %vm600_vm4, %v743_v57, %v747_v2  ;;  %v751_v43 = vor.u32 %v749_v37, %v747_v2  ;;  %v1170_v63 = vsel %vm1156_vm6, %v1127_v18, %v6280_v14  ;;  %v877_v57 = vrot.slane %v5985_v60, 1 }
 0x1ac   :  { %v6310_v59 = vpop.permute.xlu1 %939  ;;  %v989_v30 = vpop.permute.xlu0 %988  ;;  %v6368_v19 = vsel %vm600_vm4, %v751_v43, %v755_v56 }
 0x1ad   :  { %v1283_v13 = vsel %vm1113_vm5, %v6021_v23, %v989_v30 }
 0x1ae   :  { %805 = vrot.lane.b32.xlu1 %v6298_v52, %s5536_s25  ;;  %1050 = vrot.lane.b32.xlu0 %v5968_v32, %s5535_s22  ;;  %v1339_v30 = vsel %vm1156_vm6, %v1283_v13, %v1031_v6  ;;  %v1219_v6 = vsel %vm1199_vm7, %v1170_v63, %v6240_v22  ;;  %v757_v13 = vshrl.u32 %v5963_v27, 16  ;;  %v761_v22 = vshll.u32 %v5985_v60, 16 }
 0x1b0   :  { %v6317_v3 = vpop.permute.xlu1 %937  ;;  %v991_v21 = vpop.permute.xlu0 %990  ;;  %v759_v47 = vor.u32 %v757_v13, %v755_v56 }
 0x1b2   :  { %959 = vrot.lane.b32.xlu1 %v5963_v27, %s5534_s0  ;;  %1008 = vrot.lane.b32.xlu0 %v6326_v49, %s5536_s25 }
 0x1b4   :  { %v896_v33 = vpop.permute.xlu1 %895  ;;  %v1079_v50 = vpop.permute.xlu0 %1078 }
 0x1b5   :  { %v1384_v39 = vsel %vm1199_vm7, %v1337_v46, %v1079_v50 }
 0x1b6   :  { %957 = vrot.lane.b32.xlu1 %v5968_v32, %s5534_s0  ;;  %1010 = vrot.lane.b32.xlu0 %v6340_v55, %s5536_s25 }
 0x1b7   :  { %1717 = vmatprep.mubr.bf16.mxu1 %v1384_v39  ;;  %v6385_v39 = vsel %vm837_vm3, %v875_v7, %v877_v57  ;;  %v8447_v7 = vrot.slane %v5982_v53, 1 }
 0x1b8   :  { %1718 = vmatmul.mubr.bf16.gmra.mrb[20].mxu1 %v1216_v58  ;;  %v6350_v23 = vpop.permute.xlu1 %897  ;;  %v1081_v11 = vpop.permute.xlu0 %1080 }
 0x1b9   :  { %v1387_v38 = vsel %vm1199_vm7, %v1339_v30, %v1081_v11  ;;  %v1286_v11 = vsel %vm1113_vm5, %v6040_v10, %v991_v21  ;;  %v6399_v18 = vsel %vm837_vm3, %v877_v57, %v8447_v7 }
 0x1ba   :  { %915 = vrot.lane.b32.xlu1 %v6326_v49, %s5535_s22  ;;  %1098 = vrot.lane.b32.xlu0 %v6356_v24, %s5534_s0  ;;  %v1341_v10 = vsel %vm1156_vm6, %v1286_v11, %v6293_v5 }
 0x1bb   :  { %1725 = vmatprep.mubr.bf16.mxu1 %v1387_v38  ;;  %v763_v38 = vrot.slane %v761_v22, 1 }
 0x1bc   :  { %v788_v0 = vpop.permute.xlu1 %787  ;;  %v6363_v50 = vpop.permute.xlu0 %1036 }
 0x1bd   :  { %v1129_v30 = vsel %vm1113_vm5, %v5821_v62, %v788_v0  ;;  %v6411_v0 = vsel %vm600_vm4, %v759_v47, %v763_v38 }
 0x1be   :  { %917 = vrot.lane.b32.xlu1 %v6340_v55, %s5535_s22  ;;  %1100 = vrot.lane.b32.xlu0 %v6368_v19, %s5534_s0  ;;  %v1172_v21 = vsel %vm1156_vm6, %v1129_v30, %v896_v33 }
 0x1bf   :  { %v1222_v5 = vsel %vm1199_vm7, %v1172_v21, %v6317_v3 }
 0x1c0   :  { %1726 = vmatmul.mubr.bf16.gmra.mrb[24].mxu1 %v1219_v6  ;;  %v790_v46 = vpop.permute.xlu1 %789  ;;  %v1035_v29 = vpop.permute.xlu0 %1034  ;;  %v765_v6 = vshrl.u32 %v5985_v60, 16 }
 0x1c2   :  { %807 = vrot.lane.b32.xlu1 %v6356_v24, %s5536_s25  ;;  %1054 = vrot.lane.b32.xlu0 %v5985_v60, %s5535_s22  ;;  %v767_v22 = vor.u32 %v765_v6, %v763_v38 }
 0x1c4   :  { %v6381_v14 = vpop.permute.xlu1 %943  ;;  %v993_v37 = vpop.permute.xlu0 %992 }
 0x1c5   :  { %v1289_v62 = vsel %vm1113_vm5, %v6082_v8, %v993_v37  ;;  %v1131_v37 = vsel %vm1113_vm5, %v5847_v20, %v790_v46 }
 0x1c6   :  { %809 = vrot.lane.b32.xlu1 %v6368_v19, %s5536_s25  ;;  %1012 = vrot.lane.b32.xlu0 %v6385_v39, %s5536_s25  ;;  %v1343_v57 = vsel %vm1156_vm6, %v1289_v62, %v1035_v29  ;;  %v1174_v11 = vsel %vm1156_vm6, %v1131_v37, %v6350_v23  ;;  %v6433_v29 = vsel %vm600_vm4, %v767_v22, %v6024_v51 }
 0x1c7   :  { %v1225_v20 = vsel %vm1199_vm7, %v1174_v11, %v6310_v59 }
 0x1c8   :  { %v942_v2 = vpop.permute.xlu1 %941  ;;  %v995_v58 = vpop.permute.xlu0 %994 }
 0x1ca   :  { %919 = vrot.lane.b32.xlu1 %v6385_v39, %s5535_s22  ;;  %1014 = vrot.lane.b32.xlu0 %v6399_v18, %s5536_s25 }
 0x1cc   :  { %v900_v43 = vpop.permute.xlu1 %899  ;;  %v1083_v56 = vpop.permute.xlu0 %1082 }
 0x1cd   :  { %v1390_v63 = vsel %vm1199_vm7, %v1341_v10, %v1083_v56  ;;  %v1292_v56 = vsel %vm1113_vm5, %v6092_v9, %v995_v58 }
 0x1ce   :  { %961 = vrot.lane.b32.xlu1 %v5985_v60, %s5534_s0  ;;  %1102 = vrot.lane.b32.xlu0 %v6411_v0, %s5534_s0 }
 0x1cf   :  { %1733 = vmatprep.mubr.bf16.mxu1 %v1390_v63 }
 0x1d0   :  { %1734 = vmatmul.mubr.bf16.gmra.mrb[28].mxu1 %v1222_v5  ;;  %v902_v33 = vpop.permute.xlu1 %901  ;;  %v1085_v8 = vpop.permute.xlu0 %1084 }
 0x1d1   :  { %v1393_v13 = vsel %vm1199_vm7, %v1343_v57, %v1085_v8 }
 0x1d2   :  { %811 = vrot.lane.b32.xlu1 %v6411_v0, %s5536_s25  ;;  %1056 = vrot.lane.b32.xlu0 %v5982_v53, %s5535_s22 }
 0x1d3   :  { %1741 = vmatprep.mubr.bf16.mxu1 %v1393_v13 }
 0x1d4   :  { %v792_v47 = vpop.permute.xlu1 %791  ;;  %v1041_v3 = vpop.permute.xlu0 %1040 }
 0x1d5   :  { %v1133_v59 = vsel %vm1113_vm5, %v5844_v16, %v792_v47 }
 0x1d6   :  { %813 = vrot.lane.b32.xlu1 %v6433_v29, %s5536_s25  ;;  %1104 = vrot.lane.b32.xlu0 %v6433_v29, %s5534_s0  ;;  %v1176_v10 = vsel %vm1156_vm6, %v1133_v59, %v900_v43 }
 0x1d7   :  { %v1228_v9 = vsel %vm1199_vm7, %v1176_v10, %v942_v2 }
 0x1d8   :  { %1742 = vmatmul.mubr.bf16.gmra.mrb[32].mxu1 %v1225_v20  ;;  %v794_v46 = vpop.permute.xlu1 %793  ;;  %v1039_v30 = vpop.permute.xlu0 %1038 }
 0x1da   :  { %921 = vrot.lane.b32.xlu1 %v6399_v18, %s5535_s22  ;;  %1016 = vrot.lane.b32.xlu0 %v6036_v4, %s5536_s25 }
 0x1dc   :  { %v948_v51 = vpop.permute.xlu1 %947  ;;  %v997_v23 = vpop.permute.xlu0 %996 }
 0x1dd   :  { %v1295_v63 = vsel %vm1113_vm5, %v6141_v40, %v997_v23 }
 0x1de   :  { %963 = vrot.lane.b32.xlu1 %v5982_v53, %s5534_s0  ;;  %1106 = vrot.lane.b32.xlu0 %v6043_v12, %s5534_s0  ;;  %v1345_v53 = vsel %vm1156_vm6, %v1292_v56, %v6363_v50  ;;  %v1347_v6 = vsel %vm1156_vm6, %v1295_v63, %v1039_v30 }
 0x1e0   :  { %v946_v7 = vpop.permute.xlu1 %945  ;;  %v999_v38 = vpop.permute.xlu0 %998 }
 0x1e1   :  { %v1298_v11 = vsel %vm1113_vm5, %v6155_v26, %v999_v38 }
 0x1e2   :  { %1058 = vrot.lane.b32.xlu0 %v6012_v42, %s5535_s22  ;;  %v1135_v42 = vsel %vm1113_vm5, %v5875_v45, %v794_v46  ;;  %v1349_v30 = vsel %vm1156_vm6, %v1298_v11, %v1041_v3 }
 0x1e3   :  { %v1178_v40 = vsel %vm1156_vm6, %v1135_v42, %v902_v33  ;;  %v8449_v42 = vld [vmem:[#allocation5_spill] sm:$0xff] }
 0x1e4   :  { %v904_v21 = vpop.permute.xlu1 %903  ;;  %v1087_v62 = vpop.permute.xlu0 %1086 }
 0x1e5   :  { %v1396_v16 = vsel %vm1199_vm7, %v1345_v53, %v1087_v62 }
 0x1e6   :  { %1108 = vrot.lane.b32.xlu0 %v6085_v15, %s5534_s0  ;;  %1749 = vmatprep.mubr.bf16.mxu1 %v1396_v16  ;;  %v1231_v15 = vsel %vm1199_vm7, %v1178_v40, %v6381_v14 }
 0x1e7   :  { %1750 = vmatmul.mubr.bf16.gmra.mrb[36].mxu1 %v1228_v9 }
 0x1e8   :  { %v906_v58 = vpop.permute.xlu1 %905  ;;  %v1089_v43 = vpop.permute.xlu0 %1088 }
 0x1e9   :  { %v1399_v50 = vsel %vm1199_vm7, %v1347_v6, %v1089_v43 }
 0x1ea   :  { %1757 = vmatprep.mubr.bf16.mxu1 %v1399_v50 }
 0x1ec   :  { %v796_v5 = vpop.permute.xlu1 %795  ;;  %v1045_v8 = vpop.permute.xlu0 %1044 }
 0x1ed   :  { %v1137_v45 = vsel %vm1113_vm5, %v5867_v41, %v796_v5  ;;  %v8448_v41 = vld [vmem:[#allocation6_spill] sm:$0xff] }
 0x1ee   :  { %v1180_v33 = vsel %vm1156_vm6, %v1137_v45, %v904_v21 }
 0x1ef   :  { %1758 = vmatmul.mubr.bf16.gmra.mrb[40].mxu1 %v1231_v15  ;;  %v1234_v59 = vsel %vm1199_vm7, %v1180_v33, %v946_v7 }
 0x1f0   :  { %v798_v2 = vpop.permute.xlu1 %797  ;;  %v1043_v57 = vpop.permute.xlu0 %1042 }
 0x1f1   :  { %v1139_v56 = vsel %vm1113_vm5, %v8448_v41, %v798_v2 }
 0x1f2   :  { %v1182_v3 = vsel %vm1156_vm6, %v1139_v56, %v906_v58 }
 0x1f3   :  { %v1237_v53 = vsel %vm1199_vm7, %v1182_v3, %v948_v51 }
 0x1f4   :  { %v952_v37 = vpop.permute.xlu1 %951  ;;  %v1001_v13 = vpop.permute.xlu0 %1000 }
 0x1f5   :  { %v1301_v14 = vsel %vm1113_vm5, %v6212_v31, %v1001_v13 }
 0x1f6   :  { %v1351_v38 = vsel %vm1156_vm6, %v1301_v14, %v1043_v57 }
 0x1f8   :  { %v950_v22 = vpop.permute.xlu1 %949  ;;  %v1003_v47 = vpop.permute.xlu0 %1002 }
 0x1f9   :  { %v1304_v40 = vsel %vm1113_vm5, %v6224_v48, %v1003_v47 }
 0x1fa   :  { %v1353_v2 = vsel %vm1156_vm6, %v1304_v40, %v1045_v8 }
 0x1fc   :  { %v908_v20 = vpop.permute.xlu1 %907  ;;  %v1091_v46 = vpop.permute.xlu0 %1090 }
 0x1fd   :  { %v1402_v23 = vsel %vm1199_vm7, %v1349_v30, %v1091_v46 }
 0x1fe   :  { %1765 = vmatprep.mubr.bf16.mxu1 %v1402_v23 }
 0x1ff   :  { %1766 = vmatmul.mubr.bf16.gmra.mrb[44].mxu1 %v1234_v59 }
 0x200   :  { %v910_v10 = vpop.permute.xlu1 %909  ;;  %v1093_v26 = vpop.permute.xlu0 %1092 }
 0x201   :  { %v1405_v21 = vsel %vm1199_vm7, %v1351_v38, %v1093_v26 }
 0x202   :  { %1773 = vmatprep.mubr.bf16.mxu1 %v1405_v21 }
 0x204   :  { %v800_v62 = vpop.permute.xlu1 %799  ;;  %v1049_v31 = vpop.permute.xlu0 %1048 }
 0x205   :  { %v1141_v43 = vsel %vm1113_vm5, %v8449_v42, %v800_v62 }
 0x206   :  { %v1184_v5 = vsel %vm1156_vm6, %v1141_v43, %v908_v20 }
 0x207   :  { %1774 = vmatmul.mubr.bf16.gmra.mrb[48].mxu1 %v1237_v53  ;;  %v1240_v13 = vsel %vm1199_vm7, %v1184_v5, %v950_v22 }
 0x208   :  { %v802_v63 = vpop.permute.xlu1 %801  ;;  %v1047_v7 = vpop.permute.xlu0 %1046 }
 0x209   :  { %v1143_v45 = vsel %vm1113_vm5, %v5915_v28, %v802_v63 }
 0x20a   :  { %v1186_v8 = vsel %vm1156_vm6, %v1143_v45, %v910_v10 }
 0x20b   :  { %v1243_v46 = vsel %vm1199_vm7, %v1186_v8, %v952_v37 }
 0x20c   :  { %v956_v16 = vpop.permute.xlu1 %955  ;;  %v1005_v9 = vpop.permute.xlu0 %1004 }
 0x20d   :  { %v1307_v51 = vsel %vm1113_vm5, %v6286_v44, %v1005_v9 }
 0x20e   :  { %v1355_v47 = vsel %vm1156_vm6, %v1307_v51, %v1047_v7 }
 0x210   :  { %v954_v6 = vpop.permute.xlu1 %953  ;;  %v1007_v50 = vpop.permute.xlu0 %1006 }
 0x211   :  { %v1310_v56 = vsel %vm1113_vm5, %v6298_v52, %v1007_v50 }
 0x212   :  { %v1357_v21 = vsel %vm1156_vm6, %v1310_v56, %v1049_v31 }
 0x214   :  { %v912_v58 = vpop.permute.xlu1 %911  ;;  %v1095_v15 = vpop.permute.xlu0 %1094 }
 0x215   :  { %v1408_v57 = vsel %vm1199_vm7, %v1353_v2, %v1095_v15 }
 0x216   :  { %1781 = vmatprep.mubr.bf16.mxu1 %v1408_v57 }
 0x217   :  { %1782 = vmatmul.mubr.bf16.gmra.mrb[52].mxu1 %v1240_v13 }
 0x218   :  { %v914_v11 = vpop.permute.xlu1 %913  ;;  %v1097_v48 = vpop.permute.xlu0 %1096 }
 0x219   :  { %v1411_v33 = vsel %vm1199_vm7, %v1355_v47, %v1097_v48 }
 0x21a   :  { %1789 = vmatprep.mubr.bf16.mxu1 %v1411_v33 }
 0x21c   :  { %v804_v20 = vpop.permute.xlu1 %803  ;;  %v1053_v44 = vpop.permute.xlu0 %1052 }
 0x21d   :  { %v1145_v28 = vsel %vm1113_vm5, %v5912_v25, %v804_v20 }
 0x21e   :  { %v1188_v26 = vsel %vm1156_vm6, %v1145_v28, %v912_v58 }
 0x21f   :  { %1790 = vmatmul.mubr.bf16.gmra.mrb[56].mxu1 %v1243_v46  ;;  %v1246_v62 = vsel %vm1199_vm7, %v1188_v26, %v954_v6 }
 0x220   :  { %v806_v30 = vpop.permute.xlu1 %805  ;;  %v1051_v22 = vpop.permute.xlu0 %1050 }
 0x221   :  { %v1147_v25 = vsel %vm1113_vm5, %v5945_v1, %v806_v30 }
 0x222   :  { %v1190_v31 = vsel %vm1156_vm6, %v1147_v25, %v914_v11  ;;  %v8455_v25 = vld [vmem:[#allocation9_spill] sm:$0xff] }
 0x223   :  { %v1249_v42 = vsel %vm1199_vm7, %v1190_v31, %v956_v16  ;;  %v8460_v31 = vld [vmem:[#allocation15_spill] sm:$0xff] }
 0x224   :  { %v960_v14 = vpop.permute.xlu1 %959  ;;  %v1009_v23 = vpop.permute.xlu0 %1008 }
 0x225   :  { %v1313_v37 = vsel %vm1113_vm5, %v6356_v24, %v1009_v23 }
 0x226   :  { %v1359_v63 = vsel %vm1156_vm6, %v1313_v37, %v1051_v22  ;;  %v8452_v37 = vld [vmem:[#allocation4_spill] sm:$0xff] }
 0x228   :  { %v958_v59 = vpop.permute.xlu1 %957  ;;  %v1011_v41 = vpop.permute.xlu0 %1010 }
 0x229   :  { %v1316_v5 = vsel %vm1113_vm5, %v6368_v19, %v1011_v41 }
 0x22a   :  { %v1361_v51 = vsel %vm1156_vm6, %v1316_v5, %v1053_v44 }
 0x22c   :  { %v916_v10 = vpop.permute.xlu1 %915  ;;  %v1099_v38 = vpop.permute.xlu0 %1098 }
 0x22d   :  { %v1414_v3 = vsel %vm1199_vm7, %v1357_v21, %v1099_v38 }
 0x22e   :  { %1797 = vmatprep.mubr.bf16.mxu1 %v1414_v3  ;;  %v8453_v3 = vld [vmem:[#allocation7_spill] sm:$0xff] }
 0x22f   :  { %1798 = vmatmul.mubr.bf16.gmra.mrb[60].mxu1 %v1246_v62  ;;  %v8454_v62 = vld [vmem:[#allocation8_spill] sm:$0xff] }
 0x230   :  { %v918_v53 = vpop.permute.xlu1 %917  ;;  %v1101_v52 = vpop.permute.xlu0 %1100 }
 0x231   :  { %v1417_v7 = vsel %vm1199_vm7, %v1359_v63, %v1101_v52  ;;  %v8457_v52 = vld [vmem:[#allocation11_spill] sm:$0xff]  ;;  %v8458_v63 = vld [vmem:[#allocation12_spill] sm:$0xff] }
 0x232   :  { %1805 = vmatprep.mubr.bf16.mxu1 %v1417_v7  ;;  %v8459_v7 = vld [vmem:[#allocation14_spill] sm:$0xff] }
 0x234   :  { %v808_v9 = vpop.permute.xlu1 %807  ;;  %v1055_v24 = vpop.permute.xlu0 %1054 }
 0x235   :  { %v1149_v50 = vsel %vm1113_vm5, %v5937_v54, %v808_v9  ;;  %v5503_v9 = vld [vmem:[%s8398_s5 + $0x38] sm:$0xff]  }
 0x236   :  { %v1192_v58 = vsel %vm1156_vm6, %v1149_v50, %v916_v10 }
 0x237   :  { %1806 = vmatmul.mubr.bf16.gmra.mrb[64].mxu1 %v1249_v42  ;;  %v1252_v16 = vsel %vm1199_vm7, %v1192_v58, %v958_v59  ;;  %v5504_v42 = vld [vmem:[%s8398_s5 + $0x40] sm:$0xff]  }
 0x238   :  { %v810_v43 = vpop.permute.xlu1 %809  ;;  %v1013_v6 = vpop.permute.xlu0 %1012 }
 0x239   :  { %v1151_v54 = vsel %vm1113_vm5, %v5968_v32, %v810_v43  ;;  %v1319_v45 = vsel %vm1113_vm5, %v6411_v0, %v1013_v6 }
 0x23a   :  { %v1194_v11 = vsel %vm1156_vm6, %v1151_v54, %v918_v53  ;;  %v1363_v47 = vsel %vm1156_vm6, %v1319_v45, %v1055_v24  ;;  %v8456_v53 = vld [vmem:[#allocation10_spill] sm:$0xff] }
 0x23b   :  { %v1255_v8 = vsel %vm1199_vm7, %v1194_v11, %v960_v14  ;;  %v6672_v24 = vld [vmem:[%s8399_s4] ss:$0 sm:$0xff] }
 0x23c   :  { %v920_v1 = vpop.permute.xlu1 %919  ;;  %v1015_v40 = vpop.permute.xlu0 %1014 }
 0x23d   :  { %v1322_v0 = vsel %vm1113_vm5, %v6433_v29, %v1015_v40  ;;  %v5505_v40 = vld [vmem:[%s8398_s5 + $0x48] sm:$0xff]  }
 0x240   :  { %v962_v15 = vpop.permute.xlu1 %961  ;;  %v1103_v2 = vpop.permute.xlu0 %1102 }
 0x241   :  { %v1420_v57 = vsel %vm1199_vm7, %v1361_v51, %v1103_v2  ;;  %v5506_v51 = vld [vmem:[%s8398_s5 + $0x50] sm:$0xff]  }
 0x242   :  { %1813 = vmatprep.mubr.bf16.mxu1 %v1420_v57 }
 0x243   :  { %1814 = vmatmul.mubr.bf16.gmra.mrb[68].mxu1 %v1252_v16 }
 0x244   :  { %v1057_v13 = vpop.permute.xlu0 %1056  ;;  %v812_v19 = vpop.permute.xlu1 %811 }
 0x245   :  { %v1153_v32 = vsel %vm1113_vm5, %v5963_v27, %v812_v19  ;;  %v1365_v30 = vsel %vm1156_vm6, %v1322_v0, %v1057_v13  ;;  %v5507_v19 = vld [vmem:[%s8398_s5 + $0x58] sm:$0xff]  }
 0x246   :  { %v1196_v46 = vsel %vm1156_vm6, %v1153_v32, %v920_v1 }
 0x247   :  { %v1258_v14 = vsel %vm1199_vm7, %v1196_v46, %v962_v15 }
 0x248   :  { %v1105_v48 = vpop.permute.xlu0 %1104  ;;  %v814_v20 = vpop.permute.xlu1 %813 }
 0x249   :  { %v1423_v33 = vsel %vm1199_vm7, %v1363_v47, %v1105_v48  ;;  %v1155_v29 = vsel %vm1113_vm5, %v5985_v60, %v814_v20  ;;  %v8451_v60 = vld [vmem:[#allocation3_spill] sm:$0xff]  ;;  %v5508_v20 = vld [vmem:[%s8398_s5 + $0x60] sm:$0xff]  }
 0x24a   :  { %1821 = vmatprep.mubr.bf16.mxu1 %v1423_v33 }
 0x24b   :  { %1822 = vmatmul.mubr.bf16.gmra.mrb[72].mxu1 %v1255_v8 }
 0x24c   :  { %v1017_v44 = vpop.permute.xlu0 %1016  ;;  %v922_v23 = vpop.permute.xlu1 %921 }
 0x24d   :  { %v1325_v27 = vsel %vm1113_vm5, %v6043_v12, %v1017_v44  ;;  %v1198_v10 = vsel %vm1156_vm6, %v1155_v29, %v922_v23  ;;  %v8450_v12 = vld [vmem:[#allocation2_spill] sm:$0xff] }
 0x250   :  { %v1107_v22 = vpop.permute.xlu0 %1106  ;;  %v964_v41 = vpop.permute.xlu1 %963 }
 0x251   :  { %v1426_v28 = vsel %vm1199_vm7, %v1365_v30, %v1107_v22  ;;  %v1261_v21 = vsel %vm1199_vm7, %v1198_v10, %v964_v41 }
 0x252   :  { %1829 = vmatprep.mubr.bf16.mxu1 %v1426_v28 }
 0x253   :  { %1830 = vmatmul.mubr.bf16.gmra.mrb[76].mxu1 %v1258_v14 }
 0x254   :  { %v1059_v59 = vpop.permute.xlu0 %1058 }
 0x255   :  { %v1367_v56 = vsel %vm1156_vm6, %v1325_v27, %v1059_v59  ;;  %v5509_v59 = vld [vmem:[%s8398_s5 + $0x68] sm:$0xff]  }
 0x258   :  { %v1109_v26 = vpop.permute.xlu0 %1108 }
 0x259   :  { %v1429_v38 = vsel %vm1199_vm7, %v1367_v56, %v1109_v26 }
 0x25a   :  { %1837 = vmatprep.mubr.bf16.mxu1 %v1429_v38 }
 0x25b   :  { %1838 = vmatmul.mubr.bf16.gmra.mrb[80].mxu1 %v1261_v21 }
 0x25c   :  { %5127 = vmatprep.mubr.msk.bf16.mxu1 %vm5538_vm8, %v8446_v17 }
 0x263   :  { %5128 = vmatmul.mubr.msk.bf16.vlgmr.msra.gmra.mrb[0].mxu1 %vm1113_vm5, %v8450_v12  ;;  %v5510_v12 = vld [vmem:[%s8398_s5 + $0x70] sm:$0xff]  }
 0x264   :  { %5131 = vmatprep.mubr.msk.bf16.mxu1 %vm5538_vm8, %v8446_v17 }
 0x26b   :  { %5132 = vmatmul.mubr.msk.bf16.gmra.mrb[4].mxu1 %vm1113_vm5, %v8451_v60 }
 0x26c   :  { %5135 = vmatprep.mubr.msk.bf16.mxu1 %vm5538_vm8, %v8446_v17 }
 0x273   :  { %5136 = vmatmul.mubr.msk.bf16.gmra.mrb[8].mxu1 %vm1113_vm5, %v8452_v37 }
 0x274   :  { %5139 = vmatprep.mubr.msk.bf16.mxu1 %vm5538_vm8, %v8446_v17 }
 0x27b   :  { %5140 = vmatmul.mubr.msk.bf16.gmra.mrb[12].mxu1 %vm1113_vm5, %v8453_v3 }
 0x27c   :  { %5143 = vmatprep.mubr.msk.bf16.mxu1 %vm5538_vm8, %v8446_v17 }
 0x283   :  { %5144 = vmatmul.mubr.msk.bf16.gmra.mrb[16].mxu1 %vm1113_vm5, %v8454_v62 }
 0x284   :  { %5147 = vmatprep.mubr.msk.bf16.mxu1 %vm5538_vm8, %v8446_v17 }
 0x28b   :  { %5148 = vmatmul.mubr.msk.bf16.gmra.mrb[20].mxu1 %vm1113_vm5, %v8455_v25 }
 0x28c   :  { %5151 = vmatprep.mubr.msk.bf16.mxu1 %vm5538_vm8, %v8446_v17 }
 0x293   :  { %5152 = vmatmul.mubr.msk.bf16.gmra.mrb[24].mxu1 %vm1113_vm5, %v8456_v53 }
 0x294   :  { %5155 = vmatprep.mubr.msk.bf16.mxu1 %vm5538_vm8, %v8446_v17 }
 0x29b   :  { %5156 = vmatmul.mubr.msk.bf16.gmra.mrb[28].mxu1 %vm1113_vm5, %v8457_v52 }
 0x29c   :  { %5159 = vmatprep.mubr.msk.bf16.mxu1 %vm5538_vm8, %v8446_v17 }
 0x2a3   :  { %5160 = vmatmul.mubr.msk.bf16.gmra.mrb[32].mxu1 %vm1113_vm5, %v8458_v63  ;;  %v5511_v63 = vld [vmem:[%s8398_s5 + $0x78] sm:$0xff]  }
 0x2a4   :  { %5163 = vmatprep.mubr.msk.bf16.mxu1 %vm5538_vm8, %v8446_v17 }
 0x2ab   :  { %5164 = vmatmul.mubr.msk.bf16.gmra.mrb[36].mxu1 %vm1113_vm5, %v8459_v7 }
 0x2ac   :  { %5167 = vmatprep.mubr.msk.bf16.mxu1 %vm5538_vm8, %v8446_v17 }
 0x2b3   :  { %5168 = vmatmul.mubr.msk.bf16.gmra.mrb[40].mxu1 %vm1113_vm5, %v8460_v31 }
 0x2b4   :  { %5171 = vmatprep.mubr.msk.bf16.mxu1 %vm5538_vm8, %v8446_v17 }
 0x2bb   :  { %5172 = vmatmul.mubr.msk.bf16.gmra.mrb[44].mxu1 %vm1113_vm5, %v6182_v61  ;;  %v8461_v61 = vld [vmem:[#allocation13_spill] sm:$0xff] }
 0x2bc   :  { %5175 = vmatprep.mubr.msk.bf16.mxu1 %vm5538_vm8, %v8446_v17 }
 0x2c3   :  { %5176 = vmatmul.mubr.msk.bf16.gmra.mrb[48].mxu1 %vm1113_vm5, %v6196_v36  ;;  %v5496_v36 = vld [vmem:[%s8398_s5] sm:$0xff]  }
 0x2c4   :  { %5179 = vmatprep.mubr.msk.bf16.mxu1 %vm5538_vm8, %v8446_v17  ;;  %3028 = vmatpush1.bf16.msra.mxu0 %v5496_v36 }
 0x2cb   :  { %5180 = vmatmul.mubr.msk.bf16.gmra.mrb[52].mxu1 %vm1113_vm5, %v6256_v35  ;;  %v8462_v35 = vmov 0  }
 0x2cc   :  { %5183 = vmatprep.mubr.msk.bf16.mxu1 %vm5538_vm8, %v8446_v17  ;;  %3029 = vmatprep.subr.bf16.mxu0 %v8462_v35 }
 0x2d3   :  { %5184 = vmatmul.mubr.msk.bf16.gmra.mrb[56].mxu1 %vm1113_vm5, %v6270_v34  ;;  %v5498_v34 = vld [vmem:[%s8398_s5 + $0x10] sm:$0xff]  }
 0x2d4   :  { %5187 = vmatprep.mubr.msk.bf16.mxu1 %vm5538_vm8, %v8446_v17 }
 0x2db   :  { %5188 = vmatmul.mubr.msk.bf16.gmra.mrb[60].mxu1 %vm1113_vm5, %v6326_v49  ;;  %v5499_v49 = vld [vmem:[%s8398_s5 + $0x18] sm:$0xff]  }
 0x2dc   :  { %5191 = vmatprep.mubr.msk.bf16.mxu1 %vm5538_vm8, %v8446_v17 }
 0x2e3   :  { %5192 = vmatmul.mubr.msk.bf16.gmra.mrb[64].mxu1 %vm1113_vm5, %v6340_v55  ;;  %v5500_v55 = vld [vmem:[%s8398_s5 + $0x20] sm:$0xff]  }
 0x2e4   :  { %5195 = vmatprep.mubr.msk.bf16.mxu1 %vm5538_vm8, %v8446_v17 }
 0x2eb   :  { %5196 = vmatmul.mubr.msk.bf16.gmra.mrb[68].mxu1 %vm1113_vm5, %v6385_v39  ;;  %v5501_v39 = vld [vmem:[%s8398_s5 + $0x28] sm:$0xff]  }
 0x2ec   :  { %5199 = vmatprep.mubr.msk.bf16.mxu1 %vm5538_vm8, %v8446_v17 }
 0x2f3   :  { %5200 = vmatmul.mubr.msk.bf16.gmra.mrb[72].mxu1 %vm1113_vm5, %v6399_v18  ;;  %v5502_v18 = vld [vmem:[%s8398_s5 + $0x30] sm:$0xff]  }
 0x2f4   :  { %5203 = vmatprep.mubr.msk.bf16.mxu1 %vm5538_vm8, %v8446_v17 }
 0x2fb   :  { %5204 = vmatmul.mubr.msk.bf16.gmra.mrb[76].mxu1 %vm1113_vm5, %v6036_v4  ;;  %v5497_v4 = vld [vmem:[%s8398_s5 + $0x8] sm:$0xff]  }
 0x2fc   :  { %5207 = vmatprep.mubr.msk.bf16.mxu1 %vm5538_vm8, %v8446_v17  ;;  %3030 = vmatpush1.bf16.msra.mxu0 %v5497_v4 }
 0x2fd   :  { %3031 = vmatprep.subr.bf16.mxu0 %v8462_v35 }
 0x300   :  { %3032 = vmatpush1.bf16.msra.mxu0 %v5498_v34 }
 0x301   :  { %3033 = vmatprep.subr.bf16.mxu0 %v8462_v35 }
 0x303   :  { %5208 = vmatmul.mubr.msk.bf16.gmra.mrb[80].mxu1 %vm1113_vm5, %v8461_v61 }
 0x304   :  { %5275 = vmatprep.mubr.msk.bf16.mxu1 %vm5538_vm8, %v8446_v17  ;;  %3034 = vmatpush1.bf16.msra.mxu0 %v5499_v49 }
 0x305   :  { %3035 = vmatprep.subr.bf16.mxu0 %v8462_v35 }
 0x308   :  { %3036 = vmatpush1.bf16.msra.mxu0 %v5500_v55 }
 0x309   :  { %3037 = vmatprep.subr.bf16.mxu0 %v8462_v35 }
 0x30c   :  { %3038 = vmatpush1.bf16.msra.mxu0 %v5501_v39 }
 0x30d   :  { %3039 = vmatprep.subr.bf16.mxu0 %v8462_v35 }
 0x310   :  { %3040 = vmatpush1.bf16.msra.mxu0 %v5502_v18 }
 0x311   :  { %3041 = vmatprep.subr.bf16.mxu0 %v8462_v35 }
 0x314   :  { %3042 = vmatpush1.bf16.msra.mxu0 %v5503_v9 }
 0x315   :  { %3043 = vmatprep.subr.bf16.mxu0 %v8462_v35 }
 0x318   :  { %3044 = vmatpush1.bf16.msra.mxu0 %v5504_v42 }
 0x319   :  { %3045 = vmatprep.subr.bf16.mxu0 %v8462_v35 }
 0x31c   :  { %3046 = vmatpush1.bf16.msra.mxu0 %v5505_v40 }
 0x31d   :  { %3047 = vmatprep.subr.bf16.mxu0 %v8462_v35 }
 0x320   :  { %3048 = vmatpush1.bf16.msra.mxu0 %v5506_v51 }
 0x321   :  { %3049 = vmatprep.subr.bf16.mxu0 %v8462_v35 }
 0x324   :  { %3050 = vmatpush1.bf16.msra.mxu0 %v5507_v19 }
 0x325   :  { %3051 = vmatprep.subr.bf16.mxu0 %v8462_v35 }
 0x328   :  { %3052 = vmatpush1.bf16.msra.mxu0 %v5508_v20 }
 0x329   :  { %3053 = vmatprep.subr.bf16.mxu0 %v8462_v35 }
 0x32c   :  { %3054 = vmatpush1.bf16.msra.mxu0 %v5509_v59 }
 0x32d   :  { %3055 = vmatprep.subr.bf16.mxu0 %v8462_v35 }
 0x330   :  { %3056 = vmatpush1.bf16.msra.mxu0 %v5510_v12 }
 0x331   :  { %3057 = vmatprep.subr.bf16.mxu0 %v8462_v35 }
 0x334   :  { %3058 = vmatpush1.bf16.msra.mxu0 %v5511_v63 }
 0x336   :  { %v1880_v43 = vpop.f32.mrb[0].mxu1 }
 0x337   :  { %v5319_v6 = vadd.f32 %v6672_v24, %v1880_v43  ;;  %v5129_v50 = vpop.f32.mrb[1].mxu1 }
 0x338   :  { %v1883_v1 = vpop.f32.mrb[2].mxu1 }
 0x339   :  { %v5320_v5 = vadd.f32 %v6672_v24, %v1883_v1  ;;  %v5130_v58 = vpop.f32.mrb[3].mxu1  ;;  %v2047_v15 = vmax.f32 %v5319_v6, 0.0 }
 0x33b   :  { %v2048_v2 = vmax.f32 %v5320_v5, 0.0 }
 0x33d   :  { %v6687_v57 = vpack.c.bf16 %v2048_v2, %v2047_v15 }
 0x33e   :  { %v1888_v16 = vpop.f32.mrb[4].mxu1 }
 0x33f   :  { %v5321_v54 = vadd.f32 %v6672_v24, %v1888_v16  ;;  %v5133_v13 = vpop.f32.mrb[5].mxu1  ;;  %v2113_v8 = vshll.u32 %v6687_v57, 16  ;;  %v2313_v30 = vrot.slane %v6687_v57, 1  ;;  %v2111_v56 = vshrl.u32 %v6687_v57, 16 }
 0x340   :  { %v1891_v45 = vpop.f32.mrb[6].mxu1 }
 0x341   :  { %v5322_v11 = vadd.f32 %v6672_v24, %v1891_v45  ;;  %v5134_v48 = vpop.f32.mrb[7].mxu1  ;;  %v2049_v47 = vmax.f32 %v5321_v54, 0.0  ;;  %v2115_v14 = vrot.slane %v2113_v8, 1 }
 0x343   :  { %v2050_v33 = vmax.f32 %v5322_v11, 0.0  ;;  %v2116_v21 = vor.u32 %v2115_v14, %v2111_v56 }
 0x345   :  { %v6700_v32 = vpack.c.bf16 %v2050_v33, %v2049_v47 }
 0x346   :  { %v1896_v44 = vpop.f32.mrb[8].mxu1 }
 0x347   :  { %v5323_v0 = vadd.f32 %v6672_v24, %v1896_v44  ;;  %2386 = vrot.lane.b32.xlu1 %v6700_v32, %s5534_s0  ;;  %v5137_v46 = vpop.f32.mrb[9].mxu1  ;;  %v2314_v22 = vrot.slane %v6700_v32, 1  ;;  %v2118_v23 = vshll.u32 %v6700_v32, 16  ;;  %v2122_v39 = vshrl.u32 %v6700_v32, 16 }
 0x348   :  { %v1899_v28 = vpop.f32.mrb[10].mxu1 }
 0x349   :  { %v5324_v27 = vadd.f32 %v6672_v24, %v1899_v28  ;;  %v5138_v41 = vpop.f32.mrb[11].mxu1  ;;  %v2315_v29 = vsel %vm837_vm3, %v2313_v30, %v2314_v22  ;;  %v2120_v26 = vrot.slane %v2118_v23, 1  ;;  %v2051_v10 = vmax.f32 %v5323_v0, 0.0 }
 0x34b   :  { %v2052_v38 = vmax.f32 %v5324_v27, 0.0  ;;  %2350 = vrot.lane.b32.xlu1 %v2315_v29, %s5535_s22  ;;  %v2121_v3 = vsel %vm600_vm4, %v2116_v21, %v2120_v26  ;;  %v2124_v1 = vor.u32 %v2122_v39, %v2120_v26 }
 0x34d   :  { %v6720_v60 = vpack.c.bf16 %v2052_v38, %v2051_v10 }
 0x34e   :  { %v1904_v37 = vpop.f32.mrb[12].mxu1 }
 0x34f   :  { %v5325_v62 = vadd.f32 %v6672_v24, %v1904_v37  ;;  %2258 = vrot.lane.b32.xlu1 %v2121_v3, %s5536_s25  ;;  %2469 = vrot.lane.b32.xlu0 %v6720_v60, %s5535_s22  ;;  %v5141_v25 = vpop.f32.mrb[13].mxu1  ;;  %v2316_v53 = vrot.slane %v6720_v60, 1  ;;  %v2126_v36 = vshll.u32 %v6720_v60, 16  ;;  %v2130_v2 = vshrl.u32 %v6720_v60, 16 }
 0x350   :  { %v1907_v52 = vpop.f32.mrb[14].mxu1 }
 0x351   :  { %v5326_v7 = vadd.f32 %v6672_v24, %v1907_v52  ;;  %v5142_v31 = vpop.f32.mrb[15].mxu1  ;;  %v2317_v61 = vsel %vm837_vm3, %v2314_v22, %v2316_v53  ;;  %v2053_v4 = vmax.f32 %v5325_v62, 0.0  ;;  %v2128_v18 = vrot.slane %v2126_v36, 1 }
 0x353   :  { %v2054_v34 = vmax.f32 %v5326_v7, 0.0  ;;  %2388 = vrot.lane.b32.xlu1 %v6720_v60, %s5534_s0  ;;  %2433 = vrot.lane.b32.xlu0 %v2317_v61, %s5536_s25  ;;  %v6752_v15 = vsel %vm600_vm4, %v2124_v1, %v2128_v18  ;;  %v2132_v13 = vor.u32 %v2130_v2, %v2128_v18 }
 0x355   :  { %v6738_v49 = vpack.c.bf16 %v2054_v34, %v2053_v4 }
 0x356   :  { %v1912_v55 = vpop.f32.mrb[16].mxu1 }
 0x357   :  { %v5327_v9 = vadd.f32 %v6672_v24, %v1912_v55  ;;  %2352 = vrot.lane.b32.xlu1 %v2317_v61, %s5535_s22  ;;  %2471 = vrot.lane.b32.xlu0 %v6738_v49, %s5535_s22  ;;  %v5145_v42 = vpop.f32.mrb[17].mxu1  ;;  %v2318_v43 = vrot.slane %v6738_v49, 1  ;;  %v2134_v6 = vshll.u32 %v6738_v49, 16  ;;  %v2138_v14 = vshrl.u32 %v6738_v49, 16 }
 0x358   :  { %v1915_v50 = vpop.f32.mrb[18].mxu1 }
 0x359   :  { %v5328_v40 = vadd.f32 %v6672_v24, %v1915_v50  ;;  %v5146_v5 = vpop.f32.mrb[19].mxu1  ;;  %v6749_v58 = vsel %vm837_vm3, %v2316_v53, %v2318_v43  ;;  %v2136_v51 = vrot.slane %v2134_v6, 1  ;;  %v2055_v16 = vmax.f32 %v5327_v9, 0.0 }
 0x35b   :  { %v2056_v54 = vmax.f32 %v5328_v40, 0.0  ;;  %2260 = vrot.lane.b32.xlu1 %v6752_v15, %s5536_s25  ;;  %2435 = vrot.lane.b32.xlu0 %v6749_v58, %s5536_s25  ;;  %v6762_v11 = vsel %vm600_vm4, %v2132_v13, %v2136_v51  ;;  %v2140_v56 = vor.u32 %v2138_v14, %v2136_v51 }
 0x35d   :  { %v6759_v45 = vpack.c.bf16 %v2056_v54, %v2055_v16 }
 0x35e   :  { %v1920_v19 = vpop.f32.mrb[20].mxu1 }
 0x35f   :  { %v5329_v48 = vadd.f32 %v6672_v24, %v1920_v19  ;;  %2390 = vrot.lane.b32.xlu1 %v6738_v49, %s5534_s0  ;;  %2513 = vrot.lane.b32.xlu0 %v6762_v11, %s5534_s0  ;;  %v5149_v47 = vpop.f32.mrb[21].mxu1  ;;  %v2320_v44 = vrot.slane %v6759_v45, 1  ;;  %v2142_v0 = vshll.u32 %v6759_v45, 16  ;;  %v2146_v36 = vshrl.u32 %v6759_v45, 16 }
 0x360   :  { %v1923_v33 = vpop.f32.mrb[22].mxu1 }
 0x361   :  { %v5330_v8 = vadd.f32 %v6672_v24, %v1923_v33  ;;  %v5150_v20 = vpop.f32.mrb[23].mxu1  ;;  %v2057_v46 = vmax.f32 %v5329_v48, 0.0  ;;  %v6779_v28 = vsel %vm837_vm3, %v2318_v43, %v2320_v44  ;;  %v2144_v59 = vrot.slane %v2142_v0, 1 }
 0x363   :  { %v2058_v30 = vmax.f32 %v5330_v8, 0.0  ;;  %2354 = vrot.lane.b32.xlu1 %v6749_v58, %s5535_s22  ;;  %2473 = vrot.lane.b32.xlu0 %v6759_v45, %s5535_s22  ;;  %v6789_v38 = vsel %vm600_vm4, %v2140_v56, %v2144_v59  ;;  %v2148_v39 = vor.u32 %v2146_v36, %v2144_v59 }
 0x365   :  { %v6776_v22 = vpack.c.bf16 %v2058_v30, %v2057_v46 }
 0x366   :  { %v1928_v23 = vpop.f32.mrb[24].mxu1 }
 0x367   :  { %v5331_v27 = vadd.f32 %v6672_v24, %v1928_v23  ;;  %2262 = vrot.lane.b32.xlu1 %v6762_v11, %s5536_s25  ;;  %2437 = vrot.lane.b32.xlu0 %v6779_v28, %s5536_s25  ;;  %v5153_v41 = vpop.f32.mrb[25].mxu1  ;;  %v2322_v62 = vrot.slane %v6776_v22, 1  ;;  %v2150_v25 = vshll.u32 %v6776_v22, 16  ;;  %v2154_v48 = vshrl.u32 %v6776_v22, 16 }
 0x368   :  { %v1931_v29 = vpop.f32.mrb[26].mxu1 }
 0x369   :  { %v5332_v26 = vadd.f32 %v6672_v24, %v1931_v29  ;;  %v5154_v10 = vpop.f32.mrb[27].mxu1  ;;  %v2059_v21 = vmax.f32 %v5331_v27, 0.0  ;;  %v6806_v61 = vsel %vm837_vm3, %v2320_v44, %v2322_v62  ;;  %v2152_v4 = vrot.slane %v2150_v25, 1 }
 0x36b   :  { %v2060_v12 = vmax.f32 %v5332_v26, 0.0  ;;  %2392 = vrot.lane.b32.xlu1 %v6759_v45, %s5534_s0  ;;  %2515 = vrot.lane.b32.xlu0 %v6789_v38, %s5534_s0  ;;  %v6816_v42 = vsel %vm600_vm4, %v2148_v39, %v2152_v4  ;;  %v2156_v44 = vor.u32 %v2154_v48, %v2152_v4 }
 0x36d   :  { %v6795_v37 = vpack.c.bf16 %v2060_v12, %v2059_v21 }
 0x36e   :  { %v1936_v3 = vpop.f32.mrb[28].mxu1 }
 0x36f   :  { %v5333_v53 = vadd.f32 %v6672_v24, %v1936_v3  ;;  %2356 = vrot.lane.b32.xlu1 %v6779_v28, %s5535_s22  ;;  %2475 = vrot.lane.b32.xlu0 %v6776_v22, %s5535_s22  ;;  %v5157_v52 = vpop.f32.mrb[29].mxu1  ;;  %v2324_v5 = vrot.slane %v6795_v37, 1  ;;  %v2158_v2 = vshll.u32 %v6795_v37, 16 }
 0x370   :  { %v1939_v63 = vpop.f32.mrb[30].mxu1 }
 0x371   :  { %v5334_v7 = vadd.f32 %v6672_v24, %v1939_v63  ;;  %v5158_v31 = vpop.f32.mrb[31].mxu1  ;;  %v2061_v34 = vmax.f32 %v5333_v53, 0.0  ;;  %v6833_v19 = vsel %vm837_vm3, %v2322_v62, %v2324_v5  ;;  %v2160_v47 = vrot.slane %v2158_v2, 1 }
 0x372   :  { %v2162_v62 = vshrl.u32 %v6795_v37, 16 }
 0x373   :  { %v2062_v55 = vmax.f32 %v5334_v7, 0.0  ;;  %2264 = vrot.lane.b32.xlu1 %v6789_v38, %s5536_s25  ;;  %2439 = vrot.lane.b32.xlu0 %v6806_v61, %s5536_s25  ;;  %v6843_v30 = vsel %vm600_vm4, %v2156_v44, %v2160_v47 }
 0x374   :  { %v2164_v63 = vor.u32 %v2162_v62, %v2160_v47 }
 0x375   :  { %v6813_v18 = vpack.c.bf16 %v2062_v55, %v2061_v34  ;;  %v6880_v55 = vld [vmem:[%s8398_s5 + $0x80] sm:$0xff]  }
 0x376   :  { %v1944_v9 = vpop.f32.mrb[32].mxu1  ;;  %5211 = vmatprep.subr.bf16.mxu0 %v6880_v55 }
 0x377   :  { %v5335_v43 = vadd.f32 %v6672_v24, %v1944_v9  ;;  %2394 = vrot.lane.b32.xlu1 %v6776_v22, %s5534_s0  ;;  %2517 = vrot.lane.b32.xlu0 %v6816_v42, %s5534_s0  ;;  %v5161_v6 = vpop.f32.mrb[33].mxu1  ;;  %v2326_v41 = vrot.slane %v6813_v18, 1  ;;  %v2166_v29 = vshll.u32 %v6813_v18, 16 }
 0x378   :  { %v1947_v50 = vpop.f32.mrb[34].mxu1 }
 0x379   :  { %v5336_v1 = vadd.f32 %v6672_v24, %v1947_v50  ;;  %v5162_v40 = vpop.f32.mrb[35].mxu1  ;;  %v2063_v51 = vmax.f32 %v5335_v43, 0.0  ;;  %v6860_v3 = vsel %vm837_vm3, %v2324_v5, %v2326_v41  ;;  %v2168_v25 = vrot.slane %v2166_v29, 1 }
 0x37a   :  { %8463 = vst [vmem:[#allocation6_spill] sm:$0xff] %v6860_v3 }
 0x37b   :  { %v2064_v16 = vmax.f32 %v5336_v1, 0.0  ;;  %2358 = vrot.lane.b32.xlu1 %v6806_v61, %s5535_s22  ;;  %2477 = vrot.lane.b32.xlu0 %v6795_v37, %s5535_s22  ;;  %v6870_v36 = vsel %vm600_vm4, %v2164_v63, %v2168_v25 }
 0x37d   :  { %v6830_v54 = vpack.c.bf16 %v2064_v16, %v2063_v51  ;;  %v2170_v16 = vshrl.u32 %v6813_v18, 16 }
 0x37e   :  { %v1952_v13 = vpop.f32.mrb[36].mxu1 }
 0x37f   :  { %v5337_v33 = vadd.f32 %v6672_v24, %v1952_v13  ;;  %2266 = vrot.lane.b32.xlu1 %v6816_v42, %s5536_s25  ;;  %2441 = vrot.lane.b32.xlu0 %v6833_v19, %s5536_s25  ;;  %v5165_v8 = vpop.f32.mrb[37].mxu1  ;;  %v2328_v6 = vrot.slane %v6830_v54, 1  ;;  %v2174_v50 = vshll.u32 %v6830_v54, 16 }
 0x380   :  { %v1955_v20 = vpop.f32.mrb[38].mxu1  ;;  %v2172_v8 = vor.u32 %v2170_v16, %v2168_v25  ;;  %v2178_v25 = vshrl.u32 %v6830_v54, 16 }
 0x381   :  { %v5338_v0 = vadd.f32 %v6672_v24, %v1955_v20  ;;  %v5166_v46 = vpop.f32.mrb[39].mxu1  ;;  %v2065_v23 = vmax.f32 %v5337_v33, 0.0  ;;  %v6893_v51 = vsel %vm837_vm3, %v2326_v41, %v2328_v6  ;;  %v2176_v13 = vrot.slane %v2174_v50, 1 }
 0x382   :  { %8464 = vst [vmem:[#allocation5_spill] sm:$0xff] %v6893_v51 }
 0x383   :  { %v2066_v14 = vmax.f32 %v5338_v0, 0.0  ;;  %2396 = vrot.lane.b32.xlu1 %v6795_v37, %s5534_s0  ;;  %2519 = vrot.lane.b32.xlu0 %v6843_v30, %s5534_s0  ;;  %v6903_v0 = vsel %vm600_vm4, %v2172_v8, %v2176_v13 }
 0x385   :  { %v6849_v59 = vpack.c.bf16 %v2066_v14, %v2065_v23 }
 0x386   :  { %v1960_v27 = vpop.f32.mrb[40].mxu1 }
 0x387   :  { %v5339_v56 = vadd.f32 %v6672_v24, %v1960_v27  ;;  %2360 = vrot.lane.b32.xlu1 %v6833_v19, %s5535_s22  ;;  %2479 = vrot.lane.b32.xlu0 %v6813_v18, %s5535_s22  ;;  %v5169_v26 = vpop.f32.mrb[41].mxu1  ;;  %v2330_v41 = vrot.slane %v6849_v59, 1  ;;  %v2182_v29 = vshll.u32 %v6849_v59, 16  ;;  %v2186_v8 = vshrl.u32 %v6849_v59, 16 }
 0x388   :  { %v1963_v10 = vpop.f32.mrb[42].mxu1 }
 0x389   :  { %v5340_v21 = vadd.f32 %v6672_v24, %v1963_v10  ;;  %v5170_v12 = vpop.f32.mrb[43].mxu1  ;;  %v2067_v53 = vmax.f32 %v5339_v56, 0.0  ;;  %v6920_v62 = vsel %vm837_vm3, %v2328_v6, %v2330_v41 }
 0x38a   :  { %8465 = vst [vmem:[#allocation2_spill] sm:$0xff] %v6920_v62 }
 0x38b   :  { %v2068_v52 = vmax.f32 %v5340_v21, 0.0  ;;  %2268 = vrot.lane.b32.xlu1 %v6843_v30, %s5536_s25  ;;  %2443 = vrot.lane.b32.xlu0 %v6860_v3, %s5536_s25 }
 0x38d   :  { %v6867_v7 = vpack.c.bf16 %v2068_v52, %v2067_v53  ;;  %v2184_v53 = vrot.slane %v2182_v29, 1 }
 0x38e   :  { %v1968_v31 = vpop.f32.mrb[44].mxu1 }
 0x38f   :  { %v5341_v4 = vadd.f32 %v6672_v24, %v1968_v31  ;;  %2398 = vrot.lane.b32.xlu1 %v6813_v18, %s5534_s0  ;;  %2521 = vrot.lane.b32.xlu0 %v6870_v36, %s5534_s0  ;;  %v5173_v34 = vpop.f32.mrb[45].mxu1  ;;  %v2180_v31 = vor.u32 %v2178_v25, %v2176_v13 }
 0x390   :  { %v1971_v39 = vpop.f32.mrb[46].mxu1 }
 0x391   :  { %v5342_v9 = vadd.f32 %v6672_v24, %v1971_v39  ;;  %v5174_v43 = vpop.f32.mrb[47].mxu1  ;;  %v2069_v1 = vmax.f32 %v5341_v4, 0.0  ;;  %v6930_v39 = vsel %vm600_vm4, %v2180_v31, %v2184_v53 }
 0x393   :  { %v2070_v40 = vmax.f32 %v5342_v9, 0.0  ;;  %2362 = vrot.lane.b32.xlu1 %v6860_v3, %s5535_s22  ;;  %2481 = vrot.lane.b32.xlu0 %v6830_v54, %s5535_s22 }
 0x395   :  { %v6890_v5 = vpack.c.bf16 %v2070_v40, %v2069_v1  ;;  %v2332_v40 = vrot.slane %v6867_v7, 1 }
 0x396   :  { %v1976_v2 = vpop.f32.mrb[48].mxu1 }
 0x397   :  { %v5343_v48 = vadd.f32 %v6672_v24, %v1976_v2  ;;  %2270 = vrot.lane.b32.xlu1 %v6870_v36, %s5536_s25  ;;  %2445 = vrot.lane.b32.xlu0 %v6893_v51, %s5536_s25  ;;  %v5177_v47 = vpop.f32.mrb[49].mxu1  ;;  %v2190_v2 = vshll.u32 %v6867_v7, 16  ;;  %v2334_v25 = vrot.slane %v6890_v5, 1 }
 0x398   :  { %v1979_v33 = vpop.f32.mrb[50].mxu1 }
 0x399   :  { %v5344_v20 = vadd.f32 %v6672_v24, %v1979_v33  ;;  %v5178_v44 = vpop.f32.mrb[51].mxu1  ;;  %v2071_v46 = vmax.f32 %v5343_v48, 0.0  ;;  %v6947_v33 = vsel %vm837_vm3, %v2330_v41, %v2332_v40 }
 0x39a   :  { %8466 = vst [vmem:[#allocation3_spill] sm:$0xff] %v6947_v33 }
 0x39b   :  { %v2072_v23 = vmax.f32 %v5344_v20, 0.0  ;;  %2400 = vrot.lane.b32.xlu1 %v6830_v54, %s5534_s0  ;;  %2523 = vrot.lane.b32.xlu0 %v6903_v0, %s5534_s0  ;;  %v2192_v20 = vrot.slane %v2190_v2, 1 }
 0x39d   :  { %v6909_v14 = vpack.c.bf16 %v2072_v23, %v2071_v46 }
 0x39e   :  { %v1984_v27 = vpop.f32.mrb[52].mxu1 }
 0x39f   :  { %v5345_v56 = vadd.f32 %v6672_v24, %v1984_v27  ;;  %2364 = vrot.lane.b32.xlu1 %v6893_v51, %s5535_s22  ;;  %2483 = vrot.lane.b32.xlu0 %v6849_v59, %s5535_s22  ;;  %v5181_v26 = vpop.f32.mrb[53].mxu1  ;;  %v2188_v27 = vor.u32 %v2186_v8, %v2184_v53  ;;  %v2198_v53 = vshll.u32 %v6890_v5, 16 }
 0x3a0   :  { %v1987_v10 = vpop.f32.mrb[54].mxu1 }
 0x3a1   :  { %v5346_v21 = vadd.f32 %v6672_v24, %v1987_v10  ;;  %v5182_v12 = vpop.f32.mrb[55].mxu1  ;;  %v2073_v52 = vmax.f32 %v5345_v56, 0.0  ;;  %v6957_v41 = vsel %vm600_vm4, %v2188_v27, %v2192_v20 }
 0x3a3   :  { %v2074_v63 = vmax.f32 %v5346_v21, 0.0  ;;  %2272 = vrot.lane.b32.xlu1 %v6903_v0, %s5536_s25  ;;  %2447 = vrot.lane.b32.xlu0 %v6920_v62, %s5536_s25 }
 0x3a5   :  { %v6927_v4 = vpack.c.bf16 %v2074_v63, %v2073_v52 }
 0x3a6   :  { %v1992_v34 = vpop.f32.mrb[56].mxu1 }
 0x3a7   :  { %v5347_v9 = vadd.f32 %v6672_v24, %v1992_v34  ;;  %2402 = vrot.lane.b32.xlu1 %v6849_v59, %s5534_s0  ;;  %2525 = vrot.lane.b32.xlu0 %v6930_v39, %s5534_s0  ;;  %v5185_v43 = vpop.f32.mrb[57].mxu1 }
 0x3a8   :  { %v1995_v6 = vpop.f32.mrb[58].mxu1 }
 0x3a9   :  { %v5348_v50 = vadd.f32 %v6672_v24, %v1995_v6  ;;  %v5186_v1 = vpop.f32.mrb[59].mxu1  ;;  %v2075_v16 = vmax.f32 %v5347_v9, 0.0  ;;  %v6976_v6 = vsel %vm837_vm3, %v2332_v40, %v2334_v25 }
 0x3aa   :  { %8467 = vst [vmem:[#allocation4_spill] sm:$0xff] %v6976_v6  ;;  %v2200_v1 = vrot.slane %v2198_v53, 1 }
 0x3ab   :  { %v2076_v13 = vmax.f32 %v5348_v50, 0.0  ;;  %2366 = vrot.lane.b32.xlu1 %v6920_v62, %s5535_s22  ;;  %2485 = vrot.lane.b32.xlu0 %v6867_v7, %s5535_s22  ;;  %v2194_v50 = vshrl.u32 %v6867_v7, 16 }
 0x3ad   :  { %v6944_v48 = vpack.c.bf16 %v2076_v13, %v2075_v16  ;;  %v2196_v13 = vor.u32 %v2194_v50, %v2192_v20 }
 0x3ae   :  { %v2000_v47 = vpop.f32.mrb[60].mxu1 }
 0x3af   :  { %v5349_v44 = vadd.f32 %v6672_v24, %v2000_v47  ;;  %2274 = vrot.lane.b32.xlu1 %v6930_v39, %s5536_s25  ;;  %2449 = vrot.lane.b32.xlu0 %v6947_v33, %s5536_s25  ;;  %v5189_v46 = vpop.f32.mrb[61].mxu1  ;;  %v2222_v62 = vshll.u32 %v6944_v48, 16 }
 0x3b0   :  { %v2003_v23 = vpop.f32.mrb[62].mxu1  ;;  %v6986_v46 = vsel %vm600_vm4, %v2196_v13, %v2200_v1 }
 0x3b1   :  { %v5350_v29 = vadd.f32 %v6672_v24, %v2003_v23  ;;  %v5190_v56 = vpop.f32.mrb[63].mxu1  ;;  %v2077_v26 = vmax.f32 %v5349_v44, 0.0 }
 0x3b3   :  { %v2078_v10 = vmax.f32 %v5350_v29, 0.0  ;;  %2404 = vrot.lane.b32.xlu1 %v6867_v7, %s5534_s0  ;;  %2527 = vrot.lane.b32.xlu0 %v6957_v41, %s5534_s0 }
 0x3b5   :  { %v6963_v21 = vpack.c.bf16 %v2078_v10, %v2077_v26  ;;  %v2336_v10 = vrot.slane %v6909_v14, 1 }
 0x3b6   :  { %v2008_v12 = vpop.f32.mrb[64].mxu1 }
 0x3b7   :  { %v5351_v52 = vadd.f32 %v6672_v24, %v2008_v12  ;;  %2368 = vrot.lane.b32.xlu1 %v6947_v33, %s5535_s22  ;;  %2487 = vrot.lane.b32.xlu0 %v6890_v5, %s5535_s22  ;;  %v5193_v63 = vpop.f32.mrb[65].mxu1  ;;  %v2206_v12 = vshll.u32 %v6909_v14, 16  ;;  %v7005_v50 = vsel %vm837_vm3, %v2334_v25, %v2336_v10 }
 0x3b8   :  { %v2011_v31 = vpop.f32.mrb[66].mxu1  ;;  %8468 = vst [vmem:[#allocation7_spill] sm:$0xff] %v7005_v50 }
 0x3b9   :  { %v5352_v34 = vadd.f32 %v6672_v24, %v2011_v31  ;;  %v6973_v9 = vpop.permute.xlu1 %2386  ;;  %v5194_v43 = vpop.f32.mrb[67].mxu1  ;;  %v2079_v2 = vmax.f32 %v5351_v52, 0.0 }
 0x3bb   :  { %v2080_v16 = vmax.f32 %v5352_v34, 0.0  ;;  %2276 = vrot.lane.b32.xlu1 %v6957_v41, %s5536_s25  ;;  %2451 = vrot.lane.b32.xlu0 %v6976_v6, %s5536_s25 }
 0x3bd   :  { %v6983_v47 = vpack.c.bf16 %v2080_v16, %v2079_v2  ;;  %v2351_v8 = vpop.permute.xlu1 %2350  ;;  %v2202_v2 = vshrl.u32 %v6890_v5, 16  ;;  %v2208_v16 = vrot.slane %v2206_v12, 1 }
 0x3be   :  { %v2016_v44 = vpop.f32.mrb[68].mxu1 }
 0x3bf   :  { %v5353_v40 = vadd.f32 %v6672_v24, %v2016_v44  ;;  %2406 = vrot.lane.b32.xlu1 %v6890_v5, %s5534_s0  ;;  %2529 = vrot.lane.b32.xlu0 %v6986_v46, %s5534_s0  ;;  %v5197_v23 = vpop.f32.mrb[69].mxu1 }
 0x3c0   :  { %v2019_v27 = vpop.f32.mrb[70].mxu1  ;;  %v2204_v23 = vor.u32 %v2202_v2, %v2200_v1 }
 0x3c1   :  { %v5354_v29 = vadd.f32 %v6672_v24, %v2019_v27  ;;  %v2259_v20 = vpop.permute.xlu1 %2258  ;;  %v2470_v56 = vpop.permute.xlu0 %2469  ;;  %v2081_v53 = vmax.f32 %v5353_v40, 0.0 }
 0x3c2   :  { %v5198_v26 = vpop.f32.mrb[71].mxu1  ;;  %v7019_v12 = vsel %vm600_vm4, %v2204_v23, %v2208_v16  ;;  %v2553_v1 = vsel %vm1113_vm5, %v6687_v57, %v2259_v20 }
 0x3c3   :  { %v2082_v52 = vmax.f32 %v5354_v29, 0.0  ;;  %2370 = vrot.lane.b32.xlu1 %v6976_v6, %s5535_s22  ;;  %2489 = vrot.lane.b32.xlu0 %v6909_v14, %s5535_s22  ;;  %v2589_v20 = vsel %vm1156_vm6, %v2553_v1, %v2351_v8  ;;  %v2210_v6 = vshrl.u32 %v6909_v14, 16  ;;  %v8469_v8 = vrot.slane %v6927_v4, 1 }
 0x3c5   :  { %v7000_v63 = vpack.c.bf16 %v2082_v52, %v2081_v53  ;;  %v7002_v31 = vpop.permute.xlu1 %2388  ;;  %v2434_v34 = vpop.permute.xlu0 %2433  ;;  %v7053_v1 = vsel %vm837_vm3, %v2336_v10, %v8469_v8 }
 0x3c6   :  { %v2024_v43 = vpop.f32.mrb[72].mxu1  ;;  %8470 = vst [vmem:[#allocation8_spill] sm:$0xff] %v7053_v1 }
 0x3c7   :  { %v5355_v13 = vadd.f32 %v6672_v24, %v2024_v43  ;;  %2278 = vrot.lane.b32.xlu1 %v6986_v46, %s5536_s25  ;;  %2453 = vrot.lane.b32.xlu0 %v7005_v50, %s5536_s25  ;;  %v5201_v44 = vpop.f32.mrb[73].mxu1 }
 0x3c8   :  { %v2027_v40 = vpop.f32.mrb[74].mxu1 }
 0x3c9   :  { %v5356_v27 = vadd.f32 %v6672_v24, %v2027_v40  ;;  %v7014_v29 = vpop.permute.xlu1 %2352  ;;  %v7016_v25 = vpop.permute.xlu0 %2471  ;;  %v2083_v53 = vmax.f32 %v5355_v13, 0.0  ;;  %v2680_v40 = vsel %vm1113_vm5, %v6752_v15, %v2434_v34  ;;  %v2214_v13 = vshll.u32 %v6927_v4, 16 }
 0x3ca   :  { %v5202_v26 = vpop.f32.mrb[75].mxu1  ;;  %v2733_v35 = vsel %vm1156_vm6, %v2680_v40, %v2470_v56 }
 0x3cb   :  { %v2084_v52 = vmax.f32 %v5356_v27, 0.0  ;;  %2408 = vrot.lane.b32.xlu1 %v6909_v14, %s5534_s0  ;;  %2531 = vrot.lane.b32.xlu0 %v7019_v12, %s5534_s0 }
 0x3cd   :  { %v7027_v43 = vpack.c.bf16 %v2084_v52, %v2083_v53  ;;  %v2261_v2 = vpop.permute.xlu1 %2260  ;;  %v2436_v44 = vpop.permute.xlu0 %2435 }
 0x3ce   :  { %v2032_v23 = vpop.f32.mrb[76].mxu1 }
 0x3cf   :  { %v5357_v27 = vadd.f32 %v6672_v24, %v2032_v23  ;;  %2372 = vrot.lane.b32.xlu1 %v7005_v50, %s5535_s22  ;;  %2491 = vrot.lane.b32.xlu0 %v6927_v4, %s5535_s22  ;;  %v5205_v26 = vpop.f32.mrb[77].mxu1  ;;  %v2254_v23 = vshll.u32 %v7027_v43, 16 }
 0x3d0   :  { %v2035_v53 = vpop.f32.mrb[78].mxu1  ;;  %v7046_v26 = vrot.slane %v2214_v13, 1 }
 0x3d1   :  { %v5358_v52 = vadd.f32 %v6672_v24, %v2035_v53  ;;  %v7040_v15 = vpop.permute.xlu1 %2390  ;;  %v2514_v34 = vpop.permute.xlu0 %2513  ;;  %v2085_v57 = vmax.f32 %v5357_v27, 0.0  ;;  %v7066_v13 = vrot.slane %v2254_v23, 1 }
 0x3d2   :  { %v5206_v17 = vpop.f32.mrb[79].mxu1  ;;  %v2769_v50 = vsel %vm1199_vm7, %v2733_v35, %v2514_v34  ;;  %v2212_v35 = vor.u32 %v2210_v6, %v2208_v16  ;;  %v2422_v16 = vshrl.u32 %v7027_v43, 16 }
 0x3d3   :  { %v2086_v33 = vmax.f32 %v5358_v52, 0.0  ;;  %3059 = vmatprep.mubr.bf16.mxu0 %v2769_v50  ;;  %2280 = vrot.lane.b32.xlu1 %v7019_v12, %s5536_s25  ;;  %v2625_v17 = vsel %vm1199_vm7, %v2589_v20, %v6973_v9  ;;  %v8428_v9 = vrot.slane %v7027_v43, 1  ;;  %v5513_v52 = vld [vmem:[%s8398_s5 + $0x88] sm:$0xff]  }
 0x3d4   :  { %2455 = vrot.lane.b32.xlu0 %v7053_v1, %s5536_s25  ;;  %3060 = vmatmul.mubr.bf16.vlgmr.msra.gmra.mrb[48].mxu0 %v2625_v17  ;;  %v7070_v27 = vsel %vm600_vm4, %v2212_v35, %v7046_v26  ;;  %v2424_v35 = vor.u32 %v2422_v16, %v7066_v13 }
 0x3d5   :  { %v7059_v56 = vpack.c.bf16 %v2086_v33, %v2085_v57  ;;  %v7061_v40 = vpop.permute.xlu1 %2354  ;;  %v7063_v50 = vpop.permute.xlu0 %2473  ;;  %5212 = vmatpush3.bf16.msra.mxu0 %v6880_v55  ;;  %v2555_v57 = vsel %vm1113_vm5, %v6700_v32, %v2261_v2  ;;  %v2683_v2 = vsel %vm1113_vm5, %v6762_v11, %v2436_v44 }
 0x3d6   :  { %v2040_v10 = vpop.f32.mrb[80].mxu1  ;;  %5213 = vmatprep.subr.bf16.mxu0 %v5513_v52  ;;  %v2591_v11 = vsel %vm1156_vm6, %v2555_v57, %v7014_v29 }
 0x3d7   :  { %v5359_v20 = vadd.f32 %v6672_v24, %v2040_v10  ;;  %2410 = vrot.lane.b32.xlu1 %v6927_v4, %s5534_s0  ;;  %v5209_v33 = vpop.f32.mrb[81].mxu1  ;;  %v2431_v6 = vrot.slane %v7059_v56, 1  ;;  %v2426_v55 = vshll.u32 %v7059_v56, 16  ;;  %v2628_v29 = vsel %vm1199_vm7, %v2591_v11, %v7002_v31 }
 0x3d8   :  { %2533 = vrot.lane.b32.xlu0 %v7070_v27, %s5534_s0  ;;  %v2043_v53 = vpop.f32.mrb[82].mxu1  ;;  %v2340_v33 = vrot.slane %v6944_v48, 1 }
 0x3d9   :  { %v5360_v34 = vadd.f32 %v6672_v24, %v2043_v53  ;;  %v2263_v23 = vpop.permute.xlu1 %2262  ;;  %v2438_v8 = vpop.permute.xlu0 %2437  ;;  %v7090_v17 = vsel %vm837_vm3, %v8428_v9, %v2431_v6  ;;  %v2428_v32 = vrot.slane %v2426_v55, 1  ;;  %v2087_v24 = vmax.f32 %v5359_v20, 0.0  ;;  %5214 = vmatpush3.bf16.msra.mxu0 %v5513_v52 }
 0x3da   :  { %v5210_v10 = vpop.f32.mrb[83].mxu1  ;;  %v2735_v20 = vsel %vm1156_vm6, %v2683_v2, %v7016_v25  ;;  %v2218_v52 = vshrl.u32 %v6927_v4, 16  ;;  %v2505_v25 = vshrl.u32 %v7059_v56, 16 }
 0x3db   :  { %v2088_v53 = vmax.f32 %v5360_v34, 0.0  ;;  %2374 = vrot.lane.b32.xlu1 %v7053_v1, %s5535_s22  ;;  %v7100_v9 = vsel %vm600_vm4, %v2424_v35, %v2428_v32  ;;  %v8471_v10 = vrot.slane %v6927_v4, 1  ;;  %v2224_v1 = vrot.slane %v2222_v62, 1 }
 0x3dc   :  { %2493 = vrot.lane.b32.xlu0 %v6944_v48, %s5535_s22  ;;  %v2220_v62 = vor.u32 %v2218_v52, %v7046_v26  ;;  %v2226_v52 = vshrl.u32 %v6944_v48, 16 }
 0x3dd   :  { %v2109_v44 = vpack.c.bf16 %v2088_v53, %v2087_v24  ;;  %v7106_v16 = vpop.permute.xlu1 %2392  ;;  %v2516_v55 = vpop.permute.xlu0 %2515  ;;  %v7114_v35 = vsel %vm837_vm3, %v8471_v10, %v2340_v33  ;;  %v2507_v53 = vor.u32 %v2505_v25, %v2428_v32 }
 0x3de   :  { %v2772_v34 = vsel %vm1199_vm7, %v2735_v20, %v2516_v55  ;;  %v7131_v31 = vsel %vm600_vm4, %v2220_v62, %v2224_v1  ;;  %v2230_v55 = vshll.u32 %v6963_v21, 16  ;;  %v2228_v25 = vor.u32 %v2226_v52, %v2224_v1 }
 0x3df   :  { %v2509_v51 = vshll.u32 %v2109_v44, 16  ;;  %v2550_v3 = vrot.slane %v2109_v44, 1  ;;  %3067 = vmatprep.mubr.bf16.mxu0 %v2772_v34  ;;  %2282 = vrot.lane.b32.xlu1 %v7070_v27, %s5536_s25  ;;  %v2344_v1 = vrot.slane %v6983_v47, 1 }
 0x3e0   :  { %2457 = vrot.lane.b32.xlu0 %v7114_v35, %s5536_s25  ;;  %3068 = vmatmul.mubr.bf16.gmra.mrb[52].mxu0 %v2628_v29 }
 0x3e1   :  { %v2511_v57 = vrot.slane %v2509_v51, 1  ;;  %v2357_v2 = vpop.permute.xlu1 %2356  ;;  %v2476_v24 = vpop.permute.xlu0 %2475  ;;  %v7126_v44 = vsel %vm837_vm3, %v2431_v6, %v2550_v3  ;;  %v2557_v51 = vsel %vm1113_vm5, %v6720_v60, %v2263_v23  ;;  %v2686_v3 = vsel %vm1113_vm5, %v6789_v38, %v2438_v8 }
 0x3e2   :  { %v2342_v6 = vrot.slane %v6963_v21, 1  ;;  %v2593_v20 = vsel %vm1156_vm6, %v2557_v51, %v7061_v40  ;;  %v2737_v23 = vsel %vm1156_vm6, %v2686_v3, %v7063_v50  ;;  %v2232_v40 = vrot.slane %v2230_v55, 1 }
 0x3e3   :  { %2412 = vrot.lane.b32.xlu1 %v6944_v48, %s5534_s0  ;;  %v7134_v11 = vsel %vm600_vm4, %v2507_v53, %v2511_v57  ;;  %v2631_v10 = vsel %vm1199_vm7, %v2593_v20, %v7040_v15  ;;  %v2238_v51 = vshll.u32 %v6983_v47, 16 }
 0x3e4   :  { %2535 = vrot.lane.b32.xlu0 %v7131_v31, %s5534_s0  ;;  %v7156_v8 = vsel %vm837_vm3, %v2340_v33, %v2342_v6  ;;  %v7166_v57 = vsel %vm600_vm4, %v2228_v25, %v2232_v40 }
 0x3e5   :  { %v2265_v26 = vpop.permute.xlu1 %2264  ;;  %v2440_v32 = vpop.permute.xlu0 %2439 }
 0x3e6   :  { %v2559_v15 = vsel %vm1113_vm5, %v6738_v49, %v2265_v26  ;;  %v2689_v53 = vsel %vm1113_vm5, %v6816_v42, %v2440_v32  ;;  %v7186_v42 = vsel %vm837_vm3, %v2342_v6, %v2344_v1 }
 0x3e7   :  { %2376 = vrot.lane.b32.xlu1 %v7114_v35, %s5535_s22  ;;  %v2595_v3 = vsel %vm1156_vm6, %v2559_v15, %v2357_v2  ;;  %v2739_v49 = vsel %vm1156_vm6, %v2689_v53, %v2476_v24  ;;  %v2246_v15 = vshll.u32 %v7000_v63, 16 }
 0x3e8   :  { %2495 = vrot.lane.b32.xlu0 %v6963_v21, %s5535_s22  ;;  %v2634_v32 = vsel %vm1199_vm7, %v2595_v3, %v7106_v16 }
 0x3e9   :  { %v2395_v34 = vpop.permute.xlu1 %2394  ;;  %v2518_v60 = vpop.permute.xlu0 %2517 }
 0x3ea   :  { %v2775_v38 = vsel %vm1199_vm7, %v2737_v23, %v2518_v60  ;;  %v2234_v60 = vshrl.u32 %v6963_v21, 16  ;;  %v2240_v23 = vrot.slane %v2238_v51, 1 }
 0x3eb   :  { %3075 = vmatprep.mubr.bf16.mxu0 %v2775_v38  ;;  %2284 = vrot.lane.b32.xlu1 %v7131_v31, %s5536_s25 }
 0x3ec   :  { %2459 = vrot.lane.b32.xlu0 %v7156_v8, %s5536_s25  ;;  %3076 = vmatmul.mubr.bf16.gmra.mrb[56].mxu0 %v2631_v10  ;;  %v2236_v38 = vor.u32 %v2234_v60, %v2232_v40  ;;  %v2346_v40 = vrot.slane %v7000_v63, 1 }
 0x3ed   :  { %v2359_v50 = vpop.permute.xlu1 %2358  ;;  %v2478_v29 = vpop.permute.xlu0 %2477 }
 0x3ee   :  { %v7196_v10 = vsel %vm600_vm4, %v2236_v38, %v2240_v23 }
 0x3ef   :  { %2414 = vrot.lane.b32.xlu1 %v6963_v21, %s5534_s0 }
 0x3f0   :  { %2537 = vrot.lane.b32.xlu0 %v7166_v57, %s5534_s0 }
 0x3f1   :  { %v2267_v33 = vpop.permute.xlu1 %2266  ;;  %v2442_v62 = vpop.permute.xlu0 %2441 }
 0x3f2   :  { %v2561_v16 = vsel %vm1113_vm5, %v6759_v45, %v2267_v33  ;;  %v2692_v25 = vsel %vm1113_vm5, %v6843_v30, %v2442_v62  ;;  %v7216_v30 = vsel %vm837_vm3, %v2344_v1, %v2346_v40 }
 0x3f3   :  { %2378 = vrot.lane.b32.xlu1 %v7156_v8, %s5535_s22  ;;  %v2597_v53 = vsel %vm1156_vm6, %v2561_v16, %v2359_v50  ;;  %v2741_v45 = vsel %vm1156_vm6, %v2692_v25, %v2478_v29 }
 0x3f4   :  { %2497 = vrot.lane.b32.xlu0 %v6983_v47, %s5535_s22  ;;  %v2637_v62 = vsel %vm1199_vm7, %v2597_v53, %v2395_v34 }
 0x3f5   :  { %v2397_v55 = vpop.permute.xlu1 %2396  ;;  %v2520_v20 = vpop.permute.xlu0 %2519 }
 0x3f6   :  { %v2778_v26 = vsel %vm1199_vm7, %v2739_v49, %v2520_v20  ;;  %v2242_v20 = vshrl.u32 %v6983_v47, 16  ;;  %v2248_v49 = vrot.slane %v2246_v15, 1 }
 0x3f7   :  { %3083 = vmatprep.mubr.bf16.mxu0 %v2778_v26  ;;  %2286 = vrot.lane.b32.xlu1 %v7166_v57, %s5536_s25 }
 0x3f8   :  { %2461 = vrot.lane.b32.xlu0 %v7186_v42, %s5536_s25  ;;  %3084 = vmatmul.mubr.bf16.gmra.mrb[60].mxu0 %v2634_v32  ;;  %v2244_v26 = vor.u32 %v2242_v20, %v2240_v23 }
 0x3f9   :  { %v2361_v2 = vpop.permute.xlu1 %2360  ;;  %v2480_v24 = vpop.permute.xlu0 %2479 }
 0x3fa   :  { %v7225_v32 = vsel %vm600_vm4, %v2244_v26, %v2248_v49 }
 0x3fb   :  { %2416 = vrot.lane.b32.xlu1 %v6983_v47, %s5534_s0 }
 0x3fc   :  { %2539 = vrot.lane.b32.xlu0 %v7196_v10, %s5534_s0 }
 0x3fd   :  { %v2269_v6 = vpop.permute.xlu1 %2268  ;;  %v2444_v52 = vpop.permute.xlu0 %2443 }
 0x3fe   :  { %v2563_v34 = vsel %vm1113_vm5, %v6776_v22, %v2269_v6  ;;  %v2695_v38 = vsel %vm1113_vm5, %v6870_v36, %v2444_v52  ;;  %v2250_v22 = vshrl.u32 %v7000_v63, 16  ;;  %v8472_v36 = vrot.slane %v7027_v43, 1 }
 0x3ff   :  { %2380 = vrot.lane.b32.xlu1 %v7186_v42, %s5535_s22  ;;  %v2599_v23 = vsel %vm1156_vm6, %v2563_v34, %v2361_v2  ;;  %v2743_v15 = vsel %vm1156_vm6, %v2695_v38, %v2480_v24 }
 0x400   :  { %2499 = vrot.lane.b32.xlu0 %v7000_v63, %s5535_s22  ;;  %v7246_v6 = vsel %vm837_vm3, %v2346_v40, %v8472_v36  ;;  %v2640_v52 = vsel %vm1199_vm7, %v2599_v23, %v2397_v55  ;;  %v2252_v2 = vor.u32 %v2250_v22, %v2248_v49 }
 0x401   :  { %v2399_v51 = vpop.permute.xlu1 %2398  ;;  %v2522_v3 = vpop.permute.xlu0 %2521 }
 0x402   :  { %v2781_v33 = vsel %vm1199_vm7, %v2741_v45, %v2522_v3  ;;  %v7253_v45 = vsel %vm600_vm4, %v2252_v2, %v7066_v13 }
 0x403   :  { %3091 = vmatprep.mubr.bf16.mxu0 %v2781_v33  ;;  %2288 = vrot.lane.b32.xlu1 %v7196_v10, %s5536_s25 }
 0x404   :  { %2463 = vrot.lane.b32.xlu0 %v7216_v30, %s5536_s25  ;;  %3092 = vmatmul.mubr.bf16.gmra.mrb[64].mxu0 %v2637_v62 }
 0x405   :  { %v2363_v50 = vpop.permute.xlu1 %2362  ;;  %v2482_v29 = vpop.permute.xlu0 %2481 }
 0x407   :  { %2418 = vrot.lane.b32.xlu1 %v7000_v63, %s5534_s0 }
 0x408   :  { %2541 = vrot.lane.b32.xlu0 %v7225_v32, %s5534_s0 }
 0x409   :  { %v2271_v1 = vpop.permute.xlu1 %2270  ;;  %v2446_v60 = vpop.permute.xlu0 %2445 }
 0x40a   :  { %v2565_v55 = vsel %vm1113_vm5, %v6795_v37, %v2271_v1  ;;  %v2698_v62 = vsel %vm1113_vm5, %v6903_v0, %v2446_v60 }
 0x40b   :  { %2382 = vrot.lane.b32.xlu1 %v7216_v30, %s5535_s22  ;;  %v2601_v13 = vsel %vm1156_vm6, %v2565_v55, %v2363_v50  ;;  %v2745_v26 = vsel %vm1156_vm6, %v2698_v62, %v2482_v29 }
 0x40c   :  { %2501 = vrot.lane.b32.xlu0 %v7027_v43, %s5535_s22  ;;  %v2643_v37 = vsel %vm1199_vm7, %v2601_v13, %v2399_v51 }
 0x40d   :  { %v2401_v16 = vpop.permute.xlu1 %2400  ;;  %v2524_v25 = vpop.permute.xlu0 %2523 }
 0x40e   :  { %v2784_v53 = vsel %vm1199_vm7, %v2743_v15, %v2524_v25 }
 0x40f   :  { %3099 = vmatprep.mubr.bf16.mxu0 %v2784_v53  ;;  %2290 = vrot.lane.b32.xlu1 %v7225_v32, %s5536_s25 }
 0x410   :  { %2465 = vrot.lane.b32.xlu0 %v7246_v6, %s5536_s25  ;;  %3100 = vmatmul.mubr.bf16.gmra.mrb[68].mxu0 %v2640_v52 }
 0x411   :  { %v2365_v24 = vpop.permute.xlu1 %2364  ;;  %v2484_v3 = vpop.permute.xlu0 %2483 }
 0x413   :  { %2292 = vrot.lane.b32.xlu1 %v7253_v45, %s5536_s25 }
 0x414   :  { %2543 = vrot.lane.b32.xlu0 %v7253_v45, %s5534_s0 }
 0x415   :  { %v2273_v40 = vpop.permute.xlu1 %2272  ;;  %v2448_v33 = vpop.permute.xlu0 %2447 }
 0x416   :  { %v2567_v50 = vsel %vm1113_vm5, %v6813_v18, %v2273_v40  ;;  %v2701_v38 = vsel %vm1113_vm5, %v6930_v39, %v2448_v33 }
 0x417   :  { %2384 = vrot.lane.b32.xlu1 %v7246_v6, %s5535_s22  ;;  %v2747_v25 = vsel %vm1156_vm6, %v2701_v38, %v2484_v3 }
 0x418   :  { %2467 = vrot.lane.b32.xlu0 %v7090_v17, %s5536_s25 }
 0x419   :  { %v2403_v20 = vpop.permute.xlu1 %2402  ;;  %v2526_v49 = vpop.permute.xlu0 %2525 }
 0x41a   :  { %v2787_v34 = vsel %vm1199_vm7, %v2745_v26, %v2526_v49 }
 0x41b   :  { %3107 = vmatprep.mubr.bf16.mxu0 %v2787_v34  ;;  %2420 = vrot.lane.b32.xlu1 %v7027_v43, %s5534_s0  ;;  %v2603_v43 = vsel %vm1156_vm6, %v2567_v50, %v2365_v24 }
 0x41c   :  { %2545 = vrot.lane.b32.xlu0 %v7100_v9, %s5534_s0  ;;  %3108 = vmatmul.mubr.bf16.gmra.mrb[72].mxu0 %v2643_v37 }
 0x41d   :  { %v2367_v0 = vpop.permute.xlu1 %2366  ;;  %v2486_v1 = vpop.permute.xlu0 %2485 }
 0x420   :  { %2503 = vrot.lane.b32.xlu0 %v7059_v56, %s5535_s22  ;;  %v2646_v56 = vsel %vm1199_vm7, %v2603_v43, %v2401_v16 }
 0x421   :  { %v2275_v29 = vpop.permute.xlu1 %2274  ;;  %v2450_v60 = vpop.permute.xlu0 %2449 }
 0x422   :  { %v2569_v39 = vsel %vm1113_vm5, %v6830_v54, %v2275_v29 }
 0x423   :  { %v2605_v52 = vsel %vm1156_vm6, %v2569_v39, %v2367_v0 }
 0x424   :  { %2547 = vrot.lane.b32.xlu0 %v7134_v11, %s5534_s0  ;;  %v2704_v11 = vsel %vm1113_vm5, %v6957_v41, %v2450_v60  ;;  %v2649_v16 = vsel %vm1199_vm7, %v2605_v52, %v2403_v20 }
 0x425   :  { %v2405_v51 = vpop.permute.xlu1 %2404  ;;  %v2528_v23 = vpop.permute.xlu0 %2527  ;;  %v2749_v3 = vsel %vm1156_vm6, %v2704_v11, %v2486_v1 }
 0x426   :  { %v2790_v15 = vsel %vm1199_vm7, %v2747_v25, %v2528_v23 }
 0x427   :  { %3115 = vmatprep.mubr.bf16.mxu0 %v2790_v15 }
 0x428   :  { %3116 = vmatmul.mubr.bf16.gmra.mrb[76].mxu0 %v2646_v56 }
 0x429   :  { %v2369_v18 = vpop.permute.xlu1 %2368  ;;  %v2488_v53 = vpop.permute.xlu0 %2487 }
 0x42d   :  { %v2277_v22 = vpop.permute.xlu1 %2276  ;;  %v2452_v36 = vpop.permute.xlu0 %2451 }
 0x42e   :  { %v2571_v54 = vsel %vm1113_vm5, %v6849_v59, %v2277_v22  ;;  %v2707_v41 = vsel %vm1113_vm5, %v6986_v46, %v2452_v36 }
 0x42f   :  { %v2607_v49 = vsel %vm1156_vm6, %v2571_v54, %v2369_v18  ;;  %v2751_v37 = vsel %vm1156_vm6, %v2707_v41, %v2488_v53 }
 0x430   :  { %v2652_v20 = vsel %vm1199_vm7, %v2607_v49, %v2405_v51 }
 0x431   :  { %v2407_v2 = vpop.permute.xlu1 %2406  ;;  %v2530_v24 = vpop.permute.xlu0 %2529 }
 0x432   :  { %v2793_v55 = vsel %vm1199_vm7, %v2749_v3, %v2530_v24 }
 0x433   :  { %3123 = vmatprep.mubr.bf16.mxu0 %v2793_v55 }
 0x434   :  { %3124 = vmatmul.mubr.bf16.gmra.mrb[80].mxu0 %v2649_v16 }
 0x435   :  { %v2371_v40 = vpop.permute.xlu1 %2370  ;;  %v2490_v33 = vpop.permute.xlu0 %2489 }
 0x439   :  { %v2279_v62 = vpop.permute.xlu1 %2278  ;;  %v2454_v13 = vpop.permute.xlu0 %2453 }
 0x43a   :  { %v2573_v29 = vsel %vm1113_vm5, %v6867_v7, %v2279_v62  ;;  %v2710_v46 = vsel %vm1113_vm5, %v7019_v12, %v2454_v13 }
 0x43b   :  { %v2609_v43 = vsel %vm1156_vm6, %v2573_v29, %v2371_v40  ;;  %v2753_v25 = vsel %vm1156_vm6, %v2710_v46, %v2490_v33 }
 0x43c   :  { %v2655_v51 = vsel %vm1199_vm7, %v2609_v43, %v2407_v2 }
 0x43d   :  { %v2409_v26 = vpop.permute.xlu1 %2408  ;;  %v2532_v34 = vpop.permute.xlu0 %2531 }
 0x43e   :  { %v2796_v0 = vsel %vm1199_vm7, %v2751_v37, %v2532_v34 }
 0x43f   :  { %3131 = vmatprep.mubr.bf16.mxu0 %v2796_v0 }
 0x440   :  { %3132 = vmatmul.mubr.bf16.gmra.mrb[84].mxu0 %v2652_v20 }
 0x441   :  { %v2373_v1 = vpop.permute.xlu1 %2372  ;;  %v2492_v50 = vpop.permute.xlu0 %2491 }
 0x445   :  { %v2281_v59 = vpop.permute.xlu1 %2280 }
 0x446   :  { %v2456_v60 = vpop.permute.xlu0 %2455  ;;  %v2575_v7 = vsel %vm1113_vm5, %v6890_v5, %v2281_v59 }
 0x447   :  { %v2713_v12 = vsel %vm1113_vm5, %v7070_v27, %v2456_v60  ;;  %v2611_v36 = vsel %vm1156_vm6, %v2575_v7, %v2373_v1 }
 0x448   :  { %v2755_v52 = vsel %vm1156_vm6, %v2713_v12, %v2492_v50  ;;  %v2658_v2 = vsel %vm1199_vm7, %v2611_v36, %v2409_v26 }
 0x449   :  { %v2411_v38 = vpop.permute.xlu1 %2410 }
 0x44a   :  { %v2534_v23 = vpop.permute.xlu0 %2533 }
 0x44b   :  { %v2799_v15 = vsel %vm1199_vm7, %v2753_v25, %v2534_v23 }
 0x44c   :  { %3139 = vmatprep.mubr.bf16.mxu0 %v2799_v15 }
 0x44d   :  { %3140 = vmatmul.mubr.bf16.gmra.mrb[88].mxu0 %v2655_v51  ;;  %v2375_v56 = vpop.permute.xlu1 %2374 }
 0x44e   :  { %v2494_v18 = vpop.permute.xlu0 %2493 }
 0x451   :  { %v2283_v53 = vpop.permute.xlu1 %2282 }
 0x452   :  { %v2458_v39 = vpop.permute.xlu0 %2457  ;;  %v2577_v5 = vsel %vm1113_vm5, %v6909_v14, %v2283_v53 }
 0x453   :  { %v2716_v27 = vsel %vm1113_vm5, %v7131_v31, %v2458_v39  ;;  %v2613_v54 = vsel %vm1156_vm6, %v2577_v5, %v2375_v56 }
 0x454   :  { %v2757_v13 = vsel %vm1156_vm6, %v2716_v27, %v2494_v18  ;;  %v2661_v49 = vsel %vm1199_vm7, %v2613_v54, %v2411_v38 }
 0x455   :  { %v2413_v22 = vpop.permute.xlu1 %2412 }
 0x456   :  { %v2536_v11 = vpop.permute.xlu0 %2535 }
 0x457   :  { %v2802_v24 = vsel %vm1199_vm7, %v2755_v52, %v2536_v11 }
 0x458   :  { %3147 = vmatprep.mubr.bf16.mxu0 %v2802_v24 }
 0x459   :  { %3148 = vmatmul.mubr.bf16.gmra.mrb[92].mxu0 %v2658_v2  ;;  %v2377_v3 = vpop.permute.xlu1 %2376 }
 0x45a   :  { %v2496_v55 = vpop.permute.xlu0 %2495 }
 0x45d   :  { %v2285_v16 = vpop.permute.xlu1 %2284 }
 0x45e   :  { %v2460_v40 = vpop.permute.xlu0 %2459  ;;  %v2579_v14 = vsel %vm1113_vm5, %v6927_v4, %v2285_v16 }
 0x45f   :  { %v2719_v31 = vsel %vm1113_vm5, %v7166_v57, %v2460_v40  ;;  %v2615_v1 = vsel %vm1156_vm6, %v2579_v14, %v2377_v3 }
 0x460   :  { %v2759_v59 = vsel %vm1156_vm6, %v2719_v31, %v2496_v55  ;;  %v2664_v60 = vsel %vm1199_vm7, %v2615_v1, %v2413_v22 }
 0x461   :  { %v2415_v33 = vpop.permute.xlu1 %2414 }
 0x462   :  { %v2538_v62 = vpop.permute.xlu0 %2537 }
 0x463   :  { %v2805_v41 = vsel %vm1199_vm7, %v2757_v13, %v2538_v62 }
 0x464   :  { %3155 = vmatprep.mubr.bf16.mxu0 %v2805_v41 }
 0x465   :  { %3156 = vmatmul.mubr.bf16.gmra.mrb[96].mxu0 %v2661_v49  ;;  %v2379_v26 = vpop.permute.xlu1 %2378 }
 0x466   :  { %v2498_v34 = vpop.permute.xlu0 %2497 }
 0x469   :  { %v2287_v37 = vpop.permute.xlu1 %2286 }
 0x46a   :  { %v2462_v0 = vpop.permute.xlu0 %2461  ;;  %v2581_v4 = vsel %vm1113_vm5, %v6944_v48, %v2287_v37 }
 0x46b   :  { %v2722_v57 = vsel %vm1113_vm5, %v7196_v10, %v2462_v0  ;;  %v2617_v15 = vsel %vm1156_vm6, %v2581_v4, %v2379_v26  ;;  %v8473_v0 = vld [vmem:[#allocation6_spill] sm:$0xff] }
 0x46c   :  { %v2761_v56 = vsel %vm1156_vm6, %v2722_v57, %v2498_v34  ;;  %v2667_v53 = vsel %vm1199_vm7, %v2617_v15, %v2415_v33 }
 0x46d   :  { %v2417_v20 = vpop.permute.xlu1 %2416 }
 0x46e   :  { %v2540_v50 = vpop.permute.xlu0 %2539 }
 0x46f   :  { %v2808_v29 = vsel %vm1199_vm7, %v2759_v59, %v2540_v50  ;;  %v8476_v59 = vld [vmem:[#allocation3_spill] sm:$0xff] }
 0x470   :  { %3163 = vmatprep.mubr.bf16.mxu0 %v2808_v29 }
 0x471   :  { %3164 = vmatmul.mubr.bf16.gmra.mrb[100].mxu0 %v2664_v60  ;;  %v2381_v46 = vpop.permute.xlu1 %2380 }
 0x472   :  { %v2500_v38 = vpop.permute.xlu0 %2499 }
 0x475   :  { %v2289_v43 = vpop.permute.xlu1 %2288 }
 0x476   :  { %v2464_v23 = vpop.permute.xlu0 %2463  ;;  %v2583_v48 = vsel %vm1113_vm5, %v6963_v21, %v2289_v43  ;;  %v8479_v43 = vld [vmem:[#allocation8_spill] sm:$0xff] }
 0x477   :  { %v2725_v10 = vsel %vm1113_vm5, %v7225_v32, %v2464_v23  ;;  %v2619_v36 = vsel %vm1156_vm6, %v2583_v48, %v2381_v46  ;;  %v8478_v46 = vld [vmem:[#allocation7_spill] sm:$0xff] }
 0x478   :  { %v2763_v52 = vsel %vm1156_vm6, %v2725_v10, %v2500_v38  ;;  %v2670_v2 = vsel %vm1199_vm7, %v2619_v36, %v2417_v20  ;;  %v8474_v20 = vld [vmem:[#allocation5_spill] sm:$0xff] }
 0x479   :  { %v2419_v25 = vpop.permute.xlu1 %2418 }
 0x47a   :  { %v2542_v51 = vpop.permute.xlu0 %2541 }
 0x47b   :  { %v2811_v18 = vsel %vm1199_vm7, %v2761_v56, %v2542_v51 }
 0x47c   :  { %3171 = vmatprep.mubr.bf16.mxu0 %v2811_v18 }
 0x47d   :  { %3172 = vmatmul.mubr.bf16.gmra.mrb[104].mxu0 %v2667_v53  ;;  %v2383_v7 = vpop.permute.xlu1 %2382 }
 0x47e   :  { %v2502_v39 = vpop.permute.xlu0 %2501 }
 0x481   :  { %v2291_v22 = vpop.permute.xlu1 %2290 }
 0x482   :  { %v2466_v12 = vpop.permute.xlu0 %2465  ;;  %v2585_v21 = vsel %vm1113_vm5, %v6983_v47, %v2291_v22 }
 0x483   :  { %v2728_v32 = vsel %vm1113_vm5, %v7253_v45, %v2466_v12  ;;  %v2621_v16 = vsel %vm1156_vm6, %v2585_v21, %v2383_v7 }
 0x484   :  { %v2765_v40 = vsel %vm1156_vm6, %v2728_v32, %v2502_v39  ;;  %v2673_v54 = vsel %vm1199_vm7, %v2621_v16, %v2419_v25  ;;  %v8480_v32 = vmov 0.0   ;;  %v7453_v16 = vld [vmem:[%s8400_s7 + $0x88] sm:$0xff]  }
 0x485   :  { %v2293_v3 = vpop.permute.xlu1 %2292 }
 0x486   :  { %v2544_v11 = vpop.permute.xlu0 %2543  ;;  %v2587_v45 = vsel %vm1113_vm5, %v7000_v63, %v2293_v3 }
 0x487   :  { %v2814_v24 = vsel %vm1199_vm7, %v2763_v52, %v2544_v11 }
 0x488   :  { %3179 = vmatprep.mubr.bf16.mxu0 %v2814_v24 }
 0x489   :  { %3180 = vmatmul.mubr.bf16.gmra.mrb[108].mxu0 %v2670_v2  ;;  %v2385_v27 = vpop.permute.xlu1 %2384 }
 0x48a   :  { %v2468_v55 = vpop.permute.xlu0 %2467  ;;  %v2623_v26 = vsel %vm1156_vm6, %v2587_v45, %v2385_v27 }
 0x48b   :  { %v2731_v47 = vsel %vm1113_vm5, %v7100_v9, %v2468_v55  ;;  %v7446_v55 = vld [vmem:[%s8400_s7 + $0x80] sm:$0xff]  }
 0x48c   :  { %5317 = vmatpush3.bf16.msra.mxu1 %v7446_v55 }
 0x48d   :  { %v2421_v13 = vpop.permute.xlu1 %2420  ;;  %5316 = vmatprep.subr.bf16.mxu1 %v8480_v32 }
 0x48e   :  { %v2546_v5 = vpop.permute.xlu0 %2545  ;;  %v2676_v37 = vsel %vm1199_vm7, %v2623_v26, %v2421_v13 }
 0x48f   :  { %v2817_v33 = vsel %vm1199_vm7, %v2765_v40, %v2546_v5 }
 0x490   :  { %3187 = vmatprep.mubr.bf16.mxu0 %v2817_v33  ;;  %5318 = vmatpush3.bf16.msra.mxu1 %v7453_v16 }
 0x491   :  { %3188 = vmatmul.mubr.bf16.gmra.mrb[112].mxu0 %v2673_v54 }
 0x492   :  { %v2504_v62 = vpop.permute.xlu0 %2503 }
 0x493   :  { %v2767_v41 = vsel %vm1156_vm6, %v2731_v47, %v2504_v62 }
 0x496   :  { %v2548_v49 = vpop.permute.xlu0 %2547 }
 0x497   :  { %v2820_v34 = vsel %vm1199_vm7, %v2767_v41, %v2548_v49 }
 0x498   :  { %3195 = vmatprep.mubr.bf16.mxu0 %v2820_v34 }
 0x499   :  { %3196 = vmatmul.mubr.bf16.gmra.mrb[116].mxu0 %v2676_v37 }
 0x49a   :  { %5215 = vmatprep.mubr.msk.bf16.mxu0 %vm1113_vm5, %v6749_v58  ;;  %v8475_v58 = vld [vmem:[#allocation2_spill] sm:$0xff] }
 0x4a1   :  { %5216 = vmatmul.mubr.msk.bf16.vlgmr.msra.gmra.mrb[120].mxu0 %vm1113_vm5, %v6779_v28 }
 0x4a2   :  { %5219 = vmatprep.mubr.msk.bf16.mxu0 %vm1113_vm5, %v6806_v61 }
 0x4a7   :  { %v7373_v63 = vpop.f32.mrb[48].mxu0 }
 0x4a8   :  { %v3063_v9 = vpop.f32.mrb[49].mxu0 }
 0x4a9   :  { %5220 = vmatmul.mubr.msk.bf16.gmra.mrb[124].mxu0 %vm1113_vm5, %v6833_v19  ;;  %v7377_v14 = vpop.f32.mrb[50].mxu0  ;;  %v8477_v19 = vld [vmem:[#allocation4_spill] sm:$0xff] }
 0x4aa   :  { %5223 = vmatprep.mubr.msk.bf16.mxu0 %vm1113_vm5, %v8473_v0  ;;  %v3066_v31 = vpop.f32.mrb[51].mxu0 }
 0x4b1   :  { %5224 = vmatmul.mubr.msk.bf16.gmra.mrb[128].mxu0 %vm1113_vm5, %v8474_v20 }
 0x4b2   :  { %5227 = vmatprep.mubr.msk.bf16.mxu0 %vm1113_vm5, %v8475_v58 }
 0x4b3   :  { %v7385_v28 = vpop.f32.mrb[52].mxu0 }
 0x4b4   :  { %v3071_v61 = vpop.f32.mrb[53].mxu0 }
 0x4b5   :  { %v7387_v1 = vpop.f32.mrb[54].mxu0 }
 0x4b6   :  { %v3074_v50 = vpop.f32.mrb[55].mxu0 }
 0x4b9   :  { %5228 = vmatmul.mubr.msk.bf16.gmra.mrb[132].mxu0 %vm1113_vm5, %v8476_v59 }
 0x4ba   :  { %5231 = vmatprep.mubr.msk.bf16.mxu0 %vm1113_vm5, %v8477_v19 }
 0x4bf   :  { %v7393_v29 = vpop.f32.mrb[56].mxu0 }
 0x4c0   :  { %v3079_v60 = vpop.f32.mrb[57].mxu0 }
 0x4c1   :  { %5232 = vmatmul.mubr.msk.bf16.gmra.mrb[136].mxu0 %vm1113_vm5, %v8478_v46  ;;  %v7397_v38 = vpop.f32.mrb[58].mxu0 }
 0x4c2   :  { %5235 = vmatprep.mubr.msk.bf16.mxu0 %vm1113_vm5, %v8479_v43  ;;  %v3082_v4 = vpop.f32.mrb[59].mxu0 }
 0x4c9   :  { %5236 = vmatmul.mubr.msk.bf16.gmra.mrb[140].mxu0 %vm1113_vm5, %v7114_v35 }
 0x4ca   :  { %5239 = vmatprep.mubr.msk.bf16.mxu0 %vm1113_vm5, %v7156_v8 }
 0x4cb   :  { %v7405_v23 = vpop.f32.mrb[60].mxu0 }
 0x4cc   :  { %v3087_v57 = vpop.f32.mrb[61].mxu0 }
 0x4cd   :  { %v7407_v25 = vpop.f32.mrb[62].mxu0 }
 0x4ce   :  { %v3090_v15 = vpop.f32.mrb[63].mxu0 }
 0x4cf   :  { %v5516_v15 = vld [vmem:[%s8400_s7 + $0x40] sm:$0xff]  }
 0x4d0   :  { %4948 = vmatprep.subr.bf16.mxu0 %v5516_v15 }
 0x4d1   :  { %5240 = vmatmul.mubr.msk.bf16.gmra.mrb[144].mxu0 %vm1113_vm5, %v7186_v42 }
 0x4d2   :  { %5243 = vmatprep.mubr.msk.bf16.mxu0 %vm1113_vm5, %v7216_v30 }
 0x4d7   :  { %v7413_v51 = vpop.f32.mrb[64].mxu0 }
 0x4d8   :  { %v3095_v56 = vpop.f32.mrb[65].mxu0 }
 0x4d9   :  { %5244 = vmatmul.mubr.msk.bf16.gmra.mrb[148].mxu0 %vm1113_vm5, %v7246_v6  ;;  %v7417_v35 = vpop.f32.mrb[66].mxu0  ;;  %v5517_v56 = vld [vmem:[%s8400_s7] sm:$0xff]  }
 0x4da   :  { %5247 = vmatprep.mubr.msk.bf16.mxu0 %vm1113_vm5, %v7090_v17  ;;  %v3098_v8 = vpop.f32.mrb[67].mxu0  ;;  %4949 = vmatpush3.bf16.msra.mxu0 %v5517_v56 }
 0x4e1   :  { %5248 = vmatmul.mubr.msk.bf16.gmra.mrb[152].mxu0 %vm1113_vm5, %v7126_v44 }
 0x4e3   :  { %v7423_v18 = vpop.f32.mrb[68].mxu0 }
 0x4e4   :  { %v3103_v42 = vpop.f32.mrb[69].mxu0 }
 0x4e5   :  { %v7425_v53 = vpop.f32.mrb[70].mxu0 }
 0x4e6   :  { %v3106_v30 = vpop.f32.mrb[71].mxu0 }
 0x4ef   :  { %v7427_v7 = vpop.f32.mrb[72].mxu0 }
 0x4f0   :  { %v3111_v39 = vpop.f32.mrb[73].mxu0 }
 0x4f1   :  { %v7429_v48 = vpop.f32.mrb[74].mxu0  ;;  %v5518_v39 = vld [vmem:[%s8400_s7 + $0x48] sm:$0xff]  }
 0x4f2   :  { %v3114_v6 = vpop.f32.mrb[75].mxu0  ;;  %4950 = vmatprep.subr.bf16.mxu0 %v5518_v39 }
 0x4f3   :  { %v5519_v6 = vld [vmem:[%s8400_s7 + $0x8] sm:$0xff]  }
 0x4f4   :  { %4951 = vmatpush3.bf16.msra.mxu0 %v5519_v6 }
 0x4fb   :  { %v7431_v12 = vpop.f32.mrb[76].mxu0 }
 0x4fc   :  { %v3119_v10 = vpop.f32.mrb[77].mxu0 }
 0x4fd   :  { %v7433_v17 = vpop.f32.mrb[78].mxu0 }
 0x4fe   :  { %v3122_v22 = vpop.f32.mrb[79].mxu0 }
 0x4ff   :  { %v7503_v22 = vld [vmem:[%s8401_s6] ss:$0 sm:$0xff] }
 0x500   :  { %v3086_v15 = vadd.f32 %v7503_v22, %v7405_v23 }
 0x507   :  { %v7435_v36 = vpop.f32.mrb[80].mxu0 }
 0x508   :  { %v3127_v44 = vpop.f32.mrb[81].mxu0 }
 0x509   :  { %v7437_v11 = vpop.f32.mrb[82].mxu0  ;;  %v5520_v44 = vld [vmem:[%s8400_s7 + $0x50] sm:$0xff]  }
 0x50a   :  { %v3130_v52 = vpop.f32.mrb[83].mxu0  ;;  %4952 = vmatprep.subr.bf16.mxu0 %v5520_v44  ;;  %v3089_v44 = vadd.f32 %v7503_v22, %v7407_v25  ;;  %v5527_v25 = vld [vmem:[%s8400_s7 + $0x28] sm:$0xff]  }
 0x50b   :  { %v5521_v52 = vld [vmem:[%s8400_s7 + $0x10] sm:$0xff]  }
 0x50c   :  { %4953 = vmatpush3.bf16.msra.mxu0 %v5521_v52 }
 0x513   :  { %v7439_v24 = vpop.f32.mrb[84].mxu0 }
 0x514   :  { %v3135_v2 = vpop.f32.mrb[85].mxu0 }
 0x515   :  { %v7441_v3 = vpop.f32.mrb[86].mxu0  ;;  %v3070_v2 = vadd.f32 %v7503_v22, %v7385_v28  ;;  %v5522_v28 = vld [vmem:[%s8400_s7 + $0x58] sm:$0xff]  }
 0x516   :  { %v3138_v21 = vpop.f32.mrb[87].mxu0  ;;  %4954 = vmatprep.subr.bf16.mxu0 %v5522_v28 }
 0x517   :  { %v3062_v21 = vadd.f32 %v7503_v22, %v7373_v63  ;;  %v5523_v63 = vld [vmem:[%s8400_s7 + $0x18] sm:$0xff]  }
 0x518   :  { %4955 = vmatpush3.bf16.msra.mxu0 %v5523_v63 }
 0x520   :  { %v7456_v5 = vpop.f32.mrb[88].mxu0 }
 0x521   :  { %v3143_v40 = vpop.f32.mrb[89].mxu0 }
 0x522   :  { %v7458_v27 = vpop.f32.mrb[90].mxu0 }
 0x523   :  { %v3146_v33 = vpop.f32.mrb[91].mxu0 }
 0x524   :  { %v3073_v33 = vadd.f32 %v7503_v22, %v7387_v1 }
 0x52c   :  { %v7460_v54 = vpop.f32.mrb[92].mxu0 }
 0x52d   :  { %v3151_v62 = vpop.f32.mrb[93].mxu0 }
 0x52e   :  { %v7462_v47 = vpop.f32.mrb[94].mxu0 }
 0x52f   :  { %v3154_v13 = vpop.f32.mrb[95].mxu0 }
 0x538   :  { %v7464_v45 = vpop.f32.mrb[96].mxu0 }
 0x539   :  { %v3159_v41 = vpop.f32.mrb[97].mxu0 }
 0x53a   :  { %v7466_v49 = vpop.f32.mrb[98].mxu0  ;;  %v3065_v41 = vadd.f32 %v7503_v22, %v7377_v14  ;;  %v5524_v14 = vld [vmem:[%s8400_s7 + $0x60] sm:$0xff]  }
 0x53b   :  { %v3162_v26 = vpop.f32.mrb[99].mxu0  ;;  %4956 = vmatprep.subr.bf16.mxu0 %v5524_v14  ;;  %v5529_v14 = vld [vmem:[%s8400_s7 + $0x30] sm:$0xff]  }
 0x544   :  { %v7468_v34 = vpop.f32.mrb[100].mxu0 }
 0x545   :  { %v3167_v37 = vpop.f32.mrb[101].mxu0 }
 0x546   :  { %v7470_v9 = vpop.f32.mrb[102].mxu0 }
 0x547   :  { %v3170_v0 = vpop.f32.mrb[103].mxu0 }
 0x550   :  { %v7472_v31 = vpop.f32.mrb[104].mxu0 }
 0x551   :  { %v3175_v20 = vpop.f32.mrb[105].mxu0 }
 0x552   :  { %v7474_v58 = vpop.f32.mrb[106].mxu0 }
 0x553   :  { %v3178_v61 = vpop.f32.mrb[107].mxu0 }
 0x55c   :  { %v7476_v50 = vpop.f32.mrb[108].mxu0 }
 0x55d   :  { %v3183_v59 = vpop.f32.mrb[109].mxu0 }
 0x55e   :  { %v7478_v19 = vpop.f32.mrb[110].mxu0 }
 0x55f   :  { %v3186_v60 = vpop.f32.mrb[111].mxu0 }
 0x564   :  { %v7480_v46 = vpop.f32.mrb[112].mxu0 }
 0x565   :  { %v3191_v43 = vpop.f32.mrb[113].mxu0 }
 0x566   :  { %v7482_v4 = vpop.f32.mrb[114].mxu0 }
 0x567   :  { %v3194_v57 = vpop.f32.mrb[115].mxu0 }
 0x568   :  { %v5525_v57 = vld [vmem:[%s8400_s7 + $0x20] sm:$0xff]  }
 0x569   :  { %4957 = vmatpush3.bf16.msra.mxu0 %v5525_v57  ;;  %v3102_v57 = vadd.f32 %v7503_v22, %v7423_v18 }
 0x56c   :  { %v7490_v8 = vpop.f32.mrb[116].mxu0 }
 0x56d   :  { %v3199_v42 = vpop.f32.mrb[117].mxu0 }
 0x56e   :  { %v7492_v30 = vpop.f32.mrb[118].mxu0  ;;  %v3078_v42 = vadd.f32 %v7503_v22, %v7393_v29 }
 0x56f   :  { %v3202_v10 = vpop.f32.mrb[119].mxu0 }
 0x570   :  { %v3081_v10 = vadd.f32 %v7503_v22, %v7397_v38  ;;  %v5526_v38 = vld [vmem:[%s8400_s7 + $0x68] sm:$0xff]  }
 0x571   :  { %4958 = vmatprep.subr.bf16.mxu0 %v5526_v38 }
 0x572   :  { %4959 = vmatpush3.bf16.msra.mxu0 %v5527_v25 }
 0x574   :  { %v5217_v40 = vpop.f32.mrb[120].mxu0 }
 0x575   :  { %v3247_v62 = vadd.f32 %v5217_v40, %v3070_v2  ;;  %v3238_v13 = vpop.f32.mrb[121].mxu0 }
 0x576   :  { %v3239_v26 = vadd.f32 %v3238_v13, %v3062_v21  ;;  %v5218_v37 = vpop.f32.mrb[122].mxu0 }
 0x577   :  { %v3250_v0 = vadd.f32 %v5218_v37, %v3073_v33  ;;  %v3241_v20 = vpop.f32.mrb[123].mxu0  ;;  %v3383_v1 = vmax.f32 %v3247_v62, 0.0 }
 0x578   :  { %v3242_v61 = vadd.f32 %v3241_v20, %v3065_v41  ;;  %v3381_v60 = vmax.f32 %v3239_v26, 0.0 }
 0x579   :  { %v3384_v59 = vmax.f32 %v3250_v0, 0.0 }
 0x57a   :  { %v3382_v43 = vmax.f32 %v3242_v61, 0.0 }
 0x57b   :  { %v7533_v56 = vpack.c.bf16 %v3384_v59, %v3383_v1 }
 0x57c   :  { %v7537_v39 = vpack.c.bf16 %v3382_v43, %v3381_v60  ;;  %v5221_v6 = vpop.f32.mrb[124].mxu0  ;;  %v5528_v43 = vld [vmem:[%s8400_s7 + $0x70] sm:$0xff]  }
 0x57d   :  { %v3263_v52 = vadd.f32 %v5221_v6, %v3086_v15  ;;  %3666 = vrot.lane.b32.xlu1 %v7533_v56, %s5534_s0  ;;  %v3254_v23 = vpop.f32.mrb[125].mxu0  ;;  %v3606_v2 = vrot.slane %v7533_v56, 1  ;;  %v3443_v62 = vshll.u32 %v7533_v56, 16  ;;  %4960 = vmatprep.subr.bf16.mxu0 %v5528_v43 }
 0x57e   :  { %v3255_v21 = vadd.f32 %v3254_v23, %v3078_v42  ;;  %v5222_v29 = vpop.f32.mrb[126].mxu0  ;;  %v3605_v40 = vrot.slane %v7537_v39, 1  ;;  %v3438_v33 = vshll.u32 %v7537_v39, 16  ;;  %v3436_v28 = vshrl.u32 %v7537_v39, 16  ;;  %4961 = vmatpush3.bf16.msra.mxu0 %v5529_v14 }
 0x57f   :  { %v3266_v13 = vadd.f32 %v5222_v29, %v3089_v44  ;;  %v3257_v41 = vpop.f32.mrb[127].mxu0  ;;  %v3387_v0 = vmax.f32 %v3263_v52, 0.0  ;;  %v7560_v60 = vrot.slane %v3443_v62, 1  ;;  %v3094_v42 = vadd.f32 %v7503_v22, %v7413_v51 }
 0x580   :  { %v3258_v26 = vadd.f32 %v3257_v41, %v3081_v10  ;;  %v3607_v37 = vsel %vm837_vm3, %v3605_v40, %v3606_v2  ;;  %v3440_v63 = vrot.slane %v3438_v33, 1  ;;  %v3385_v61 = vmax.f32 %v3255_v21, 0.0  ;;  %v5530_v40 = vld [vmem:[%s8400_s7 + $0x78] sm:$0xff]  }
 0x581   :  { %v3388_v20 = vmax.f32 %v3266_v13, 0.0  ;;  %3636 = vrot.lane.b32.xlu1 %v3607_v37, %s5535_s22  ;;  %v3105_v52 = vadd.f32 %v7503_v22, %v7425_v53  ;;  %v3097_v51 = vadd.f32 %v7503_v22, %v7417_v35  ;;  %v5531_v53 = vld [vmem:[%s8400_s7 + $0x38] sm:$0xff]   ;;  %4962 = vmatprep.subr.bf16.mxu0 %v5530_v40 }
 0x582   :  { %v3386_v1 = vmax.f32 %v3258_v26, 0.0  ;;  %v3441_v59 = vor.u32 %v3440_v63, %v3436_v28  ;;  %4963 = vmatpush3.bf16.msra.mxu0 %v5531_v53  ;;  %v3110_v28 = vadd.f32 %v7503_v22, %v7427_v7  ;;  %v3118_v63 = vadd.f32 %v7503_v22, %v7431_v12 }
 0x583   :  { %v7570_v15 = vpack.c.bf16 %v3388_v20, %v3387_v0  ;;  %5251 = vmatprep.subr.bf16.mxu0 %v8480_v32  ;;  %v3121_v7 = vadd.f32 %v7503_v22, %v7433_v17  ;;  %v3113_v12 = vadd.f32 %v7503_v22, %v7429_v48 }
 0x584   :  { %v7574_v6 = vpack.c.bf16 %v3386_v1, %v3385_v61  ;;  %v5225_v10 = vpop.f32.mrb[128].mxu0  ;;  %v3446_v44 = vsel %vm600_vm4, %v3441_v59, %v7560_v60 }
 0x585   :  { %v3279_v23 = vadd.f32 %v5225_v10, %v3102_v57  ;;  %3739 = vrot.lane.b32.xlu0 %v7570_v15, %s5535_s22  ;;  %v3270_v18 = vpop.f32.mrb[129].mxu0  ;;  %3559 = vrot.lane.b32.xlu1 %v3446_v44, %s5536_s25  ;;  %v3610_v59 = vrot.slane %v7570_v15, 1  ;;  %v3459_v44 = vshll.u32 %v7570_v15, 16 }
 0x586   :  { %v3271_v21 = vadd.f32 %v3270_v18, %v3094_v42  ;;  %v5226_v29 = vpop.f32.mrb[130].mxu0  ;;  %v3608_v25 = vrot.slane %v7574_v6, 1  ;;  %v3451_v13 = vshll.u32 %v7574_v6, 16 }
 0x587   :  { %v3282_v33 = vadd.f32 %v5226_v29, %v3105_v52  ;;  %v3273_v62 = vpop.f32.mrb[131].mxu0  ;;  %v3391_v35 = vmax.f32 %v3279_v23, 0.0  ;;  %v7627_v53 = vrot.slane %v3459_v44, 1 }
 0x588   :  { %v3274_v38 = vadd.f32 %v3273_v62, %v3097_v51  ;;  %v3389_v26 = vmax.f32 %v3271_v21, 0.0  ;;  %v3609_v1 = vsel %vm837_vm3, %v3606_v2, %v3608_v25  ;;  %v3453_v43 = vrot.slane %v3451_v13, 1 }
 0x589   :  { %v3392_v41 = vmax.f32 %v3282_v33, 0.0  ;;  %3737 = vrot.lane.b32.xlu0 %v7574_v6, %s5535_s22  ;;  %3670 = vrot.lane.b32.xlu1 %v7570_v15, %s5534_s0  ;;  %v3455_v2 = vshrl.u32 %v7574_v6, 16  ;;  %v7622_v17 = vsel %vm837_vm3, %v3608_v25, %v3610_v59  ;;  %v3134_v33 = vadd.f32 %v7503_v22, %v7439_v24 }
 0x58a   :  { %v3390_v37 = vmax.f32 %v3274_v38, 0.0  ;;  %v3126_v38 = vadd.f32 %v7503_v22, %v7435_v36  ;;  %v3129_v36 = vadd.f32 %v7503_v22, %v7437_v11 }
 0x58b   :  { %v7601_v0 = vpack.c.bf16 %v3392_v41, %v3391_v35  ;;  %v3457_v51 = vor.u32 %v3455_v2, %v3453_v43  ;;  %v3447_v41 = vshrl.u32 %v7533_v56, 16  ;;  %v3142_v2 = vadd.f32 %v7503_v22, %v7456_v5 }
 0x58c   :  { %v7604_v20 = vpack.c.bf16 %v3390_v37, %v3389_v26  ;;  %v5229_v61 = vpop.f32.mrb[132].mxu0  ;;  %v3137_v26 = vadd.f32 %v7503_v22, %v7441_v3 }
 0x58d   :  { %v3295_v14 = vadd.f32 %v5229_v61, %v3118_v63  ;;  %v3286_v57 = vpop.f32.mrb[133].mxu0  ;;  %3707 = vrot.lane.b32.xlu0 %v3609_v1, %s5536_s25  ;;  %3668 = vrot.lane.b32.xlu1 %v7574_v6, %s5534_s0  ;;  %v7639_v35 = vsel %vm600_vm4, %v3457_v51, %v7627_v53  ;;  %v3449_v61 = vor.u32 %v3447_v41, %v7560_v60 }
 0x58e   :  { %v3287_v42 = vadd.f32 %v3286_v57, %v3110_v28  ;;  %v5230_v10 = vpop.f32.mrb[134].mxu0  ;;  %v3467_v41 = vshll.u32 %v7604_v20, 16 }
 0x58f   :  { %v3298_v52 = vadd.f32 %v5230_v10, %v3121_v7  ;;  %v3289_v23 = vpop.f32.mrb[135].mxu0  ;;  %v3395_v21 = vmax.f32 %v3295_v14, 0.0  ;;  %v7652_v3 = vsel %vm600_vm4, %v3449_v61, %v3453_v43  ;;  %v3150_v10 = vadd.f32 %v7503_v22, %v7460_v54 }
 0x590   :  { %v3290_v18 = vadd.f32 %v3289_v23, %v3113_v12  ;;  %v3393_v48 = vmax.f32 %v3287_v42, 0.0  ;;  %v3153_v23 = vadd.f32 %v7503_v22, %v7462_v47  ;;  %v3145_v54 = vadd.f32 %v7503_v22, %v7458_v27 }
 0x591   :  { %v3396_v29 = vmax.f32 %v3298_v52, 0.0  ;;  %3709 = vrot.lane.b32.xlu0 %v7622_v17, %s5536_s25  ;;  %3638 = vrot.lane.b32.xlu1 %v3609_v1, %s5535_s22  ;;  %v3612_v52 = vrot.slane %v7604_v20, 1  ;;  %v3614_v47 = vrot.slane %v7601_v0, 1  ;;  %v3463_v61 = vshrl.u32 %v7570_v15, 16 }
 0x592   :  { %v3394_v40 = vmax.f32 %v3290_v18, 0.0 }
 0x593   :  { %v7631_v62 = vpack.c.bf16 %v3396_v29, %v3395_v21  ;;  %v7686_v27 = vsel %vm837_vm3, %v3610_v59, %v3612_v52  ;;  %v3158_v59 = vadd.f32 %v7503_v22, %v7464_v45  ;;  %v3161_v45 = vadd.f32 %v7503_v22, %v7466_v49 }
 0x594   :  { %v7635_v25 = vpack.c.bf16 %v3394_v40, %v3393_v48  ;;  %v5233_v13 = vpop.f32.mrb[136].mxu0 }
 0x595   :  { %v3311_v37 = vadd.f32 %v5233_v13, %v3134_v33  ;;  %v3302_v28 = vpop.f32.mrb[137].mxu0  ;;  %3775 = vrot.lane.b32.xlu0 %v7639_v35, %s5534_s0  ;;  %3640 = vrot.lane.b32.xlu1 %v7622_v17, %s5535_s22  ;;  %v3618_v29 = vrot.slane %v7631_v62, 1 }
 0x596   :  { %v3303_v24 = vadd.f32 %v3302_v28, %v3126_v38  ;;  %v5234_v63 = vpop.f32.mrb[138].mxu0 }
 0x597   :  { %v3314_v1 = vadd.f32 %v5234_v63, %v3137_v26  ;;  %v3305_v7 = vpop.f32.mrb[139].mxu0  ;;  %v3399_v57 = vmax.f32 %v3311_v37, 0.0 }
 0x598   :  { %v3306_v14 = vadd.f32 %v3305_v7, %v3129_v36  ;;  %v3397_v42 = vmax.f32 %v3303_v24, 0.0  ;;  %v3166_v24 = vadd.f32 %v7503_v22, %v7468_v34  ;;  %v3169_v34 = vadd.f32 %v7503_v22, %v7470_v9 }
 0x599   :  { %v3400_v12 = vmax.f32 %v3314_v1, 0.0  ;;  %3743 = vrot.lane.b32.xlu0 %v7601_v0, %s5535_s22  ;;  %3561 = vrot.lane.b32.xlu1 %v7652_v3, %s5536_s25 }
 0x59a   :  { %v3398_v11 = vmax.f32 %v3306_v14, 0.0  ;;  %v7709_v14 = vsel %vm837_vm3, %v3612_v52, %v3614_v47  ;;  %v3471_v52 = vshrl.u32 %v7604_v20, 16 }
 0x59b   :  { %v7660_v60 = vpack.c.bf16 %v3400_v12, %v3399_v57  ;;  %v3469_v12 = vrot.slane %v3467_v41, 1 }
 0x59c   :  { %v7664_v43 = vpack.c.bf16 %v3398_v11, %v3397_v42  ;;  %v5237_v44 = vpop.f32.mrb[140].mxu0 }
 0x59d   :  { %v3327_v18 = vadd.f32 %v5237_v44, %v3150_v10  ;;  %v3318_v51 = vpop.f32.mrb[141].mxu0  ;;  %3741 = vrot.lane.b32.xlu0 %v7604_v20, %s5535_s22  ;;  %3563 = vrot.lane.b32.xlu1 %v7639_v35, %s5536_s25  ;;  %v3622_v57 = vrot.slane %v7660_v60, 1  ;;  %v3465_v44 = vor.u32 %v3463_v61, %v7627_v53 }
 0x59e   :  { %v3319_v5 = vadd.f32 %v3318_v51, %v3142_v2  ;;  %v5238_v21 = vpop.f32.mrb[142].mxu0  ;;  %v3620_v48 = vrot.slane %v7664_v43, 1 }
 0x59f   :  { %v3330_v40 = vadd.f32 %v5238_v21, %v3153_v23  ;;  %v3321_v33 = vpop.f32.mrb[143].mxu0  ;;  %v3403_v26 = vmax.f32 %v3327_v18, 0.0  ;;  %v3475_v23 = vshll.u32 %v7601_v0, 16 }
 0x5a0   :  { %v3322_v38 = vadd.f32 %v3321_v33, %v3145_v54  ;;  %v7681_v13 = vsel %vm837_vm3, %v3618_v29, %v3620_v48  ;;  %v3401_v28 = vmax.f32 %v3319_v5, 0.0  ;;  %v7724_v9 = vsel %vm837_vm3, %v3620_v48, %v3622_v57 }
 0x5a1   :  { %v3404_v37 = vmax.f32 %v3330_v40, 0.0  ;;  %5276 = vmatmul.mubr.msk.bf16.vlgmr.msra.gmra.mrb[84].mxu1 %vm1113_vm5, %v7681_v13  ;;  %3711 = vrot.lane.b32.xlu0 %v7686_v27, %s5536_s25  ;;  %v7727_v54 = vsel %vm600_vm4, %v3465_v44, %v3469_v12  ;;  %v3473_v5 = vor.u32 %v3471_v52, %v3469_v12  ;;  %v3182_v48 = vadd.f32 %v7503_v22, %v7476_v50 }
 0x5a2   :  { %v3402_v36 = vmax.f32 %v3322_v38, 0.0  ;;  %3674 = vrot.lane.b32.xlu1 %v7601_v0, %s5534_s0  ;;  %5279 = vmatprep.mubr.msk.bf16.mxu1 %vm5538_vm8, %v8480_v32  ;;  %v7735_v38 = vrot.slane %v3475_v23, 1  ;;  %v3190_v52 = vadd.f32 %v7503_v22, %v7480_v46 }
 0x5a3   :  { %v7701_v63 = vpack.c.bf16 %v3404_v37, %v3403_v26  ;;  %v3174_v26 = vadd.f32 %v7503_v22, %v7472_v31  ;;  %v3177_v31 = vadd.f32 %v7503_v22, %v7474_v58 }
 0x5a4   :  { %v7704_v1 = vpack.c.bf16 %v3402_v36, %v3401_v28  ;;  %v5241_v7 = vpop.f32.mrb[144].mxu0  ;;  %v7749_v36 = vsel %vm600_vm4, %v3473_v5, %v7735_v38  ;;  %v3201_v5 = vadd.f32 %v7503_v22, %v7492_v30 }
 0x5a5   :  { %v3343_v42 = vadd.f32 %v5241_v7, %v3166_v24  ;;  %v3334_v11 = vpop.f32.mrb[145].mxu0  ;;  %3713 = vrot.lane.b32.xlu0 %v7709_v14, %s5536_s25  ;;  %v3185_v24 = vadd.f32 %v7503_v22, %v7478_v19 }
 0x5a6   :  { %v3335_v10 = vadd.f32 %v3334_v11, %v3158_v59  ;;  %3672 = vrot.lane.b32.xlu1 %v7604_v20, %s5534_s0  ;;  %v5242_v2 = vpop.f32.mrb[146].mxu0  ;;  %v3624_v59 = vrot.slane %v7704_v1, 1 }
 0x5a7   :  { %v3346_v49 = vadd.f32 %v5242_v2, %v3169_v34  ;;  %v3337_v18 = vpop.f32.mrb[147].mxu0  ;;  %v3407_v21 = vmax.f32 %v3343_v42, 0.0 }
 0x5a8   :  { %v3338_v51 = vadd.f32 %v3337_v18, %v3161_v45  ;;  %v3405_v53 = vmax.f32 %v3335_v10, 0.0  ;;  %v7761_v11 = vsel %vm837_vm3, %v3622_v57, %v3624_v59  ;;  %v3198_v57 = vadd.f32 %v7503_v22, %v7490_v8 }
 0x5a9   :  { %v3408_v40 = vmax.f32 %v3346_v49, 0.0  ;;  %5280 = vmatmul.mubr.msk.bf16.gmra.mrb[88].mxu1 %vm1113_vm5, %v7724_v9  ;;  %3777 = vrot.lane.b32.xlu0 %v7727_v54, %s5534_s0  ;;  %v3626_v18 = vrot.slane %v7701_v63, 1  ;;  %v3193_v8 = vadd.f32 %v7503_v22, %v7482_v4 }
 0x5aa   :  { %v3406_v33 = vmax.f32 %v3338_v51, 0.0  ;;  %3642 = vrot.lane.b32.xlu1 %v7686_v27, %s5535_s22  ;;  %5283 = vmatprep.mubr.msk.bf16.mxu1 %vm5538_vm8, %v8480_v32  ;;  %v3616_v51 = vrot.slane %v7635_v25, 1 }
 0x5ab   :  { %v7741_v41 = vpack.c.bf16 %v3408_v40, %v3407_v21 }
 0x5ac   :  { %v7745_v37 = vpack.c.bf16 %v3406_v33, %v3405_v53  ;;  %v5245_v28 = vpop.f32.mrb[148].mxu0  ;;  %v7795_v30 = vsel %vm837_vm3, %v3614_v47, %v3616_v51 }
 0x5ad   :  { %v3359_v61 = vadd.f32 %v5245_v28, %v3182_v48  ;;  %v3350_v7 = vpop.f32.mrb[149].mxu0  ;;  %3779 = vrot.lane.b32.xlu0 %v7749_v36, %s5534_s0  ;;  %v7790_v28 = vsel %vm837_vm3, %v3624_v59, %v3626_v18  ;;  %v3479_v59 = vshrl.u32 %v7601_v0, 16 }
 0x5ae   :  { %v3351_v50 = vadd.f32 %v3350_v7, %v3174_v26  ;;  %3644 = vrot.lane.b32.xlu1 %v7709_v14, %s5535_s22  ;;  %v5246_v12 = vpop.f32.mrb[150].mxu0 }
 0x5af   :  { %v3362_v45 = vadd.f32 %v5246_v12, %v3185_v24  ;;  %v3353_v34 = vpop.f32.mrb[151].mxu0  ;;  %v3411_v19 = vmax.f32 %v3359_v61, 0.0  ;;  %v3483_v24 = vshll.u32 %v7635_v25, 16  ;;  %v3628_v12 = vrot.slane %v7745_v37, 1 }
 0x5b0   :  { %v3354_v42 = vadd.f32 %v3353_v34, %v3177_v31  ;;  %v3409_v58 = vmax.f32 %v3351_v50, 0.0  ;;  %v7814_v50 = vsel %vm837_vm3, %v3616_v51, %v3618_v29  ;;  %v3481_v34 = vor.u32 %v3479_v59, %v7735_v38 }
 0x5b1   :  { %v3412_v10 = vmax.f32 %v3362_v45, 0.0  ;;  %5284 = vmatmul.mubr.msk.bf16.gmra.mrb[92].mxu1 %vm1113_vm5, %v7761_v11  ;;  %3747 = vrot.lane.b32.xlu0 %v7631_v62, %s5535_s22  ;;  %v3485_v45 = vrot.slane %v3483_v24, 1  ;;  %v3499_v51 = vshll.u32 %v7664_v43, 16  ;;  %v3511_v59 = vshrl.u32 %v7660_v60, 16 }
 0x5b2   :  { %v3410_v2 = vmax.f32 %v3354_v42, 0.0  ;;  %3565 = vrot.lane.b32.xlu1 %v7727_v54, %s5536_s25  ;;  %5287 = vmatprep.mubr.msk.bf16.mxu1 %vm5538_vm8, %v8480_v32  ;;  %v3487_v42 = vshrl.u32 %v7635_v25, 16 }
 0x5b3   :  { %v7773_v44 = vpack.c.bf16 %v3412_v10, %v3411_v19  ;;  %v3491_v19 = vshll.u32 %v7631_v62, 16  ;;  %v7825_v10 = vsel %vm837_vm3, %v3626_v18, %v3628_v12  ;;  %v7828_v29 = vsel %vm600_vm4, %v3481_v34, %v3485_v45 }
 0x5b4   :  { %v7777_v23 = vpack.c.bf16 %v3410_v2, %v3409_v58  ;;  %v5249_v49 = vpop.f32.mrb[152].mxu0  ;;  %v3489_v58 = vor.u32 %v3487_v42, %v3485_v45  ;;  %v3519_v34 = vshrl.u32 %v7704_v1, 16  ;;  %v3523_v42 = vshll.u32 %v7701_v63, 16 }
 0x5b5   :  { %v3375_v21 = vadd.f32 %v5249_v49, %v3198_v57  ;;  %v3366_v40 = vpop.f32.mrb[153].mxu0  ;;  %3745 = vrot.lane.b32.xlu0 %v7635_v25, %s5535_s22  ;;  %v3493_v38 = vrot.slane %v3491_v19, 1  ;;  %v3630_v57 = vrot.slane %v7741_v41, 1 }
 0x5b6   :  { %v3367_v53 = vadd.f32 %v3366_v40, %v3190_v52  ;;  %3567 = vrot.lane.b32.xlu1 %v7749_v36, %s5536_s25  ;;  %v5250_v46 = vpop.f32.mrb[154].mxu0  ;;  %v3632_v49 = vrot.slane %v7777_v23, 1  ;;  %v3501_v40 = vrot.slane %v3499_v51, 1 }
 0x5b7   :  { %v3378_v33 = vadd.f32 %v5250_v46, %v3201_v5  ;;  %v3369_v48 = vpop.f32.mrb[155].mxu0  ;;  %v3415_v61 = vmax.f32 %v3375_v21, 0.0  ;;  %v7839_v2 = vsel %vm600_vm4, %v3489_v58, %v3493_v38  ;;  %v7847_v52 = vsel %vm837_vm3, %v3628_v12, %v3630_v57 }
 0x5b8   :  { %v3370_v26 = vadd.f32 %v3369_v48, %v3193_v8  ;;  %v3413_v22 = vmax.f32 %v3367_v53, 0.0  ;;  %v7863_v18 = vsel %vm837_vm3, %v3630_v57, %v3632_v49  ;;  %v3634_v5 = vrot.slane %v7773_v44, 1 }
 0x5b9   :  { %v3416_v4 = vmax.f32 %v3378_v33, 0.0  ;;  %5288 = vmatmul.mubr.msk.bf16.gmra.mrb[96].mxu1 %vm1113_vm5, %v7790_v28  ;;  %3715 = vrot.lane.b32.xlu0 %v7795_v30, %s5536_s25  ;;  %v3495_v21 = vshrl.u32 %v7631_v62, 16  ;;  %v3503_v53 = vshrl.u32 %v7664_v43, 16  ;;  %v3507_v46 = vshll.u32 %v7660_v60, 16 }
 0x5ba   :  { %v3414_v7 = vmax.f32 %v3370_v26, 0.0  ;;  %3678 = vrot.lane.b32.xlu1 %v7631_v62, %s5534_s0  ;;  %5291 = vmatprep.mubr.msk.bf16.mxu1 %vm5538_vm8, %v8480_v32  ;;  %v7883_v33 = vsel %vm837_vm3, %v3632_v49, %v3634_v5  ;;  %v3525_v57 = vrot.slane %v3523_v42, 1 }
 0x5bb   :  { %v7806_v47 = vpack.c.bf16 %v3416_v4, %v3415_v61  ;;  %v3497_v8 = vor.u32 %v3495_v21, %v3493_v38  ;;  %v3505_v26 = vor.u32 %v3503_v53, %v3501_v40  ;;  %v3509_v24 = vrot.slane %v3507_v46, 1 }
 0x5bc   :  { %v7809_v31 = vpack.c.bf16 %v3414_v7, %v3413_v22  ;;  %v3515_v7 = vshll.u32 %v7704_v1, 16  ;;  %v3531_v53 = vshll.u32 %v7745_v37, 16 }
 0x5bd   :  { %3717 = vrot.lane.b32.xlu0 %v7814_v50, %s5536_s25  ;;  %v7886_v48 = vsel %vm600_vm4, %v3497_v8, %v3501_v40  ;;  %v7897_v61 = vsel %vm600_vm4, %v3505_v26, %v3509_v24  ;;  %v3513_v45 = vor.u32 %v3511_v59, %v3509_v24 }
 0x5be   :  { %3676 = vrot.lane.b32.xlu1 %v7635_v25, %s5534_s0  ;;  %v3705_v4 = vrot.slane %v7809_v31, 1  ;;  %v3517_v12 = vrot.slane %v3515_v7, 1 }
 0x5c0   :  { %v7905_v22 = vsel %vm837_vm3, %v3634_v5, %v3705_v4  ;;  %v7935_v58 = vsel %vm600_vm4, %v3513_v45, %v3517_v12  ;;  %v3521_v38 = vor.u32 %v3519_v34, %v3517_v12  ;;  %v3535_v12 = vshrl.u32 %v7745_v37, 16 }
 0x5c1   :  { %5292 = vmatmul.mubr.msk.bf16.gmra.mrb[100].mxu1 %vm1113_vm5, %v7825_v10  ;;  %3781 = vrot.lane.b32.xlu0 %v7828_v29, %s5534_s0 }
 0x5c2   :  { %3646 = vrot.lane.b32.xlu1 %v7795_v30, %s5535_s22  ;;  %5295 = vmatprep.mubr.msk.bf16.mxu1 %vm5538_vm8, %v8480_v32  ;;  %v7942_v51 = vsel %vm600_vm4, %v3521_v38, %v3525_v57 }
 0x5c5   :  { %3783 = vrot.lane.b32.xlu0 %v7839_v2, %s5534_s0 }
 0x5c6   :  { %3648 = vrot.lane.b32.xlu1 %v7814_v50, %s5535_s22 }
 0x5c9   :  { %5296 = vmatmul.mubr.msk.bf16.gmra.mrb[104].mxu1 %vm1113_vm5, %v7847_v52  ;;  %3751 = vrot.lane.b32.xlu0 %v7660_v60, %s5535_s22 }
 0x5ca   :  { %3569 = vrot.lane.b32.xlu1 %v7828_v29, %s5536_s25  ;;  %5299 = vmatprep.mubr.msk.bf16.mxu1 %vm5538_vm8, %v8480_v32 }
 0x5cd   :  { %3749 = vrot.lane.b32.xlu0 %v7664_v43, %s5535_s22 }
 0x5ce   :  { %3571 = vrot.lane.b32.xlu1 %v7839_v2, %s5536_s25 }
 0x5d1   :  { %5300 = vmatmul.mubr.msk.bf16.gmra.mrb[108].mxu1 %vm1113_vm5, %v7863_v18  ;;  %3719 = vrot.lane.b32.xlu0 %v7681_v13, %s5536_s25 }
 0x5d2   :  { %3682 = vrot.lane.b32.xlu1 %v7660_v60, %s5534_s0  ;;  %5303 = vmatprep.mubr.msk.bf16.mxu1 %vm5538_vm8, %v8480_v32 }
 0x5d5   :  { %3721 = vrot.lane.b32.xlu0 %v7724_v9, %s5536_s25 }
 0x5d6   :  { %3680 = vrot.lane.b32.xlu1 %v7664_v43, %s5534_s0 }
 0x5d9   :  { %5304 = vmatmul.mubr.msk.bf16.gmra.mrb[112].mxu1 %vm1113_vm5, %v7883_v33  ;;  %3785 = vrot.lane.b32.xlu0 %v7886_v48, %s5534_s0 }
 0x5da   :  { %3650 = vrot.lane.b32.xlu1 %v7681_v13, %s5535_s22  ;;  %5307 = vmatprep.mubr.msk.bf16.mxu1 %vm5538_vm8, %v8480_v32  ;;  %v3806_v13 = vrot.slane %v7806_v47, 1 }
 0x5dd   :  { %3787 = vrot.lane.b32.xlu0 %v7897_v61, %s5534_s0 }
 0x5de   :  { %3652 = vrot.lane.b32.xlu1 %v7724_v9, %s5535_s22  ;;  %v3807_v9 = vsel %vm837_vm3, %v3705_v4, %v3806_v13  ;;  %v3527_v13 = vshrl.u32 %v7701_v63, 16 }
 0x5e0   :  { %v3529_v59 = vor.u32 %v3527_v13, %v3525_v57 }
 0x5e1   :  { %5308 = vmatmul.mubr.msk.bf16.gmra.mrb[116].mxu1 %vm1113_vm5, %v7905_v22  ;;  %3755 = vrot.lane.b32.xlu0 %v7701_v63, %s5535_s22 }
 0x5e2   :  { %3573 = vrot.lane.b32.xlu1 %v7886_v48, %s5536_s25  ;;  %5311 = vmatprep.mubr.msk.bf16.mxu1 %vm5538_vm8, %v8480_v32 }
 0x5e5   :  { %3753 = vrot.lane.b32.xlu0 %v7704_v1, %s5535_s22 }
 0x5e6   :  { %3575 = vrot.lane.b32.xlu1 %v7897_v61, %s5536_s25 }
 0x5e9   :  { %3723 = vrot.lane.b32.xlu0 %v7761_v11, %s5536_s25  ;;  %5312 = vmatmul.mubr.msk.bf16.gmra.mrb[120].mxu1 %vm1113_vm5, %v3807_v9  ;;  %v3533_v9 = vrot.slane %v3531_v53, 1 }
 0x5ea   :  { %3686 = vrot.lane.b32.xlu1 %v7701_v63, %s5534_s0 }
 0x5eb   :  { %v7981_v42 = vsel %vm600_vm4, %v3529_v59, %v3533_v9 }
 0x5ed   :  { %3725 = vrot.lane.b32.xlu0 %v7790_v28, %s5536_s25 }
 0x5ee   :  { %3684 = vrot.lane.b32.xlu1 %v7704_v1, %s5534_s0 }
 0x5ef   :  { %v3667_v19 = vpop.permute.xlu1 %3666 }
 0x5f1   :  { %3789 = vrot.lane.b32.xlu0 %v7935_v58, %s5534_s0 }
 0x5f2   :  { %3654 = vrot.lane.b32.xlu1 %v7761_v11, %s5535_s22 }
 0x5f3   :  { %v3637_v49 = vpop.permute.xlu1 %3636 }
 0x5f5   :  { %3791 = vrot.lane.b32.xlu0 %v7942_v51, %s5534_s0 }
 0x5f6   :  { %3656 = vrot.lane.b32.xlu1 %v7790_v28, %s5535_s22 }
 0x5f7   :  { %v7948_v5 = vpop.permute.xlu0 %3739  ;;  %v3560_v21 = vpop.permute.xlu1 %3559 }
 0x5f8   :  { %v3809_v46 = vsel %vm1113_vm5, %v7537_v39, %v3560_v21  ;;  %v3539_v39 = vshll.u32 %v7741_v41, 16  ;;  %v3537_v21 = vor.u32 %v3535_v12, %v3533_v9 }
 0x5f9   :  { %3759 = vrot.lane.b32.xlu0 %v7741_v41, %s5535_s22  ;;  %v3839_v7 = vsel %vm1156_vm6, %v3809_v46, %v3637_v49 }
 0x5fa   :  { %3577 = vrot.lane.b32.xlu1 %v7935_v58, %s5536_s25  ;;  %v3869_v57 = vsel %vm1199_vm7, %v3839_v7, %v3667_v19  ;;  %v3541_v49 = vrot.slane %v3539_v39, 1  ;;  %v3543_v7 = vshrl.u32 %v7741_v41, 16 }
 0x5fb   :  { %v3738_v11 = vpop.permute.xlu0 %3737  ;;  %v7954_v40 = vpop.permute.xlu1 %3670 }
 0x5fc   :  { %v7993_v53 = vsel %vm600_vm4, %v3537_v21, %v3541_v49  ;;  %v3545_v12 = vor.u32 %v3543_v7, %v3541_v49 }
 0x5fd   :  { %3757 = vrot.lane.b32.xlu0 %v7745_v37, %s5535_s22 }
 0x5fe   :  { %3579 = vrot.lane.b32.xlu1 %v7942_v51, %s5536_s25 }
 0x5ff   :  { %v3708_v8 = vpop.permute.xlu0 %3707  ;;  %v7960_v28 = vpop.permute.xlu1 %3668 }
 0x600   :  { %v3915_v4 = vsel %vm1113_vm5, %v7652_v3, %v3708_v8 }
 0x601   :  { %3727 = vrot.lane.b32.xlu0 %v7825_v10, %s5536_s25  ;;  %v3959_v3 = vsel %vm1156_vm6, %v3915_v4, %v3738_v11  ;;  %v3547_v4 = vshll.u32 %v7777_v23, 16 }
 0x602   :  { %3690 = vrot.lane.b32.xlu1 %v7741_v41, %s5534_s0 }
 0x603   :  { %v3710_v26 = vpop.permute.xlu0 %3709  ;;  %v3639_v24 = vpop.permute.xlu1 %3638  ;;  %v3549_v59 = vrot.slane %v3547_v4, 1 }
 0x604   :  { %v3918_v13 = vsel %vm1113_vm5, %v7639_v35, %v3710_v26 }
 0x605   :  { %3729 = vrot.lane.b32.xlu0 %v7847_v52, %s5536_s25 }
 0x606   :  { %3688 = vrot.lane.b32.xlu1 %v7745_v37, %s5534_s0 }
 0x607   :  { %v3776_v45 = vpop.permute.xlu0 %3775  ;;  %v3641_v34 = vpop.permute.xlu1 %3640 }
 0x608   :  { %v3989_v38 = vsel %vm1199_vm7, %v3959_v3, %v3776_v45  ;;  %v8029_v3 = vsel %vm600_vm4, %v3545_v12, %v3549_v59 }
 0x609   :  { %3793 = vrot.lane.b32.xlu0 %v7981_v42, %s5534_s0  ;;  %4261 = vmatprep.mubr.bf16.mxu0 %v3989_v38 }
 0x60a   :  { %3658 = vrot.lane.b32.xlu1 %v7825_v10, %s5535_s22  ;;  %4262 = vmatmul.mubr.bf16.vlgmr.msra.gmra.mrb[156].mxu0 %v3869_v57 }
 0x60b   :  { %v7989_v8 = vpop.permute.xlu0 %3743  ;;  %v3562_v11 = vpop.permute.xlu1 %3561  ;;  %5252 = vmatpush3.bf16.msra.mxu0 %v7446_v55 }
 0x60c   :  { %5253 = vmatprep.subr.bf16.mxu0 %v8480_v32 }
 0x60d   :  { %3795 = vrot.lane.b32.xlu0 %v7993_v53, %s5534_s0 }
 0x60e   :  { %3660 = vrot.lane.b32.xlu1 %v7847_v52, %s5535_s22 }
 0x60f   :  { %v3742_v19 = vpop.permute.xlu0 %3741  ;;  %v3564_v10 = vpop.permute.xlu1 %3563  ;;  %5254 = vmatpush3.bf16.msra.mxu0 %v7453_v16  ;;  %v3811_v16 = vsel %vm1113_vm5, %v7533_v56, %v3562_v11  ;;  %v3961_v56 = vsel %vm1156_vm6, %v3918_v13, %v7948_v5  ;;  %v3551_v5 = vshrl.u32 %v7777_v23, 16 }
 0x610   :  { %v3841_v39 = vsel %vm1156_vm6, %v3811_v16, %v3639_v24  ;;  %v3813_v24 = vsel %vm1113_vm5, %v7574_v6, %v3564_v10 }
 0x611   :  { %3761 = vrot.lane.b32.xlu0 %v7777_v23, %s5535_s22  ;;  %v3843_v4 = vsel %vm1156_vm6, %v3813_v24, %v3641_v34  ;;  %v3696_v34 = vshrl.u32 %v7773_v44, 16 }
 0x612   :  { %3581 = vrot.lane.b32.xlu1 %v7981_v42, %s5536_s25  ;;  %v3875_v10 = vsel %vm1199_vm7, %v3843_v4, %v7954_v40 }
 0x613   :  { %v3712_v55 = vpop.permute.xlu0 %3711 }
 0x614   :  { %v8005_v46 = vpop.permute.xlu1 %3674  ;;  %v3921_v35 = vsel %vm1113_vm5, %v7727_v54, %v3712_v55  ;;  %v3555_v54 = vshll.u32 %v7773_v44, 16  ;;  %v3553_v55 = vor.u32 %v3551_v5, %v3549_v59 }
 0x615   :  { %3731 = vrot.lane.b32.xlu0 %v7863_v18, %s5536_s25  ;;  %v3963_v57 = vsel %vm1156_vm6, %v3921_v35, %v3742_v19  ;;  %v3700_v19 = vshll.u32 %v7809_v31, 16  ;;  %v3771_v35 = vshll.u32 %v7806_v47, 16 }
 0x616   :  { %3583 = vrot.lane.b32.xlu1 %v7993_v53, %s5536_s25 }
 0x617   :  { %v3714_v52 = vpop.permute.xlu0 %3713  ;;  %v3702_v12 = vrot.slane %v3700_v19, 1  ;;  %v3773_v24 = vrot.slane %v3771_v35, 1 }
 0x618   :  { %v8016_v9 = vpop.permute.xlu1 %3672 }
 0x619   :  { %3733 = vrot.lane.b32.xlu0 %v7883_v33, %s5536_s25 }
 0x61a   :  { %3662 = vrot.lane.b32.xlu1 %v7863_v18, %s5535_s22  ;;  %v3872_v18 = vsel %vm1199_vm7, %v3841_v39, %v7960_v28  ;;  %v3557_v28 = vrot.slane %v3555_v54, 1 }
 0x61b   :  { %v3778_v45 = vpop.permute.xlu0 %3777 }
 0x61c   :  { %v3643_v26 = vpop.permute.xlu1 %3642  ;;  %v3992_v38 = vsel %vm1199_vm7, %v3961_v56, %v3778_v45  ;;  %v8050_v6 = vsel %vm600_vm4, %v3553_v55, %v3557_v28  ;;  %v3698_v39 = vor.u32 %v3696_v34, %v3557_v28 }
 0x61d   :  { %3797 = vrot.lane.b32.xlu0 %v8029_v3, %s5534_s0  ;;  %4269 = vmatprep.mubr.bf16.mxu0 %v3992_v38  ;;  %v3767_v38 = vshrl.u32 %v7809_v31, 16 }
 0x61e   :  { %3692 = vrot.lane.b32.xlu1 %v7777_v23, %s5534_s0  ;;  %4270 = vmatmul.mubr.bf16.gmra.mrb[160].mxu0 %v3872_v18  ;;  %v8065_v40 = vsel %vm600_vm4, %v3698_v39, %v3702_v12  ;;  %v3924_v18 = vsel %vm1113_vm5, %v7749_v36, %v3714_v52 }
 0x61f   :  { %v3780_v21 = vpop.permute.xlu0 %3779  ;;  %v3769_v54 = vor.u32 %v3767_v38, %v3702_v12 }
 0x620   :  { %v3645_v49 = vpop.permute.xlu1 %3644  ;;  %v3995_v11 = vsel %vm1199_vm7, %v3963_v57, %v3780_v21 }
 0x621   :  { %3763 = vrot.lane.b32.xlu0 %v7773_v44, %s5535_s22  ;;  %4277 = vmatprep.mubr.bf16.mxu0 %v3995_v11  ;;  %v3774_v36 = vsel %vm600_vm4, %v3769_v54, %v3773_v24 }
 0x622   :  { %3585 = vrot.lane.b32.xlu1 %v8029_v3, %s5536_s25 }
 0x623   :  { %v3748_v16 = vpop.permute.xlu0 %3747 }
 0x624   :  { %v3566_v13 = vpop.permute.xlu1 %3565 }
 0x625   :  { %3799 = vrot.lane.b32.xlu0 %v8050_v6, %s5534_s0 }
 0x626   :  { %3587 = vrot.lane.b32.xlu1 %v8050_v6, %s5536_s25  ;;  %4278 = vmatmul.mubr.bf16.gmra.mrb[164].mxu0 %v3875_v10 }
 0x627   :  { %v3746_v7 = vpop.permute.xlu0 %3745 }
 0x628   :  { %v3568_v59 = vpop.permute.xlu1 %3567 }
 0x629   :  { %3735 = vrot.lane.b32.xlu0 %v7905_v22, %s5536_s25  ;;  %v3815_v22 = vsel %vm1113_vm5, %v7570_v15, %v3566_v13  ;;  %v3817_v52 = vsel %vm1113_vm5, %v7604_v20, %v3568_v59 }
 0x62a   :  { %3664 = vrot.lane.b32.xlu1 %v7883_v33, %s5535_s22  ;;  %v3845_v47 = vsel %vm1156_vm6, %v3815_v22, %v3643_v26  ;;  %v3847_v28 = vsel %vm1156_vm6, %v3817_v52, %v3645_v49 }
 0x62b   :  { %v3716_v45 = vpop.permute.xlu0 %3715  ;;  %v3881_v19 = vsel %vm1199_vm7, %v3847_v28, %v8005_v46 }
 0x62c   :  { %v3679_v56 = vpop.permute.xlu1 %3678  ;;  %v3927_v57 = vsel %vm1113_vm5, %v7828_v29, %v3716_v45 }
 0x62d   :  { %3801 = vrot.lane.b32.xlu0 %v8065_v40, %s5534_s0 }
 0x62e   :  { %3694 = vrot.lane.b32.xlu1 %v7773_v44, %s5534_s0  ;;  %v3965_v44 = vsel %vm1156_vm6, %v3924_v18, %v7989_v8  ;;  %v3967_v8 = vsel %vm1156_vm6, %v3927_v57, %v3746_v7 }
 0x62f   :  { %v3718_v33 = vpop.permute.xlu0 %3717 }
 0x630   :  { %v3677_v5 = vpop.permute.xlu1 %3676  ;;  %v3930_v59 = vsel %vm1113_vm5, %v7839_v2, %v3718_v33 }
 0x631   :  { %3765 = vrot.lane.b32.xlu0 %v7809_v31, %s5535_s22  ;;  %v3878_v31 = vsel %vm1199_vm7, %v3845_v47, %v8016_v9  ;;  %v3969_v35 = vsel %vm1156_vm6, %v3930_v59, %v3748_v16 }
 0x633   :  { %v3782_v21 = vpop.permute.xlu0 %3781 }
 0x634   :  { %v3647_v15 = vpop.permute.xlu1 %3646  ;;  %v3998_v11 = vsel %vm1199_vm7, %v3965_v44, %v3782_v21 }
 0x635   :  { %4285 = vmatprep.mubr.bf16.mxu0 %v3998_v11  ;;  %3803 = vrot.lane.b32.xlu0 %v3774_v36, %s5534_s0 }
 0x636   :  { %4286 = vmatmul.mubr.bf16.gmra.mrb[168].mxu0 %v3878_v31 }
 0x637   :  { %v3784_v26 = vpop.permute.xlu0 %3783 }
 0x638   :  { %v3649_v55 = vpop.permute.xlu1 %3648  ;;  %v4001_v29 = vsel %vm1199_vm7, %v3967_v8, %v3784_v26 }
 0x639   :  { %4293 = vmatprep.mubr.bf16.mxu0 %v4001_v29 }
 0x63b   :  { %v3752_v4 = vpop.permute.xlu0 %3751 }
 0x63c   :  { %v3570_v13 = vpop.permute.xlu1 %3569 }
 0x63d   :  { %v3819_v20 = vsel %vm1113_vm5, %v7601_v0, %v3570_v13 }
 0x63e   :  { %4294 = vmatmul.mubr.bf16.gmra.mrb[172].mxu0 %v3881_v19  ;;  %v3849_v49 = vsel %vm1156_vm6, %v3819_v20, %v3647_v15 }
 0x63f   :  { %v3750_v9 = vpop.permute.xlu0 %3749  ;;  %v3884_v18 = vsel %vm1199_vm7, %v3849_v49, %v3677_v5 }
 0x640   :  { %v3572_v10 = vpop.permute.xlu1 %3571 }
 0x641   :  { %v3821_v0 = vsel %vm1113_vm5, %v7635_v25, %v3572_v10 }
 0x642   :  { %v3851_v16 = vsel %vm1156_vm6, %v3821_v0, %v3649_v55 }
 0x643   :  { %v3720_v34 = vpop.permute.xlu0 %3719  ;;  %v3887_v21 = vsel %vm1199_vm7, %v3851_v16, %v3679_v56 }
 0x644   :  { %v3683_v12 = vpop.permute.xlu1 %3682  ;;  %v3933_v46 = vsel %vm1113_vm5, %v7886_v48, %v3720_v34 }
 0x645   :  { %v3971_v33 = vsel %vm1156_vm6, %v3933_v46, %v3750_v9 }
 0x647   :  { %v3722_v7 = vpop.permute.xlu0 %3721 }
 0x648   :  { %v3681_v39 = vpop.permute.xlu1 %3680  ;;  %v3936_v36 = vsel %vm1113_vm5, %v7897_v61, %v3722_v7 }
 0x649   :  { %v3973_v8 = vsel %vm1156_vm6, %v3936_v36, %v3752_v4 }
 0x64b   :  { %v3786_v45 = vpop.permute.xlu0 %3785 }
 0x64c   :  { %v3651_v38 = vpop.permute.xlu1 %3650  ;;  %v4004_v22 = vsel %vm1199_vm7, %v3969_v35, %v3786_v45 }
 0x64d   :  { %4301 = vmatprep.mubr.bf16.mxu0 %v4004_v22 }
 0x64e   :  { %4302 = vmatmul.mubr.bf16.gmra.mrb[176].mxu0 %v3884_v18 }
 0x64f   :  { %v3788_v2 = vpop.permute.xlu0 %3787 }
 0x650   :  { %v3653_v54 = vpop.permute.xlu1 %3652  ;;  %v4007_v24 = vsel %vm1199_vm7, %v3971_v33, %v3788_v2 }
 0x651   :  { %4309 = vmatprep.mubr.bf16.mxu0 %v4007_v24 }
 0x653   :  { %v3756_v48 = vpop.permute.xlu0 %3755 }
 0x654   :  { %v3574_v47 = vpop.permute.xlu1 %3573 }
 0x655   :  { %v3823_v25 = vsel %vm1113_vm5, %v7631_v62, %v3574_v47 }
 0x656   :  { %4310 = vmatmul.mubr.bf16.gmra.mrb[180].mxu0 %v3887_v21  ;;  %v3853_v52 = vsel %vm1156_vm6, %v3823_v25, %v3651_v38 }
 0x657   :  { %v3754_v44 = vpop.permute.xlu0 %3753  ;;  %v3890_v28 = vsel %vm1199_vm7, %v3853_v52, %v3681_v39 }
 0x658   :  { %v3576_v5 = vpop.permute.xlu1 %3575 }
 0x659   :  { %v3825_v62 = vsel %vm1113_vm5, %v7664_v43, %v3576_v5 }
 0x65a   :  { %v3855_v4 = vsel %vm1156_vm6, %v3825_v62, %v3653_v54 }
 0x65b   :  { %v3724_v57 = vpop.permute.xlu0 %3723  ;;  %v3893_v34 = vsel %vm1199_vm7, %v3855_v4, %v3683_v12 }
 0x65c   :  { %v3687_v15 = vpop.permute.xlu1 %3686  ;;  %v3939_v56 = vsel %vm1113_vm5, %v7935_v58, %v3724_v57 }
 0x65d   :  { %v3975_v13 = vsel %vm1156_vm6, %v3939_v56, %v3754_v44 }
 0x65f   :  { %v3726_v11 = vpop.permute.xlu0 %3725 }
 0x660   :  { %v3685_v31 = vpop.permute.xlu1 %3684  ;;  %v3942_v22 = vsel %vm1113_vm5, %v7942_v51, %v3726_v11 }
 0x661   :  { %v3977_v2 = vsel %vm1156_vm6, %v3942_v22, %v3756_v48 }
 0x663   :  { %v3790_v26 = vpop.permute.xlu0 %3789 }
 0x664   :  { %v3655_v55 = vpop.permute.xlu1 %3654  ;;  %v4010_v29 = vsel %vm1199_vm7, %v3973_v8, %v3790_v26 }
 0x665   :  { %4317 = vmatprep.mubr.bf16.mxu0 %v4010_v29 }
 0x666   :  { %4318 = vmatmul.mubr.bf16.gmra.mrb[184].mxu0 %v3890_v28 }
 0x667   :  { %v3792_v61 = vpop.permute.xlu0 %3791 }
 0x668   :  { %v3657_v19 = vpop.permute.xlu1 %3656  ;;  %v4013_v9 = vsel %vm1199_vm7, %v3975_v13, %v3792_v61 }
 0x669   :  { %4325 = vmatprep.mubr.bf16.mxu0 %v4013_v9 }
 0x66b   :  { %v3760_v58 = vpop.permute.xlu0 %3759 }
 0x66c   :  { %v3578_v10 = vpop.permute.xlu1 %3577 }
 0x66d   :  { %v3827_v35 = vsel %vm1113_vm5, %v7660_v60, %v3578_v10 }
 0x66e   :  { %4326 = vmatmul.mubr.bf16.gmra.mrb[188].mxu0 %v3893_v34  ;;  %v3857_v18 = vsel %vm1156_vm6, %v3827_v35, %v3655_v55 }
 0x66f   :  { %v3758_v20 = vpop.permute.xlu0 %3757  ;;  %v3896_v47 = vsel %vm1199_vm7, %v3857_v18, %v3685_v31 }
 0x670   :  { %v3580_v7 = vpop.permute.xlu1 %3579 }
 0x671   :  { %v3829_v21 = vsel %vm1113_vm5, %v7704_v1, %v3580_v7 }
 0x672   :  { %v3859_v25 = vsel %vm1156_vm6, %v3829_v21, %v3657_v19 }
 0x673   :  { %v3728_v59 = vpop.permute.xlu0 %3727  ;;  %v3899_v26 = vsel %vm1199_vm7, %v3859_v25, %v3687_v15 }
 0x674   :  { %v8128_v39 = vpop.permute.xlu1 %3690  ;;  %v8130_v43 = vpop.f32.mrb[84].mxu1  ;;  %v3945_v33 = vsel %vm1113_vm5, %v7981_v42, %v3728_v59 }
 0x675   :  { %v5277_v49 = vpop.f32.mrb[85].mxu1  ;;  %v3979_v5 = vsel %vm1156_vm6, %v3945_v33, %v3758_v20 }
 0x676   :  { %v8132_v45 = vpop.f32.mrb[86].mxu1 }
 0x677   :  { %v3730_v46 = vpop.permute.xlu0 %3729  ;;  %v5278_v38 = vpop.f32.mrb[87].mxu1 }
 0x678   :  { %v3689_v12 = vpop.permute.xlu1 %3688  ;;  %v3948_v62 = vsel %vm1113_vm5, %v7993_v53, %v3730_v46 }
 0x679   :  { %v3981_v34 = vsel %vm1156_vm6, %v3948_v62, %v3760_v58 }
 0x67b   :  { %v3794_v0 = vpop.permute.xlu0 %3793 }
 0x67c   :  { %v3659_v54 = vpop.permute.xlu1 %3658  ;;  %v8142_v24 = vpop.f32.mrb[88].mxu1  ;;  %v4016_v16 = vsel %vm1199_vm7, %v3977_v2, %v3794_v0 }
 0x67d   :  { %4333 = vmatprep.mubr.bf16.mxu0 %v4016_v16  ;;  %v5281_v60 = vpop.f32.mrb[89].mxu1 }
 0x67e   :  { %4334 = vmatmul.mubr.bf16.gmra.mrb[192].mxu0 %v3896_v47  ;;  %v8146_v51 = vpop.f32.mrb[90].mxu1 }
 0x67f   :  { %v3796_v44 = vpop.permute.xlu0 %3795  ;;  %v5282_v48 = vpop.f32.mrb[91].mxu1 }
 0x680   :  { %v3661_v42 = vpop.permute.xlu1 %3660  ;;  %v4019_v57 = vsel %vm1199_vm7, %v3979_v5, %v3796_v44 }
 0x681   :  { %4341 = vmatprep.mubr.bf16.mxu0 %v4019_v57 }
 0x683   :  { %v3762_v11 = vpop.permute.xlu0 %3761 }
 0x684   :  { %v3582_v36 = vpop.permute.xlu1 %3581  ;;  %v8153_v52 = vpop.f32.mrb[92].mxu1 }
 0x685   :  { %v5285_v31 = vpop.f32.mrb[93].mxu1  ;;  %v3831_v29 = vsel %vm1113_vm5, %v7701_v63, %v3582_v36 }
 0x686   :  { %4342 = vmatmul.mubr.bf16.gmra.mrb[196].mxu0 %v3899_v26  ;;  %v8156_v8 = vpop.f32.mrb[94].mxu1  ;;  %v3861_v15 = vsel %vm1156_vm6, %v3831_v29, %v3659_v54 }
 0x687   :  { %v3732_v1 = vpop.permute.xlu0 %3731  ;;  %v5286_v56 = vpop.f32.mrb[95].mxu1  ;;  %v3902_v63 = vsel %vm1199_vm7, %v3861_v15, %v3689_v12 }
 0x688   :  { %v3584_v55 = vpop.permute.xlu1 %3583  ;;  %v3951_v49 = vsel %vm1113_vm5, %v8029_v3, %v3732_v1 }
 0x689   :  { %v3833_v53 = vsel %vm1113_vm5, %v7745_v37, %v3584_v55  ;;  %v3983_v12 = vsel %vm1156_vm6, %v3951_v49, %v3762_v11 }
 0x68a   :  { %v3863_v58 = vsel %vm1156_vm6, %v3833_v53, %v3661_v42 }
 0x68b   :  { %v3734_v28 = vpop.permute.xlu0 %3733  ;;  %v3905_v37 = vsel %vm1199_vm7, %v3863_v58, %v8128_v39 }
 0x68c   :  { %v3663_v61 = vpop.permute.xlu1 %3662  ;;  %v8162_v13 = vpop.f32.mrb[96].mxu1  ;;  %v3954_v47 = vsel %vm1113_vm5, %v8050_v6, %v3734_v28 }
 0x68d   :  { %v5289_v19 = vpop.f32.mrb[97].mxu1 }
 0x68e   :  { %v8164_v9 = vpop.f32.mrb[98].mxu1 }
 0x68f   :  { %v3798_v4 = vpop.permute.xlu0 %3797  ;;  %v5290_v10 = vpop.f32.mrb[99].mxu1 }
 0x690   :  { %v3693_v20 = vpop.permute.xlu1 %3692  ;;  %v4022_v7 = vsel %vm1199_vm7, %v3981_v34, %v3798_v4 }
 0x691   :  { %4349 = vmatprep.mubr.bf16.mxu0 %v4022_v7 }
 0x692   :  { %4350 = vmatmul.mubr.bf16.gmra.mrb[200].mxu0 %v3902_v63 }
 0x693   :  { %v3764_v59 = vpop.permute.xlu0 %3763 }
 0x694   :  { %v3586_v35 = vpop.permute.xlu1 %3585  ;;  %v8174_v46 = vpop.f32.mrb[100].mxu1  ;;  %v3985_v48 = vsel %vm1156_vm6, %v3954_v47, %v3764_v59 }
 0x695   :  { %v5293_v38 = vpop.f32.mrb[101].mxu1  ;;  %v3835_v3 = vsel %vm1113_vm5, %v7741_v41, %v3586_v35 }
 0x696   :  { %v8176_v22 = vpop.f32.mrb[102].mxu1  ;;  %v3865_v44 = vsel %vm1156_vm6, %v3835_v3, %v3663_v61 }
 0x697   :  { %v3800_v18 = vpop.permute.xlu0 %3799  ;;  %v5294_v0 = vpop.f32.mrb[103].mxu1  ;;  %v3908_v41 = vsel %vm1199_vm7, %v3865_v44, %v3693_v20 }
 0x698   :  { %v4025_v2 = vsel %vm1199_vm7, %v3983_v12, %v3800_v18  ;;  %v3588_v33 = vpop.permute.xlu1 %3587 }
 0x699   :  { %4357 = vmatprep.mubr.bf16.mxu0 %v4025_v2  ;;  %v3837_v1 = vsel %vm1113_vm5, %v7777_v23, %v3588_v33 }
 0x69a   :  { %4358 = vmatmul.mubr.bf16.gmra.mrb[204].mxu0 %v3905_v37 }
 0x69b   :  { %v3736_v54 = vpop.permute.xlu0 %3735 }
 0x69c   :  { %v8185_v16 = vpop.f32.mrb[104].mxu1  ;;  %v3665_v42 = vpop.permute.xlu1 %3664  ;;  %v3957_v6 = vsel %vm1113_vm5, %v8065_v40, %v3736_v54 }
 0x69d   :  { %v5297_v60 = vpop.f32.mrb[105].mxu1  ;;  %v3867_v28 = vsel %vm1156_vm6, %v3837_v1, %v3665_v42 }
 0x69e   :  { %v8189_v21 = vpop.f32.mrb[106].mxu1 }
 0x69f   :  { %v3802_v5 = vpop.permute.xlu0 %3801  ;;  %v5298_v39 = vpop.f32.mrb[107].mxu1 }
 0x6a0   :  { %v4028_v57 = vsel %vm1199_vm7, %v3985_v48, %v3802_v5  ;;  %v3695_v31 = vpop.permute.xlu1 %3694 }
 0x6a1   :  { %4365 = vmatprep.mubr.bf16.mxu0 %v4028_v57  ;;  %v3911_v61 = vsel %vm1199_vm7, %v3867_v28, %v3695_v31 }
 0x6a2   :  { %4366 = vmatmul.mubr.bf16.gmra.mrb[208].mxu0 %v3908_v41 }
 0x6a3   :  { %v3766_v25 = vpop.permute.xlu0 %3765 }
 0x6a4   :  { %v8195_v11 = vpop.f32.mrb[108].mxu1  ;;  %v3987_v56 = vsel %vm1156_vm6, %v3957_v6, %v3766_v25 }
 0x6a5   :  { %v5301_v36 = vpop.f32.mrb[109].mxu1 }
 0x6a6   :  { %v8199_v26 = vpop.f32.mrb[110].mxu1 }
 0x6a7   :  { %v3804_v55 = vpop.permute.xlu0 %3803  ;;  %v5302_v29 = vpop.f32.mrb[111].mxu1 }
 0x6a8   :  { %v4031_v62 = vsel %vm1199_vm7, %v3987_v56, %v3804_v55  ;;  %v8262_v29 = vld [vmem:[%s8402_s8] ss:$0 sm:$0xff] }
 0x6a9   :  { %4373 = vmatprep.mubr.bf16.mxu0 %v4031_v62 }
 0x6aa   :  { %4374 = vmatmul.mubr.bf16.gmra.mrb[212].mxu0 %v3911_v61 }
 0x6ab   :  { %5255 = vmatprep.mubr.msk.bf16.mxu0 %vm5538_vm8, %v8480_v32 }
 0x6ac   :  { %v8209_v40 = vpop.f32.mrb[112].mxu1 }
 0x6ad   :  { %v5305_v19 = vpop.f32.mrb[113].mxu1 }
 0x6ae   :  { %v8211_v15 = vpop.f32.mrb[114].mxu1 }
 0x6af   :  { %v5306_v23 = vpop.f32.mrb[115].mxu1 }
 0x6b2   :  { %5256 = vmatmul.mubr.msk.bf16.vlgmr.msra.gmra.mrb[216].mxu0 %vm1113_vm5, %v7622_v17 }
 0x6b3   :  { %5259 = vmatprep.mubr.msk.bf16.mxu0 %vm5538_vm8, %v8480_v32 }
 0x6b4   :  { %v8217_v4 = vpop.f32.mrb[116].mxu1 }
 0x6b5   :  { %v5309_v10 = vpop.f32.mrb[117].mxu1 }
 0x6b6   :  { %v8219_v34 = vpop.f32.mrb[118].mxu1 }
 0x6b7   :  { %v5310_v20 = vpop.f32.mrb[119].mxu1 }
 0x6ba   :  { %5260 = vmatmul.mubr.msk.bf16.gmra.mrb[220].mxu0 %vm1113_vm5, %v7686_v27 }
 0x6bb   :  { %5263 = vmatprep.mubr.msk.bf16.mxu0 %vm5538_vm8, %v8480_v32 }
 0x6bc   :  { %v8225_v7 = vpop.f32.mrb[120].mxu1 }
 0x6bd   :  { %v5313_v63 = vpop.f32.mrb[121].mxu1 }
 0x6be   :  { %v8227_v53 = vpop.f32.mrb[122].mxu1 }
 0x6bf   :  { %v5314_v17 = vpop.f32.mrb[123].mxu1 }
 0x6c2   :  { %5264 = vmatmul.mubr.msk.bf16.gmra.mrb[224].mxu0 %vm1113_vm5, %v7709_v14 }
 0x6c3   :  { %5267 = vmatprep.mubr.msk.bf16.mxu0 %vm5538_vm8, %v8480_v32 }
 0x6ca   :  { %5268 = vmatmul.mubr.msk.bf16.gmra.mrb[228].mxu0 %vm1113_vm5, %v7795_v30 }
 0x6cb   :  { %5271 = vmatprep.mubr.msk.bf16.mxu0 %vm5538_vm8, %v8480_v32 }
 0x6d2   :  { %5272 = vmatmul.mubr.msk.bf16.gmra.mrb[232].mxu0 %vm1113_vm5, %v7814_v50 }
 0x6dd   :  { %v4964_v27 = vpop.f32.mrb[156].mxu0 }
 0x6de   :  { %v4965_v59 = vpop.f32.mrb[157].mxu0 }
 0x6df   :  { %v8239_v49 = vadd.f32 %v4965_v59, %v4964_v27  ;;  %v4967_v35 = vpop.f32.mrb[158].mxu0 }
 0x6e0   :  { %v4968_v38 = vpop.f32.mrb[159].mxu0 }
 0x6e1   :  { %v8241_v58 = vadd.f32 %v4968_v38, %v4967_v35 }
 0x6f1   :  { %v4970_v14 = vpop.f32.mrb[160].mxu0 }
 0x6f2   :  { %v4971_v18 = vpop.f32.mrb[161].mxu0 }
 0x6f3   :  { %v8243_v0 = vadd.f32 %v4971_v18, %v4970_v14  ;;  %v4973_v12 = vpop.f32.mrb[162].mxu0 }
 0x6f4   :  { %v4974_v30 = vpop.f32.mrb[163].mxu0 }
 0x6f5   :  { %v8245_v2 = vadd.f32 %v4974_v30, %v4973_v12 }
 0x6f9   :  { %v4976_v32 = vpop.f32.mrb[164].mxu0 }
 0x6fa   :  { %v4977_v37 = vpop.f32.mrb[165].mxu0 }
 0x6fb   :  { %v8247_v33 = vadd.f32 %v4977_v37, %v4976_v32  ;;  %v4979_v50 = vpop.f32.mrb[166].mxu0 }
 0x6fc   :  { %v4980_v3 = vpop.f32.mrb[167].mxu0 }
 0x6fd   :  { %v8249_v54 = vadd.f32 %v4980_v3, %v4979_v50 }
 0x709   :  { %v4982_v60 = vpop.f32.mrb[168].mxu0 }
 0x70a   :  { %v4983_v47 = vpop.f32.mrb[169].mxu0 }
 0x70b   :  { %v8251_v44 = vadd.f32 %v4983_v47, %v4982_v60  ;;  %v4985_v48 = vpop.f32.mrb[170].mxu0 }
 0x70c   :  { %v4986_v5 = vpop.f32.mrb[171].mxu0 }
 0x70d   :  { %v8253_v39 = vadd.f32 %v4986_v5, %v4985_v48 }
 0x711   :  { %v4988_v42 = vpop.f32.mrb[172].mxu0 }
 0x712   :  { %v4989_v57 = vpop.f32.mrb[173].mxu0 }
 0x713   :  { %v8255_v41 = vadd.f32 %v4989_v57, %v4988_v42  ;;  %v4991_v25 = vpop.f32.mrb[174].mxu0 }
 0x714   :  { %v4992_v36 = vpop.f32.mrb[175].mxu0 }
 0x715   :  { %v8257_v6 = vadd.f32 %v4992_v36, %v4991_v25 }
 0x721   :  { %v4994_v31 = vpop.f32.mrb[176].mxu0 }
 0x722   :  { %v4995_v1 = vpop.f32.mrb[177].mxu0 }
 0x723   :  { %v4996_v56 = vadd.f32 %v4995_v1, %v4994_v31  ;;  %v4997_v55 = vpop.f32.mrb[178].mxu0 }
 0x724   :  { %v4998_v28 = vpop.f32.mrb[179].mxu0 }
 0x725   :  { %v4304_v62 = vadd.f32 %v4996_v56, %v8262_v29  ;;  %v4999_v61 = vadd.f32 %v4998_v28, %v4997_v55 }
 0x727   :  { %v4457_v19 = vadd.f32 %v8130_v43, %v4304_v62  ;;  %v4307_v23 = vadd.f32 %v4999_v61, %v8262_v29 }
 0x729   :  { %v4460_v10 = vadd.f32 %v8132_v45, %v4307_v23  ;;  %v5000_v20 = vpop.f32.mrb[180].mxu0  ;;  %v4545_v17 = vmax.f32 %v4457_v19, 0.0 }
 0x72a   :  { %v5001_v63 = vpop.f32.mrb[181].mxu0 }
 0x72b   :  { %v4546_v27 = vmax.f32 %v4460_v10, 0.0  ;;  %v5002_v59 = vadd.f32 %v5001_v63, %v5000_v20  ;;  %v5003_v35 = vpop.f32.mrb[182].mxu0 }
 0x72c   :  { %v5004_v38 = vpop.f32.mrb[183].mxu0 }
 0x72d   :  { %v4312_v14 = vadd.f32 %v5002_v59, %v8262_v29  ;;  %v5005_v18 = vadd.f32 %v5004_v38, %v5003_v35  ;;  %v8269_v12 = vpack.c.bf16 %v4546_v27, %v4545_v17 }
 0x72f   :  { %v4465_v30 = vadd.f32 %v8142_v24, %v4312_v14  ;;  %v4315_v43 = vadd.f32 %v5005_v18, %v8262_v29 }
 0x731   :  { %v4468_v32 = vadd.f32 %v8146_v51, %v4315_v43  ;;  %v4547_v37 = vmax.f32 %v4465_v30, 0.0 }
 0x733   :  { %v4548_v45 = vmax.f32 %v4468_v32, 0.0 }
 0x735   :  { %v4571_v50 = vpack.c.bf16 %v4548_v45, %v4547_v37 }
 0x737   :  { %4586 = vrot.lane.b32.xlu0 %v4571_v50, %s5536_s25 }
 0x739   :  { %v5006_v3 = vpop.f32.mrb[184].mxu0 }
 0x73a   :  { %v5007_v60 = vpop.f32.mrb[185].mxu0 }
 0x73b   :  { %v5008_v47 = vadd.f32 %v5007_v60, %v5006_v3  ;;  %v5009_v48 = vpop.f32.mrb[186].mxu0 }
 0x73c   :  { %v5010_v5 = vpop.f32.mrb[187].mxu0 }
 0x73d   :  { %v4320_v42 = vadd.f32 %v5008_v47, %v8262_v29  ;;  %v5011_v57 = vadd.f32 %v5010_v5, %v5009_v48 }
 0x73f   :  { %v4473_v25 = vadd.f32 %v8153_v52, %v4320_v42  ;;  %v4323_v24 = vadd.f32 %v5011_v57, %v8262_v29 }
 0x741   :  { %v4476_v36 = vadd.f32 %v8156_v8, %v4323_v24  ;;  %v5012_v51 = vpop.f32.mrb[188].mxu0  ;;  %v4549_v1 = vmax.f32 %v4473_v25, 0.0 }
 0x742   :  { %v5013_v31 = vpop.f32.mrb[189].mxu0 }
 0x743   :  { %v4550_v56 = vmax.f32 %v4476_v36, 0.0  ;;  %v5014_v55 = vadd.f32 %v5013_v31, %v5012_v51  ;;  %v5015_v28 = vpop.f32.mrb[190].mxu0 }
 0x744   :  { %v5016_v62 = vpop.f32.mrb[191].mxu0 }
 0x745   :  { %v4572_v61 = vpack.c.bf16 %v4550_v56, %v4549_v1  ;;  %v4328_v19 = vadd.f32 %v5014_v55, %v8262_v29  ;;  %v5017_v23 = vadd.f32 %v5016_v62, %v5015_v28 }
 0x747   :  { %v4481_v10 = vadd.f32 %v8162_v13, %v4328_v19  ;;  %v4331_v20 = vadd.f32 %v5017_v23, %v8262_v29  ;;  %4588 = vrot.lane.b32.xlu1 %v4572_v61, %s5536_s25 }
 0x749   :  { %v4484_v52 = vadd.f32 %v8164_v9, %v4331_v20  ;;  %v4551_v8 = vmax.f32 %v4481_v10, 0.0 }
 0x74b   :  { %v4552_v63 = vmax.f32 %v4484_v52, 0.0 }
 0x74d   :  { %v4573_v17 = vpack.c.bf16 %v4552_v63, %v4551_v8 }
 0x74f   :  { %4590 = vrot.lane.b32.xlu0 %v4573_v17, %s5536_s25 }
 0x751   :  { %v5018_v27 = vpop.f32.mrb[192].mxu0 }
 0x752   :  { %v5019_v59 = vpop.f32.mrb[193].mxu0 }
 0x753   :  { %v5020_v35 = vadd.f32 %v5019_v59, %v5018_v27  ;;  %v5021_v38 = vpop.f32.mrb[194].mxu0 }
 0x754   :  { %v5022_v14 = vpop.f32.mrb[195].mxu0 }
 0x755   :  { %v4336_v18 = vadd.f32 %v5020_v35, %v8262_v29  ;;  %v5023_v30 = vadd.f32 %v5022_v14, %v5021_v38 }
 0x757   :  { %v4489_v13 = vadd.f32 %v8174_v46, %v4336_v18  ;;  %v4339_v43 = vadd.f32 %v5023_v30, %v8262_v29 }
 0x759   :  { %v4492_v32 = vadd.f32 %v8176_v22, %v4339_v43  ;;  %v5024_v9 = vpop.f32.mrb[196].mxu0  ;;  %v4553_v45 = vmax.f32 %v4489_v13, 0.0 }
 0x75a   :  { %v5025_v37 = vpop.f32.mrb[197].mxu0 }
 0x75b   :  { %v4554_v50 = vmax.f32 %v4492_v32, 0.0  ;;  %v5026_v3 = vadd.f32 %v5025_v37, %v5024_v9  ;;  %v5027_v60 = vpop.f32.mrb[198].mxu0 }
 0x75c   :  { %v5028_v47 = vpop.f32.mrb[199].mxu0 }
 0x75d   :  { %v4574_v48 = vpack.c.bf16 %v4554_v50, %v4553_v45  ;;  %v4344_v5 = vadd.f32 %v5026_v3, %v8262_v29  ;;  %v5029_v42 = vadd.f32 %v5028_v47, %v5027_v60 }
 0x75f   :  { %v4497_v57 = vadd.f32 %v8185_v16, %v4344_v5  ;;  %v4347_v25 = vadd.f32 %v5029_v42, %v8262_v29  ;;  %4592 = vrot.lane.b32.xlu1 %v4574_v48, %s5536_s25 }
 0x761   :  { %v4500_v46 = vadd.f32 %v8189_v21, %v4347_v25  ;;  %v4555_v22 = vmax.f32 %v4497_v57, 0.0 }
 0x763   :  { %v4556_v24 = vmax.f32 %v4500_v46, 0.0 }
 0x765   :  { %v4575_v36 = vpack.c.bf16 %v4556_v24, %v4555_v22  ;;  %v5030_v51 = vpop.f32.mrb[200].mxu0 }
 0x766   :  { %v5031_v31 = vpop.f32.mrb[201].mxu0 }
 0x767   :  { %v5032_v1 = vadd.f32 %v5031_v31, %v5030_v51  ;;  %v5033_v56 = vpop.f32.mrb[202].mxu0  ;;  %4594 = vrot.lane.b32.xlu0 %v4575_v36, %s5536_s25 }
 0x768   :  { %v5034_v55 = vpop.f32.mrb[203].mxu0 }
 0x769   :  { %v4352_v28 = vadd.f32 %v5032_v1, %v8262_v29  ;;  %v5035_v62 = vadd.f32 %v5034_v55, %v5033_v56  ;;  %v4267_v56 = vadd.f32 %v8241_v58, %v8262_v29 }
 0x76b   :  { %v4505_v16 = vadd.f32 %v8195_v11, %v4352_v28  ;;  %v4355_v61 = vadd.f32 %v5035_v62, %v8262_v29 }
 0x76d   :  { %v4508_v19 = vadd.f32 %v8199_v26, %v4355_v61  ;;  %v5036_v21 = vpop.f32.mrb[204].mxu0  ;;  %v4557_v10 = vmax.f32 %v4505_v16, 0.0 }
 0x76e   :  { %v5037_v23 = vpop.f32.mrb[205].mxu0 }
 0x76f   :  { %v4558_v20 = vmax.f32 %v4508_v19, 0.0  ;;  %v5038_v52 = vadd.f32 %v5037_v23, %v5036_v21  ;;  %v5039_v8 = vpop.f32.mrb[206].mxu0 }
 0x770   :  { %v5040_v63 = vpop.f32.mrb[207].mxu0 }
 0x771   :  { %v4576_v17 = vpack.c.bf16 %v4558_v20, %v4557_v10  ;;  %v4360_v27 = vadd.f32 %v5038_v52, %v8262_v29  ;;  %v5041_v59 = vadd.f32 %v5040_v63, %v5039_v8  ;;  %v4275_v52 = vadd.f32 %v8245_v2, %v8262_v29 }
 0x773   :  { %v4513_v35 = vadd.f32 %v8209_v40, %v4360_v27  ;;  %v4363_v38 = vadd.f32 %v5041_v59, %v8262_v29  ;;  %4596 = vrot.lane.b32.xlu1 %v4576_v17, %s5536_s25 }
 0x775   :  { %v4516_v11 = vadd.f32 %v8211_v15, %v4363_v38  ;;  %v5042_v26 = vpop.f32.mrb[208].mxu0  ;;  %v4559_v18 = vmax.f32 %v4513_v35, 0.0  ;;  %v4280_v38 = vadd.f32 %v8247_v33, %v8262_v29  ;;  %v4291_v33 = vadd.f32 %v8253_v39, %v8262_v29 }
 0x776   :  { %v5043_v14 = vpop.f32.mrb[209].mxu0 }
 0x777   :  { %v4560_v30 = vmax.f32 %v4516_v11, 0.0  ;;  %v5044_v13 = vadd.f32 %v5043_v14, %v5042_v26  ;;  %v5045_v43 = vpop.f32.mrb[210].mxu0  ;;  %v4283_v14 = vadd.f32 %v8249_v54, %v8262_v29 }
 0x778   :  { %v5046_v32 = vpop.f32.mrb[211].mxu0 }
 0x779   :  { %v4577_v9 = vpack.c.bf16 %v4560_v30, %v4559_v18  ;;  %v4368_v37 = vadd.f32 %v5044_v13, %v8262_v29  ;;  %v5047_v45 = vadd.f32 %v5046_v32, %v5045_v43 }
 0x77b   :  { %v4521_v50 = vadd.f32 %v8217_v4, %v4368_v37  ;;  %v4371_v40 = vadd.f32 %v5047_v45, %v8262_v29  ;;  %4602 = vrot.lane.b32.xlu0 %v4577_v9, %s5535_s22  ;;  %v4288_v9 = vadd.f32 %v8251_v44, %v8262_v29  ;;  %v4299_v44 = vadd.f32 %v8257_v6, %v8262_v29 }
 0x77d   :  { %v4524_v3 = vadd.f32 %v8219_v34, %v4371_v40  ;;  %v5048_v15 = vpop.f32.mrb[212].mxu0  ;;  %v4561_v47 = vmax.f32 %v4521_v50, 0.0  ;;  %v4264_v34 = vadd.f32 %v8239_v49, %v8262_v29  ;;  %v4272_v49 = vadd.f32 %v8243_v0, %v8262_v29 }
 0x77e   :  { %v5049_v60 = vpop.f32.mrb[213].mxu0 }
 0x77f   :  { %v4562_v48 = vmax.f32 %v4524_v3, 0.0  ;;  %v5050_v5 = vadd.f32 %v5049_v60, %v5048_v15  ;;  %v5051_v42 = vpop.f32.mrb[214].mxu0 }
 0x780   :  { %v5052_v57 = vpop.f32.mrb[215].mxu0 }
 0x781   :  { %v4578_v25 = vpack.c.bf16 %v4562_v48, %v4561_v47  ;;  %v4376_v46 = vadd.f32 %v5050_v5, %v8262_v29  ;;  %v5053_v22 = vadd.f32 %v5052_v57, %v5051_v42  ;;  %v4296_v48 = vadd.f32 %v8255_v41, %v8262_v29 }
 0x783   :  { %v4529_v24 = vadd.f32 %v8225_v7, %v4376_v46  ;;  %v4379_v4 = vadd.f32 %v5053_v22, %v8262_v29  ;;  %4604 = vrot.lane.b32.xlu1 %v4578_v25, %s5535_s22  ;;  %v8481_v7 = vmov 0  }
 0x785   :  { %v4532_v36 = vadd.f32 %v8227_v53, %v4379_v4  ;;  %v4416_v51 = vpop.f32.mrb[216].mxu0  ;;  %v4563_v55 = vmax.f32 %v4529_v24, 0.0 }
 0x786   :  { %v4417_v31 = vadd.f32 %v4416_v51, %v4264_v34  ;;  %v5257_v1 = vpop.f32.mrb[217].mxu0 }
 0x787   :  { %v4564_v28 = vmax.f32 %v4532_v36, 0.0  ;;  %v4419_v62 = vpop.f32.mrb[218].mxu0  ;;  %4608 = vrot.lane.b32.xlu1 %v8481_v7, %s5535_s22 }
 0x788   :  { %v4420_v16 = vadd.f32 %v4419_v62, %v4267_v56  ;;  %v5258_v61 = vpop.f32.mrb[219].mxu0  ;;  %v4535_v21 = vmax.f32 %v4417_v31, 0.0 }
 0x789   :  { %v4579_v19 = vpack.c.bf16 %v4564_v28, %v4563_v55 }
 0x78a   :  { %v4536_v23 = vmax.f32 %v4420_v16, 0.0 }
 0x78b   :  { %4606 = vrot.lane.b32.xlu0 %v4579_v19, %s5535_s22 }
 0x78c   :  { %v4565_v53 = vpack.c.bf16 %v4536_v23, %v4535_v21 }
 0x78d   :  { %v4424_v10 = vpop.f32.mrb[220].mxu0 }
 0x78e   :  { %v4425_v20 = vadd.f32 %v4424_v10, %v4272_v49  ;;  %v5261_v58 = vpop.f32.mrb[221].mxu0 }
 0x78f   :  { %v4427_v8 = vpop.f32.mrb[222].mxu0  ;;  %4610 = vrot.lane.b32.xlu0 %v8481_v7, %s5534_s0 }
 0x790   :  { %v4428_v63 = vadd.f32 %v4427_v8, %v4275_v52  ;;  %v5262_v17 = vpop.f32.mrb[223].mxu0  ;;  %v4537_v27 = vmax.f32 %v4425_v20, 0.0 }
 0x792   :  { %v4538_v59 = vmax.f32 %v4428_v63, 0.0 }
 0x794   :  { %v4566_v35 = vpack.c.bf16 %v4538_v59, %v4537_v27 }
 0x795   :  { %v4432_v11 = vpop.f32.mrb[224].mxu0 }
 0x796   :  { %v4433_v0 = vadd.f32 %v4432_v11, %v4280_v38  ;;  %v5265_v26 = vpop.f32.mrb[225].mxu0 }
 0x797   :  { %v4435_v18 = vpop.f32.mrb[226].mxu0 }
 0x798   :  { %v4436_v2 = vadd.f32 %v4435_v18, %v4283_v14  ;;  %v5266_v30 = vpop.f32.mrb[227].mxu0  ;;  %v4539_v13 = vmax.f32 %v4433_v0, 0.0 }
 0x79a   :  { %v4540_v43 = vmax.f32 %v4436_v2, 0.0 }
 0x79c   :  { %v4567_v32 = vpack.c.bf16 %v4540_v43, %v4539_v13 }
 0x79d   :  { %v4440_v37 = vpop.f32.mrb[228].mxu0 }
 0x79e   :  { %v4441_v45 = vadd.f32 %v4440_v37, %v4288_v9  ;;  %v5269_v50 = vpop.f32.mrb[229].mxu0 }
 0x79f   :  { %v4443_v40 = vpop.f32.mrb[230].mxu0 }
 0x7a0   :  { %v4444_v3 = vadd.f32 %v4443_v40, %v4291_v33  ;;  %v5270_v15 = vpop.f32.mrb[231].mxu0  ;;  %v4541_v60 = vmax.f32 %v4441_v45, 0.0 }
 0x7a2   :  { %v4542_v54 = vmax.f32 %v4444_v3, 0.0 }
 0x7a4   :  { %v4568_v47 = vpack.c.bf16 %v4542_v54, %v4541_v60 }
 0x7a5   :  { %v4448_v5 = vpop.f32.mrb[232].mxu0 }
 0x7a6   :  { %v4449_v42 = vadd.f32 %v4448_v5, %v4296_v48  ;;  %v5273_v57 = vpop.f32.mrb[233].mxu0 }
 0x7a7   :  { %v4451_v25 = vpop.f32.mrb[234].mxu0 }
 0x7a8   :  { %v4452_v46 = vadd.f32 %v4451_v25, %v4299_v44  ;;  %v5274_v22 = vpop.f32.mrb[235].mxu0  ;;  %v4543_v24 = vmax.f32 %v4449_v42, 0.0 }
 0x7a9   :  { %v4587_v36 = vpop.permute.xlu0 %4586 }
 0x7aa   :  { %v4544_v39 = vmax.f32 %v4452_v46, 0.0  ;;  %v4614_v7 = vsel %vm1113_vm5, %v4565_v53, %v4587_v36 }
 0x7ac   :  { %v4569_v4 = vpack.c.bf16 %v4544_v39, %v4543_v24 }
 0x7b9   :  { %v4589_v34 = vpop.permute.xlu1 %4588 }
 0x7ba   :  { %v4617_v6 = vsel %vm1113_vm5, %v4566_v35, %v4589_v34 }
 0x7c1   :  { %v4591_v31 = vpop.permute.xlu0 %4590 }
 0x7c2   :  { %v4620_v29 = vsel %vm1113_vm5, %v4567_v32, %v4591_v31 }
 0x7d1   :  { %v4593_v51 = vpop.permute.xlu1 %4592 }
 0x7d2   :  { %v4623_v16 = vsel %vm1113_vm5, %v4568_v47, %v4593_v51 }
 0x7d9   :  { %v4595_v56 = vpop.permute.xlu0 %4594 }
 0x7da   :  { %v4626_v61 = vsel %vm1113_vm5, %v4569_v4, %v4595_v56 }
 0x7e5   :  { %v4597_v1 = vpop.permute.xlu1 %4596 }
 0x7e6   :  { %v4629_v19 = vsel %vm1113_vm5, %v8269_v12, %v4597_v1 }
 0x7ed   :  { %v4603_v41 = vpop.permute.xlu0 %4602 }
 0x7ee   :  { %v4631_v21 = vsel %vm1156_vm6, %v4614_v7, %v4603_v41 }
 0x7f5   :  { %v4605_v55 = vpop.permute.xlu1 %4604 }
 0x7f6   :  { %v4633_v23 = vsel %vm1156_vm6, %v4617_v6, %v4605_v55 }
 0x7f9   :  { %v4609_v62 = vpop.permute.xlu1 %4608 }
 0x7fa   :  { %v4637_v49 = vsel %vm1156_vm6, %v4623_v16, %v4609_v62  ;;  %v4638_v10 = vsel %vm1156_vm6, %v4626_v61, %v4609_v62  ;;  %v4639_v53 = vsel %vm1156_vm6, %v4629_v19, %v4609_v62 }
 0x7fd   :  { %v4607_v28 = vpop.permute.xlu0 %4606 }
 0x7fe   :  { %v4635_v20 = vsel %vm1156_vm6, %v4620_v29, %v4607_v28 }
 0x801   :  { %v4611_v58 = vpop.permute.xlu0 %4610 }
 0x802   :  { %v4641_v52 = vsel %vm1199_vm7, %v4631_v21, %v4611_v58  ;;  %v4642_v8 = vsel %vm1199_vm7, %v4633_v23, %v4611_v58  ;;  %v4643_v63 = vsel %vm1199_vm7, %v4635_v20, %v4611_v58  ;;  %v4644_v12 = vsel %vm1199_vm7, %v4637_v49, %v4611_v58 }
 0x803   :  { %v4645_v17 = vsel %vm1199_vm7, %v4638_v10, %v4611_v58  ;;  %v4646_v27 = vsel %vm1199_vm7, %v4639_v53, %v4611_v58  ;;  %v4867_v59 = vcombine.low %v4641_v52, %v4641_v52  ;;  %v4868_v35 = vcombine.high %v4641_v52, %v4641_v52 }
 0x804   :  { %v4869_v38 = vcombine.low %v4642_v8, %v4642_v8  ;;  %v4870_v11 = vcombine.high %v4642_v8, %v4642_v8  ;;  %v4871_v0 = vcombine.low %v4643_v63, %v4643_v63  ;;  %v4872_v26 = vcombine.high %v4643_v63, %v4643_v63 }
 0x805   :  { %v4873_v14 = vcombine.low %v4644_v12, %v4644_v12  ;;  %v4874_v18 = vcombine.high %v4644_v12, %v4644_v12  ;;  %v4875_v2 = vcombine.low %v4645_v17, %v4645_v17  ;;  %v4876_v30 = vcombine.high %v4645_v17, %v4645_v17  ;;  %4689 = vst [vmem:[%s8403_s9] sm:$0xf] %v4867_v59 }
 0x806   :  { %4690 = vst [vmem:[%s8403_s9 + $0x4] sm:$0xf] %v4868_v35  ;;  %v4877_v13 = vcombine.low %v4646_v27, %v4646_v27  ;;  %v4878_v43 = vcombine.high %v4646_v27, %v4646_v27  ;;  %4691 = vst [vmem:[%s8403_s9 + $0x8] sm:$0xf] %v4869_v38 }
 0x807   :  { %4692 = vst [vmem:[%s8403_s9 + $0xc] sm:$0xf] %v4870_v11  ;;  %4693 = vst [vmem:[%s8403_s9 + $0x10] sm:$0xf] %v4871_v0 }
 0x808   :  { %4694 = vst [vmem:[%s8403_s9 + $0x14] sm:$0xf] %v4872_v26  ;;  %4695 = vst [vmem:[%s8403_s9 + $0x18] sm:$0xf] %v4873_v14 }
 0x809   :  { %4696 = vst [vmem:[%s8403_s9 + $0x1c] sm:$0xf] %v4874_v18  ;;  %4697 = vst [vmem:[%s8403_s9 + $0x20] sm:$0xf] %v4875_v2 }
 0x80a   :  { %4698 = vst [vmem:[%s8403_s9 + $0x24] sm:$0xf] %v4876_v30  ;;  %4699 = vst [vmem:[%s8403_s9 + $0x28] sm:$0xf] %v4877_v13 }
 0x80b   :  { %4700 = vst [vmem:[%s8403_s9 + $0x2c] sm:$0xf] %v4878_v43 }

</bundles_post_ra>
